<compile_context>
chip_gen: v7x
topology: tpu7x:2x2x1
jax: 0.10.0
libtpu: 0.0.40
codegen_flags: <defaults>
</compile_context>

<pallas_src>
import functools

import jax
import jax.numpy as jnp
from jax.experimental import pallas as pl
from jax.experimental.pallas import tpu as pltpu


# ----------------------------------------------------------------------------
# Generation awareness: parallel splits only pay off with >1 TensorCore (v7x).
# Default to 1 (correct & optimal for v5e/v6e, merely conservative elsewhere).
# ----------------------------------------------------------------------------
def _tensorcores_per_chip():
    try:
        kind = jax.devices()[0].device_kind.lower()
    except Exception:
        return 1
    return 2 if "v7" in kind else 1


def _pick_tk(K, max_tk=2048):
    """Largest K tile that is a multiple of 128, divides K, and is <= max_tk."""
    if K <= max_tk:
        return K
    for tk in range(max_tk - max_tk % 128, 127, -128):
        if K % tk == 0:
            return tk
    return K


# ----------------------------------------------------------------------------
# Kernel 1: out = [relu](x @ w + bias), single-K (no scratch accumulator).
# Used by conv1/conv2 (x = conv weight matrix, w = im2col patches).
# ----------------------------------------------------------------------------
def _mm_bias_kernel(x_ref, w_ref, b_ref, o_ref, *, apply_relu):
    r = jnp.dot(x_ref[...], w_ref[...], preferred_element_type=jnp.float32)
    r = r + b_ref[...].astype(jnp.float32)
    if apply_relu:
        r = jnp.maximum(r, 0.0)
    o_ref[...] = r.astype(o_ref.dtype)


def matmul_bias_act(x, w, b_col, *, apply_relu=True, out_dtype=None,
                    row_split=1):
    """out = [relu](x @ w + b_col);  x:(R,K)  w:(K,M)  b_col:(R,1)."""
    R, K = x.shape
    Kw, M = w.shape
    assert K == Kw and b_col.shape == (R, 1)
    assert R % row_split == 0
    tr = R // row_split
    if row_split > 1:
        assert tr % 8 == 0, tr
    out_dtype = x.dtype if out_dtype is None else out_dtype
    return pl.pallas_call(
        functools.partial(_mm_bias_kernel, apply_relu=apply_relu),
        out_shape=jax.ShapeDtypeStruct((R, M), out_dtype),
        grid=(row_split,),
        in_specs=[
            pl.BlockSpec((tr, K), lambda j: (j, 0)),
            pl.BlockSpec((K, M), lambda j: (0, 0)),
            pl.BlockSpec((tr, 1), lambda j: (j, 0)),
        ],
        out_specs=pl.BlockSpec((tr, M), lambda j: (j, 0)),
        compiler_params=pltpu.CompilerParams(
            dimension_semantics=("parallel",)),
    )(x, w, b_col)


# ----------------------------------------------------------------------------
# Kernel 2: conv3 (3x3, stride 1, pad 1) with in-kernel patch assembly.
# Input is a flattened zero-framed slab (C, B*Hf*Wf) [+ tail pad]; every
# kernel tap (di, dj) is the window x[:, shift : shift + N] with
# shift = di*Wf + dj, matmul'd against the (Cout, Cin) slab of the weight.
# ----------------------------------------------------------------------------
def _conv3_kernel(x_ref, w_ref, b_ref, o_ref, *, frame_w):
    cout, n = o_ref.shape
    acc = jnp.zeros((cout, n), jnp.float32)
    for di in range(3):
        for dj in range(3):
            shift = di * frame_w + dj
            win = x_ref[:, pl.ds(shift, n)]                 # (Cin, N)
            acc = acc + jnp.dot(w_ref[di * 3 + dj], win,
                                preferred_element_type=jnp.float32)
    r = acc + b_ref[...].astype(jnp.float32)
    o_ref[...] = jnp.maximum(r, 0.0).astype(o_ref.dtype)


def conv3_fused(x_flat, w9, b_col, *, frame_w, n_out, out_dtype):
    C, n_pad = x_flat.shape
    n_pos, cout, cin = w9.shape
    assert n_pos == 9 and cin == C
    assert b_col.shape == (cout, 1)
    assert n_pad >= n_out + 2 * frame_w + 2
    return pl.pallas_call(
        functools.partial(_conv3_kernel, frame_w=frame_w),
        out_shape=jax.ShapeDtypeStruct((cout, n_out), out_dtype),
        grid=(1,),
        in_specs=[
            pl.BlockSpec((C, n_pad), lambda i: (0, 0)),
            pl.BlockSpec((9, cout, cin), lambda i: (0, 0, 0)),
            pl.BlockSpec((cout, 1), lambda i: (0, 0)),
        ],
        out_specs=pl.BlockSpec((cout, n_out), lambda i: (0, 0)),
        compiler_params=pltpu.CompilerParams(
            dimension_semantics=("arbitrary",)),
    )(x_flat, w9, b_col)


# ----------------------------------------------------------------------------
# Kernel 3: fc(8320->512) + ReLU fused with the (512 -> 128-padded) heads.
# K is tiled on an "arbitrary" axis with an f32 accumulator; the head matmul
# lives in the k==last epilogue.  Optional "parallel" column split (v7x).
# ----------------------------------------------------------------------------
def _fc_head_kernel(x_ref, fcw_ref, fcb_ref, hw_ref, o_ref, acc_ref):
    k = pl.program_id(1)

    @pl.when(k == 0)
    def _():
        acc_ref[...] = jnp.zeros_like(acc_ref)

    acc_ref[...] += jnp.dot(x_ref[...], fcw_ref[...],
                            preferred_element_type=jnp.float32)

    @pl.when(k == pl.num_programs(1) - 1)
    def _():
        feats = jnp.maximum(acc_ref[...] + fcb_ref[...].astype(jnp.float32),
                            0.0)
        heads = jnp.dot(feats.astype(hw_ref.dtype), hw_ref[...],
                        preferred_element_type=jnp.float32)
        o_ref[...] = heads[None].astype(o_ref.dtype)


def fc_head_fused(x, fc_w, fc_b, head_w, *, col_split=1, max_tk=2048,
                  weight_buffers=2):
    B, K = x.shape
    Kw, C = fc_w.shape
    Ch, Hp = head_w.shape
    assert K == Kw and Ch == C and fc_b.shape == (1, C)
    assert C % col_split == 0
    tc = C // col_split
    if col_split > 1:
        assert tc % 128 == 0, tc
    tk = _pick_tk(K, max_tk)
    nk = K // tk

    fcw_spec = pl.BlockSpec((tk, tc), lambda j, k: (k, j))
    if weight_buffers != 2:
        try:  # deeper weight pipelining (v7x); fall back cleanly if rejected
            fcw_spec = pl.BlockSpec((tk, tc), lambda j, k: (k, j),
                                    pipeline_mode=pl.Buffered(weight_buffers))
        except TypeError:
            pass

    return pl.pallas_call(
        _fc_head_kernel,
        out_shape=jax.ShapeDtypeStruct((col_split, B, Hp), jnp.float32),
        grid=(col_split, nk),
        in_specs=[
            pl.BlockSpec((B, tk), lambda j, k: (0, k)),
            fcw_spec,
            pl.BlockSpec((1, tc), lambda j, k: (0, j)),
            pl.BlockSpec((tc, Hp), lambda j, k: (j, 0)),
        ],
        out_specs=pl.BlockSpec((1, B, Hp), lambda j, k: (j, 0, 0)),
        scratch_shapes=[pltpu.VMEM((B, tc), jnp.float32)],
        compiler_params=pltpu.CompilerParams(
            dimension_semantics=("parallel", "arbitrary")),
    )(x, fc_w, fc_b, head_w)


# ----------------------------------------------------------------------------
# im2col (XLA glue) for the strided convs; K ordered (di, dj, c).
# ----------------------------------------------------------------------------
def _im2col(x, *, kernel_size, stride, padding):
    C, B, H, W = x.shape
    kh = kw = kernel_size
    xp = jnp.pad(x, ((0, 0), (0, 0), (padding, padding), (padding, padding)))
    hp, wp = H + 2 * padding, W + 2 * padding
    ho = (hp - kh) // stride + 1
    wo = (wp - kw) // stride + 1
    slabs = []
    for di in range(kh):
        for dj in range(kw):
            slabs.append(xp[:, :,
                            di:di + stride * (ho - 1) + 1:stride,
                            dj:dj + stride * (wo - 1) + 1:stride])
    patches = jnp.stack(slabs, axis=0).reshape(kh * kw * C, B * ho * wo)
    return patches, ho, wo


# ----------------------------------------------------------------------------
# Parameter init: PyTorch-style uniform(+-1/sqrt(fan_in)), one-time layout
# conversion (bf16 weights, f32 biases, fused/padded heads).
# ----------------------------------------------------------------------------
def _uniform(key, shape, fan_in):
    bound = float(fan_in) ** -0.5
    return jax.random.uniform(key, shape, jnp.float32, -bound, bound)


def _conv_w_to_mat(w):
    """torch (Cout, Cin, kh, kw) -> (Cout, kh*kw*Cin); K order (di, dj, c)."""
    cout, cin, kh, kw = w.shape
    return w.transpose(0, 2, 3, 1).reshape(cout, kh * kw * cin)


def init_params(key, state_dim, n_alternatives, compute_dtype=jnp.bfloat16):
    ks = jax.random.split(key, 12)
    c1_w = _uniform(ks[0], (32, state_dim, 8, 8), state_dim * 64)
    c1_b = _uniform(ks[1], (32,), state_dim * 64)
    c2_w = _uniform(ks[2], (64, 32, 4, 4), 32 * 16)
    c2_b = _uniform(ks[3], (64,), 32 * 16)
    c3_w = _uniform(ks[4], (64, 64, 3, 3), 64 * 9)
    c3_b = _uniform(ks[5], (64,), 64 * 9)
    fc_w = _uniform(ks[6], (512, 8320), 8320)
    fc_b = _uniform(ks[7], (512,), 8320)
    actor_w = _uniform(ks[8], (n_alternatives, 512), 512)
    actor_b = _uniform(ks[9], (n_alternatives,), 512)
    critic_w = _uniform(ks[10], (1, 512), 512)
    critic_b = _uniform(ks[11], (1,), 512)

    # Fused actor+critic head, zero-padded to a lane-dense 128-wide output.
    n_head = n_alternatives + 1
    hpad = max(128, pl.cdiv(n_head, 128) * 128)
    head_w = jnp.zeros((512, hpad), jnp.float32)
    head_w = head_w.at[:, :n_alternatives].set(actor_w.T)
    head_w = head_w.at[:, n_alternatives].set(critic_w[0])
    head_b = jnp.zeros((1, hpad), jnp.float32)
    head_b = head_b.at[0, :n_alternatives].set(actor_b)
    head_b = head_b.at[0, n_alternatives].set(critic_b[0])

    p = {
        "c1_w": _conv_w_to_mat(c1_w).astype(compute_dtype),        # (32, 256)
        "c1_b": c1_b.reshape(-1, 1),
        "c2_w": _conv_w_to_mat(c2_w).astype(compute_dtype),        # (64, 512)
        "c2_b": c2_b.reshape(-1, 1),
        # conv3 weights as (9, Cout, Cin): one (Cout, Cin) slab per (di, dj).
        "c3_w": c3_w.transpose(2, 3, 0, 1).reshape(9, 64, 64)
                     .astype(compute_dtype),
        "c3_b": c3_b.reshape(-1, 1),
        "fc_w": fc_w.T.astype(compute_dtype),                      # (8320, 512)
        "fc_b": fc_b.reshape(1, -1),
        "head_w": head_w.astype(compute_dtype),                    # (512, 128)
        "head_b": head_b,                                          # (1, 128)
    }
    if n_alternatives == 1:
        p["sigma"] = jnp.array(1.0, jnp.float32)
    return p


# ----------------------------------------------------------------------------
# Forward pass (mirrors ActorCritic.forward)
# ----------------------------------------------------------------------------
def actor_critic_forward(params, state, n_alternatives, predict_distr=True):
    cdt = params["c1_w"].dtype
    B = state.shape[0]
    ntc = _tensorcores_per_chip()

    # NCHW -> channel-major (C, B, H, W), bf16 compute dtype.
    x = state.astype(cdt).transpose(1, 0, 2, 3)

    # conv1 + ReLU (stride 4): im2col glue + single-step Pallas matmul.
    # TODO(synk): fold the strided conv1/conv2 patch extraction into the
    # kernel as well; only stride-1 conv3 is fully fused so far.
    p1, ho1, wo1 = _im2col(x, kernel_size=8, stride=4, padding=4)
    rs1 = ntc if (ntc > 1 and (32 // ntc) % 8 == 0) else 1
    y1 = matmul_bias_act(params["c1_w"], p1, params["c1_b"],
                         out_dtype=cdt, row_split=rs1)          # (32, B*25*19)
    y1 = y1.reshape(32, B, ho1, wo1)

    # conv2 + ReLU (stride 2).
    p2, ho2, wo2 = _im2col(y1, kernel_size=4, stride=2, padding=2)
    rs2 = ntc if (ntc > 1 and (64 // ntc) % 8 == 0) else 1
    y2 = matmul_bias_act(params["c2_w"], p2, params["c2_b"],
                         out_dtype=cdt, row_split=rs2)          # (64, B*13*10)

    # conv3 + ReLU: zero-framed flat slab (frame == the conv's padding=1),
    # patch assembly fused in-kernel via shifted windows.
    hf, wf = ho2 + 2, wo2 + 2
    n_flat = B * hf * wf
    frame = jnp.pad(y2.reshape(64, B, ho2, wo2),
                    ((0, 0), (0, 0), (1, 1), (1, 1))).reshape(64, n_flat)
    max_shift = 2 * wf + 2
    frame = jnp.pad(frame, ((0, 0), (0, max_shift + 6)))        # in-bounds taps
    y3 = conv3_fused(frame, params["c3_w"], params["c3_b"],
                     frame_w=wf, n_out=n_flat, out_dtype=cdt)   # (64, B*hf*wf)

    # torch.nn.Flatten on NCHW: drop the frame border, then (B, C*H*W).
    y3 = y3.reshape(64, B, hf, wf)[:, :, :ho2, :wo2]
    feats_in = y3.transpose(1, 0, 2, 3).reshape(B, -1)          # (B, 8320)

    # fc(8320->512) + ReLU + fused actor/critic heads (one pallas_call).
    cs = ntc if (ntc > 1 and (512 // ntc) % 128 == 0) else 1
    parts = fc_head_fused(feats_in, params["fc_w"], params["fc_b"],
                          params["head_w"], col_split=cs,
                          weight_buffers=3 if ntc > 1 else 2)
    heads = parts.sum(axis=0) + params["head_b"]                # (B, 128 pad)

    value = jnp.squeeze(heads[:, n_alternatives:n_alternatives + 1])
    if not predict_distr:
        return value

    distr_params = heads[:, :n_alternatives]
    if n_alternatives == 1:
        # TODO(synk): torch.distributions.Normal has no Pallas equivalent;
        # return (mean, sigma) parameters instead.
        return (jnp.squeeze(distr_params), params["sigma"]), value
    # TODO(synk): torch.distributions.Categorical has no Pallas equivalent;
    # return the logits instead.
    return distr_params, value


if __name__ == "__main__":
    # Input spatial size must produce 8320 = 64*13*10 features after the three
    # convs -> (H, W) = (96, 72), matching torch.nn.Linear(8320, 512).
    B, STATE_DIM, H, W = 2, 4, 96, 72
    N_ALTERNATIVES = 6

    key = jax.random.PRNGKey(0)
    pkey, xkey = jax.random.split(key)
    params = init_params(pkey, STATE_DIM, N_ALTERNATIVES)
    state = jax.random.normal(xkey, (B, STATE_DIM, H, W), jnp.float32)

    fwd = jax.jit(
        functools.partial(actor_critic_forward, n_alternatives=N_ALTERNATIVES))
    logits, value = fwd(params, state)
    jax.block_until_ready((logits, value))

    assert logits.shape == (B, N_ALTERNATIVES), logits.shape
    assert value.shape == (B,), value.shape
    assert bool(jnp.isfinite(logits).all()) and bool(jnp.isfinite(value).all())
    print("KERNEL_OK")
</pallas_src>

<mosaic_0001>
module attributes {stable_mosaic.version = 11 : i64} {
  func.func @_mm_bias_kernel(%arg0: i32, %arg1: memref<32x256xbf16, #tpu.memory_space<vmem>>, %arg2: memref<256x950xbf16, #tpu.memory_space<vmem>>, %arg3: memref<32x1xf32, #tpu.memory_space<vmem>>, %arg4: memref<32x950xbf16, #tpu.memory_space<vmem>>) attributes {dimension_semantics = [#tpu.dimension_semantics<parallel>], iteration_bounds = array<i64: 1>, scalar_prefetch = 0 : i64, scratch_operands = 0 : i64, tpu.core_type = #tpu.core_type<tc>, window_params = [{transform_indices = @transform_0, window_bounds = array<i64: 32, 256>}, {pipeline_mode = #tpu.pipeline_mode<synchronous>, transform_indices = @transform_1, window_bounds = array<i64: 256, 950>}, {transform_indices = @transform_2, window_bounds = array<i64: 32, 1>}, {transform_indices = @transform_3, window_bounds = array<i64: 32, 950>}]} {
    %c0 = arith.constant 0 : index
    %c0_0 = arith.constant 0 : index
    %0 = vector.load %arg1[%c0, %c0_0] : memref<32x256xbf16, #tpu.memory_space<vmem>>, vector<32x256xbf16>
    %c0_1 = arith.constant 0 : index
    %c0_2 = arith.constant 0 : index
    %1 = vector.load %arg2[%c0_1, %c0_2] : memref<256x950xbf16, #tpu.memory_space<vmem>>, vector<256x950xbf16>
    %cst = arith.constant dense<0.000000e+00> : vector<32x950xf32>
    %2 = tpu.matmul %0, %1, %cst {dimension_numbers = #tpu.dot_dimension_numbers<[1], [0], [0], [1], [0, 0, 1, 1], [], []>} : vector<32x256xbf16>, vector<256x950xbf16>, vector<32x950xf32> -> vector<32x950xf32>
    %c0_3 = arith.constant 0 : index
    %c0_4 = arith.constant 0 : index
    %3 = vector.load %arg3[%c0_3, %c0_4] : memref<32x1xf32, #tpu.memory_space<vmem>>, vector<32x1xf32>
    %4 = vector.broadcast %3 : vector<32x1xf32> to vector<32x950xf32>
    %5 = arith.addf %2, %4 : vector<32x950xf32>
    %cst_5 = arith.constant 0.000000e+00 : f32
    %6 = vector.broadcast %cst_5 : f32 to vector<32x950xf32>
    %7 = arith.maximumf %5, %6 : vector<32x950xf32>
    %8 = arith.truncf %7 : vector<32x950xf32> to vector<32x950xbf16>
    %c0_6 = arith.constant 0 : index
    %c0_7 = arith.constant 0 : index
    %9 = vector.load %arg4[%c0_6, %c0_7] : memref<32x950xbf16, #tpu.memory_space<vmem>>, vector<32x950xbf16>
    tpu.vector_store %arg4[%c0_6, %c0_7], %8 {strides = array<i32>} : memref<32x950xbf16, #tpu.memory_space<vmem>>, vector<32x950xbf16>,
    return
  }
  func.func @transform_0(%arg0: i32) -> (i32, i32) {
    %c0_i32 = arith.constant 0 : i32
    %c0_i32_0 = arith.constant 0 : i32
    return %arg0, %c0_i32 : i32, i32
  }
  func.func @transform_1(%arg0: i32) -> (i32, i32) {
    %c0_i32 = arith.constant 0 : i32
    %c0_i32_0 = arith.constant 0 : i32
    %c0_i32_1 = arith.constant 0 : i32
    return %c0_i32, %c0_i32_0 : i32, i32
  }
  func.func @transform_2(%arg0: i32) -> (i32, i32) {
    %c0_i32 = arith.constant 0 : i32
    %c0_i32_0 = arith.constant 0 : i32
    return %arg0, %c0_i32 : i32, i32
  }
  func.func @transform_3(%arg0: i32) -> (i32, i32) {
    %c0_i32 = arith.constant 0 : i32
    %c0_i32_0 = arith.constant 0 : i32
    return %arg0, %c0_i32 : i32, i32
  }
}

module attributes {stable_mosaic.version = 11 : i64} {
  func.func @_mm_bias_kernel(%arg0: i32, %arg1: memref<64x512xbf16, #tpu.memory_space<vmem>>, %arg2: memref<512x260xbf16, #tpu.memory_space<vmem>>, %arg3: memref<64x1xf32, #tpu.memory_space<vmem>>, %arg4: memref<64x260xbf16, #tpu.memory_space<vmem>>) attributes {dimension_semantics = [#tpu.dimension_semantics<parallel>], iteration_bounds = array<i64: 1>, scalar_prefetch = 0 : i64, scratch_operands = 0 : i64, tpu.core_type = #tpu.core_type<tc>, window_params = [{transform_indices = @transform_0, window_bounds = array<i64: 64, 512>}, {pipeline_mode = #tpu.pipeline_mode<synchronous>, transform_indices = @transform_1, window_bounds = array<i64: 512, 260>}, {transform_indices = @transform_2, window_bounds = array<i64: 64, 1>}, {transform_indices = @transform_3, window_bounds = array<i64: 64, 260>}]} {
    %c0 = arith.constant 0 : index
    %c0_0 = arith.constant 0 : index
    %0 = vector.load %arg1[%c0, %c0_0] : memref<64x512xbf16, #tpu.memory_space<vmem>>, vector<64x512xbf16>
    %c0_1 = arith.constant 0 : index
    %c0_2 = arith.constant 0 : index
    %1 = vector.load %arg2[%c0_1, %c0_2] : memref<512x260xbf16, #tpu.memory_space<vmem>>, vector<512x260xbf16>
    %cst = arith.constant dense<0.000000e+00> : vector<64x260xf32>
    %2 = tpu.matmul %0, %1, %cst {dimension_numbers = #tpu.dot_dimension_numbers<[1], [0], [0], [1], [0, 0, 1, 1], [], []>} : vector<64x512xbf16>, vector<512x260xbf16>, vector<64x260xf32> -> vector<64x260xf32>
    %c0_3 = arith.constant 0 : index
    %c0_4 = arith.constant 0 : index
    %3 = vector.load %arg3[%c0_3, %c0_4] : memref<64x1xf32, #tpu.memory_space<vmem>>, vector<64x1xf32>
    %4 = vector.broadcast %3 : vector<64x1xf32> to vector<64x260xf32>
    %5 = arith.addf %2, %4 : vector<64x260xf32>
    %cst_5 = arith.constant 0.000000e+00 : f32
    %6 = vector.broadcast %cst_5 : f32 to vector<64x260xf32>
    %7 = arith.maximumf %5, %6 : vector<64x260xf32>
    %8 = arith.truncf %7 : vector<64x260xf32> to vector<64x260xbf16>
    %c0_6 = arith.constant 0 : index
    %c0_7 = arith.constant 0 : index
    %9 = vector.load %arg4[%c0_6, %c0_7] : memref<64x260xbf16, #tpu.memory_space<vmem>>, vector<64x260xbf16>
    tpu.vector_store %arg4[%c0_6, %c0_7], %8 {strides = array<i32>} : memref<64x260xbf16, #tpu.memory_space<vmem>>, vector<64x260xbf16>,
    return
  }
  func.func @transform_0(%arg0: i32) -> (i32, i32) {
    %c0_i32 = arith.constant 0 : i32
    %c0_i32_0 = arith.constant 0 : i32
    return %arg0, %c0_i32 : i32, i32
  }
  func.func @transform_1(%arg0: i32) -> (i32, i32) {
    %c0_i32 = arith.constant 0 : i32
    %c0_i32_0 = arith.constant 0 : i32
    %c0_i32_1 = arith.constant 0 : i32
    return %c0_i32, %c0_i32_0 : i32, i32
  }
  func.func @transform_2(%arg0: i32) -> (i32, i32) {
    %c0_i32 = arith.constant 0 : i32
    %c0_i32_0 = arith.constant 0 : i32
    return %arg0, %c0_i32 : i32, i32
  }
  func.func @transform_3(%arg0: i32) -> (i32, i32) {
    %c0_i32 = arith.constant 0 : i32
    %c0_i32_0 = arith.constant 0 : i32
    return %arg0, %c0_i32 : i32, i32
  }
}

module attributes {stable_mosaic.version = 11 : i64} {
  func.func @_conv3_kernel(%arg0: i32, %arg1: memref<64x392xbf16, #tpu.memory_space<vmem>>, %arg2: memref<9x64x64xbf16, #tpu.memory_space<vmem>>, %arg3: memref<64x1xf32, #tpu.memory_space<vmem>>, %arg4: memref<64x360xbf16, #tpu.memory_space<vmem>>) attributes {dimension_semantics = [#tpu.dimension_semantics<arbitrary>], iteration_bounds = array<i64: 1>, scalar_prefetch = 0 : i64, scratch_operands = 0 : i64, tpu.core_type = #tpu.core_type<tc>, window_params = [{pipeline_mode = #tpu.pipeline_mode<synchronous>, transform_indices = @transform_0, window_bounds = array<i64: 64, 392>}, {pipeline_mode = #tpu.pipeline_mode<synchronous>, transform_indices = @transform_1, window_bounds = array<i64: 9, 64, 64>}, {pipeline_mode = #tpu.pipeline_mode<synchronous>, transform_indices = @transform_2, window_bounds = array<i64: 64, 1>}, {pipeline_mode = #tpu.pipeline_mode<synchronous>, transform_indices = @transform_3, window_bounds = array<i64: 64, 360>}]} {
    %cst = arith.constant 0.000000e+00 : f32
    %0 = vector.broadcast %cst : f32 to vector<64x360xf32>
    %c0 = arith.constant 0 : index
    %c0_0 = arith.constant 0 : index
    %1 = vector.load %arg1[%c0, %c0_0] : memref<64x392xbf16, #tpu.memory_space<vmem>>, vector<64x360xbf16>
    %c0_1 = arith.constant 0 : index
    %c0_2 = arith.constant 0 : index
    %c0_3 = arith.constant 0 : index
    %2 = vector.load %arg2[%c0_1, %c0_2, %c0_3] : memref<9x64x64xbf16, #tpu.memory_space<vmem>>, vector<1x64x64xbf16>
    %3 = vector.shape_cast %2 : vector<1x64x64xbf16> to vector<64x64xbf16>
    %cst_4 = arith.constant dense<0.000000e+00> : vector<64x360xf32>
    %4 = tpu.matmul %3, %1, %cst_4 {dimension_numbers = #tpu.dot_dimension_numbers<[1], [0], [0], [1], [0, 0, 1, 1], [], []>} : vector<64x64xbf16>, vector<64x360xbf16>, vector<64x360xf32> -> vector<64x360xf32>
    %5 = arith.addf %0, %4 : vector<64x360xf32>
    %c0_5 = arith.constant 0 : index
    %c1 = arith.constant 1 : index
    %6 = vector.load %arg1[%c0_5, %c1] : memref<64x392xbf16, #tpu.memory_space<vmem>>, vector<64x360xbf16>
    %c1_6 = arith.constant 1 : index
    %c0_7 = arith.constant 0 : index
    %c0_8 = arith.constant 0 : index
    %7 = vector.load %arg2[%c1_6, %c0_7, %c0_8] : memref<9x64x64xbf16, #tpu.memory_space<vmem>>, vector<1x64x64xbf16>
    %8 = vector.shape_cast %7 : vector<1x64x64xbf16> to vector<64x64xbf16>
    %cst_9 = arith.constant dense<0.000000e+00> : vector<64x360xf32>
    %9 = tpu.matmul %8, %6, %cst_9 {dimension_numbers = #tpu.dot_dimension_numbers<[1], [0], [0], [1], [0, 0, 1, 1], [], []>} : vector<64x64xbf16>, vector<64x360xbf16>, vector<64x360xf32> -> vector<64x360xf32>
    %10 = arith.addf %5, %9 : vector<64x360xf32>
    %c0_10 = arith.constant 0 : index
    %c2 = arith.constant 2 : index
    %11 = vector.load %arg1[%c0_10, %c2] : memref<64x392xbf16, #tpu.memory_space<vmem>>, vector<64x360xbf16>
    %c2_11 = arith.constant 2 : index
    %c0_12 = arith.constant 0 : index
    %c0_13 = arith.constant 0 : index
    %12 = vector.load %arg2[%c2_11, %c0_12, %c0_13] : memref<9x64x64xbf16, #tpu.memory_space<vmem>>, vector<1x64x64xbf16>
    %13 = vector.shape_cast %12 : vector<1x64x64xbf16> to vector<64x64xbf16>
    %cst_14 = arith.constant dense<0.000000e+00> : vector<64x360xf32>
    %14 = tpu.matmul %13, %11, %cst_14 {dimension_numbers = #tpu.dot_dimension_numbers<[1], [0], [0], [1], [0, 0, 1, 1], [], []>} : vector<64x64xbf16>, vector<64x360xbf16>, vector<64x360xf32> -> vector<64x360xf32>
    %15 = arith.addf %10, %14 : vector<64x360xf32>
    %c0_15 = arith.constant 0 : index
    %c12 = arith.constant 12 : index
    %16 = vector.load %arg1[%c0_15, %c12] : memref<64x392xbf16, #tpu.memory_space<vmem>>, vector<64x360xbf16>
    %c3 = arith.constant 3 : index
    %c0_16 = arith.constant 0 : index
    %c0_17 = arith.constant 0 : index
    %17 = vector.load %arg2[%c3, %c0_16, %c0_17] : memref<9x64x64xbf16, #tpu.memory_space<vmem>>, vector<1x64x64xbf16>
    %18 = vector.shape_cast %17 : vector<1x64x64xbf16> to vector<64x64xbf16>
    %cst_18 = arith.constant dense<0.000000e+00> : vector<64x360xf32>
    %19 = tpu.matmul %18, %16, %cst_18 {dimension_numbers = #tpu.dot_dimension_numbers<[1], [0], [0], [1], [0, 0, 1, 1], [], []>} : vector<64x64xbf16>, vector<64x360xbf16>, vector<64x360xf32> -> vector<64x360xf32>
    %20 = arith.addf %15, %19 : vector<64x360xf32>
    %c0_19 = arith.constant 0 : index
    %c13 = arith.constant 13 : index
    %21 = vector.load %arg1[%c0_19, %c13] : memref<64x392xbf16, #tpu.memory_space<vmem>>, vector<64x360xbf16>
    %c4 = arith.constant 4 : index
    %c0_20 = arith.constant 0 : index
    %c0_21 = arith.constant 0 : index
    %22 = vector.load %arg2[%c4, %c0_20, %c0_21] : memref<9x64x64xbf16, #tpu.memory_space<vmem>>, vector<1x64x64xbf16>
    %23 = vector.shape_cast %22 : vector<1x64x64xbf16> to vector<64x64xbf16>
    %cst_22 = arith.constant dense<0.000000e+00> : vector<64x360xf32>
    %24 = tpu.matmul %23, %21, %cst_22 {dimension_numbers = #tpu.dot_dimension_numbers<[1], [0], [0], [1], [0, 0, 1, 1], [], []>} : vector<64x64xbf16>, vector<64x360xbf16>, vector<64x360xf32> -> vector<64x360xf32>
    %25 = arith.addf %20, %24 : vector<64x360xf32>
    %c0_23 = arith.constant 0 : index
    %c14 = arith.constant 14 : index
    %26 = vector.load %arg1[%c0_23, %c14] : memref<64x392xbf16, #tpu.memory_space<vmem>>, vector<64x360xbf16>
    %c5 = arith.constant 5 : index
    %c0_24 = arith.constant 0 : index
    %c0_25 = arith.constant 0 : index
    %27 = vector.load %arg2[%c5, %c0_24, %c0_25] : memref<9x64x64xbf16, #tpu.memory_space<vmem>>, vector<1x64x64xbf16>
    %28 = vector.shape_cast %27 : vector<1x64x64xbf16> to vector<64x64xbf16>
    %cst_26 = arith.constant dense<0.000000e+00> : vector<64x360xf32>
    %29 = tpu.matmul %28, %26, %cst_26 {dimension_numbers = #tpu.dot_dimension_numbers<[1], [0], [0], [1], [0, 0, 1, 1], [], []>} : vector<64x64xbf16>, vector<64x360xbf16>, vector<64x360xf32> -> vector<64x360xf32>
    %30 = arith.addf %25, %29 : vector<64x360xf32>
    %c0_27 = arith.constant 0 : index
    %c24 = arith.constant 24 : index
    %31 = vector.load %arg1[%c0_27, %c24] : memref<64x392xbf16, #tpu.memory_space<vmem>>, vector<64x360xbf16>
    %c6 = arith.constant 6 : index
    %c0_28 = arith.constant 0 : index
    %c0_29 = arith.constant 0 : index
    %32 = vector.load %arg2[%c6, %c0_28, %c0_29] : memref<9x64x64xbf16, #tpu.memory_space<vmem>>, vector<1x64x64xbf16>
    %33 = vector.shape_cast %32 : vector<1x64x64xbf16> to vector<64x64xbf16>
    %cst_30 = arith.constant dense<0.000000e+00> : vector<64x360xf32>
    %34 = tpu.matmul %33, %31, %cst_30 {dimension_numbers = #tpu.dot_dimension_numbers<[1], [0], [0], [1], [0, 0, 1, 1], [], []>} : vector<64x64xbf16>, vector<64x360xbf16>, vector<64x360xf32> -> vector<64x360xf32>
    %35 = arith.addf %30, %34 : vector<64x360xf32>
    %c0_31 = arith.constant 0 : index
    %c25 = arith.constant 25 : index
    %36 = vector.load %arg1[%c0_31, %c25] : memref<64x392xbf16, #tpu.memory_space<vmem>>, vector<64x360xbf16>
    %c7 = arith.constant 7 : index
    %c0_32 = arith.constant 0 : index
    %c0_33 = arith.constant 0 : index
    %37 = vector.load %arg2[%c7, %c0_32, %c0_33] : memref<9x64x64xbf16, #tpu.memory_space<vmem>>, vector<1x64x64xbf16>
    %38 = vector.shape_cast %37 : vector<1x64x64xbf16> to vector<64x64xbf16>
    %cst_34 = arith.constant dense<0.000000e+00> : vector<64x360xf32>
    %39 = tpu.matmul %38, %36, %cst_34 {dimension_numbers = #tpu.dot_dimension_numbers<[1], [0], [0], [1], [0, 0, 1, 1], [], []>} : vector<64x64xbf16>, vector<64x360xbf16>, vector<64x360xf32> -> vector<64x360xf32>
    %40 = arith.addf %35, %39 : vector<64x360xf32>
    %c0_35 = arith.constant 0 : index
    %c26 = arith.constant 26 : index
    %41 = vector.load %arg1[%c0_35, %c26] : memref<64x392xbf16, #tpu.memory_space<vmem>>, vector<64x360xbf16>
    %c8 = arith.constant 8 : index
    %c0_36 = arith.constant 0 : index
    %c0_37 = arith.constant 0 : index
    %42 = vector.load %arg2[%c8, %c0_36, %c0_37] : memref<9x64x64xbf16, #tpu.memory_space<vmem>>, vector<1x64x64xbf16>
    %43 = vector.shape_cast %42 : vector<1x64x64xbf16> to vector<64x64xbf16>
    %cst_38 = arith.constant dense<0.000000e+00> : vector<64x360xf32>
    %44 = tpu.matmul %43, %41, %cst_38 {dimension_numbers = #tpu.dot_dimension_numbers<[1], [0], [0], [1], [0, 0, 1, 1], [], []>} : vector<64x64xbf16>, vector<64x360xbf16>, vector<64x360xf32> -> vector<64x360xf32>
    %45 = arith.addf %40, %44 : vector<64x360xf32>
    %c0_39 = arith.constant 0 : index
    %c0_40 = arith.constant 0 : index
    %46 = vector.load %arg3[%c0_39, %c0_40] : memref<64x1xf32, #tpu.memory_space<vmem>>, vector<64x1xf32>
    %47 = vector.broadcast %46 : vector<64x1xf32> to vector<64x360xf32>
    %48 = arith.addf %45, %47 : vector<64x360xf32>
    %cst_41 = arith.constant 0.000000e+00 : f32
    %49 = vector.broadcast %cst_41 : f32 to vector<64x360xf32>
    %50 = arith.maximumf %48, %49 : vector<64x360xf32>
    %51 = arith.truncf %50 : vector<64x360xf32> to vector<64x360xbf16>
    %c0_42 = arith.constant 0 : index
    %c0_43 = arith.constant 0 : index
    %52 = vector.load %arg4[%c0_42, %c0_43] : memref<64x360xbf16, #tpu.memory_space<vmem>>, vector<64x360xbf16>
    tpu.vector_store %arg4[%c0_42, %c0_43], %51 {strides = array<i32>} : memref<64x360xbf16, #tpu.memory_space<vmem>>, vector<64x360xbf16>,
    return
  }
  func.func @transform_0(%arg0: i32) -> (i32, i32) {
    %c0_i32 = arith.constant 0 : i32
    %c0_i32_0 = arith.constant 0 : i32
    %c0_i32_1 = arith.constant 0 : i32
    return %c0_i32, %c0_i32_0 : i32, i32
  }
  func.func @transform_1(%arg0: i32) -> (i32, i32, i32) {
    %c0_i32 = arith.constant 0 : i32
    %c0_i32_0 = arith.constant 0 : i32
    %c0_i32_1 = arith.constant 0 : i32
    %c0_i32_2 = arith.constant 0 : i32
    return %c0_i32, %c0_i32_0, %c0_i32_1 : i32, i32, i32
  }
  func.func @transform_2(%arg0: i32) -> (i32, i32) {
    %c0_i32 = arith.constant 0 : i32
    %c0_i32_0 = arith.constant 0 : i32
    %c0_i32_1 = arith.constant 0 : i32
    return %c0_i32, %c0_i32_0 : i32, i32
  }
  func.func @transform_3(%arg0: i32) -> (i32, i32) {
    %c0_i32 = arith.constant 0 : i32
    %c0_i32_0 = arith.constant 0 : i32
    %c0_i32_1 = arith.constant 0 : i32
    return %c0_i32, %c0_i32_0 : i32, i32
  }
}

module attributes {stable_mosaic.version = 11 : i64} {
  func.func @_fc_head_kernel(%arg0: i32, %arg1: i32, %arg2: memref<2x1664xbf16, #tpu.memory_space<vmem>>, %arg3: memref<1664x512xbf16, #tpu.memory_space<vmem>>, %arg4: memref<1x512xf32, #tpu.memory_space<vmem>>, %arg5: memref<512x128xbf16, #tpu.memory_space<vmem>>, %arg6: memref<1x2x128xf32, #tpu.memory_space<vmem>>, %arg7: memref<2x512xf32, #tpu.memory_space<vmem>>) attributes {dimension_semantics = [#tpu.dimension_semantics<parallel>, #tpu.dimension_semantics<arbitrary>], iteration_bounds = array<i64: 1, 5>, scalar_prefetch = 0 : i64, scratch_operands = 1 : i64, tpu.core_type = #tpu.core_type<tc>, window_params = [{transform_indices = @transform_0, window_bounds = array<i64: 2, 1664>}, {transform_indices = @transform_1, window_bounds = array<i64: 1664, 512>}, {transform_indices = @transform_2, window_bounds = array<i64: 1, 512>}, {transform_indices = @transform_3, window_bounds = array<i64: 512, 128>}, {transform_indices = @transform_4, window_bounds = array<i64: 1, 2, 128>}]} {
    %c0_i32 = arith.constant 0 : i32
    %0 = arith.cmpi eq, %arg1, %c0_i32 : i32
    %1 = arith.extui %0 : i1 to i32
    %c0_i32_0 = arith.constant 0 : i32
    %2 = arith.cmpi ne, %1, %c0_i32_0 : i32
    scf.if %2 {
      %cst_9 = arith.constant 0.000000e+00 : f32
      %12 = vector.broadcast %cst_9 : f32 to vector<2x512xf32>
      %c0_10 = arith.constant 0 : index
      %c0_11 = arith.constant 0 : index
      %13 = vector.load %arg7[%c0_10, %c0_11] : memref<2x512xf32, #tpu.memory_space<vmem>>, vector<2x512xf32>
      tpu.vector_store %arg7[%c0_10, %c0_11], %12 {strides = array<i32>} : memref<2x512xf32, #tpu.memory_space<vmem>>, vector<2x512xf32>,
    } else {
    }
    %c0 = arith.constant 0 : index
    %c0_1 = arith.constant 0 : index
    %3 = vector.load %arg7[%c0, %c0_1] : memref<2x512xf32, #tpu.memory_space<vmem>>, vector<2x512xf32>
    %c0_2 = arith.constant 0 : index
    %c0_3 = arith.constant 0 : index
    %4 = vector.load %arg2[%c0_2, %c0_3] : memref<2x1664xbf16, #tpu.memory_space<vmem>>, vector<2x1664xbf16>
    %c0_4 = arith.constant 0 : index
    %c0_5 = arith.constant 0 : index
    %5 = vector.load %arg3[%c0_4, %c0_5] : memref<1664x512xbf16, #tpu.memory_space<vmem>>, vector<1664x512xbf16>
    %cst = arith.constant dense<0.000000e+00> : vector<2x512xf32>
    %6 = tpu.matmul %4, %5, %cst {dimension_numbers = #tpu.dot_dimension_numbers<[1], [0], [0], [1], [0, 0, 1, 1], [], []>} : vector<2x1664xbf16>, vector<1664x512xbf16>, vector<2x512xf32> -> vector<2x512xf32>
    %7 = arith.addf %3, %6 : vector<2x512xf32>
    %c0_6 = arith.constant 0 : index
    %c0_7 = arith.constant 0 : index
    %8 = vector.load %arg7[%c0_6, %c0_7] : memref<2x512xf32, #tpu.memory_space<vmem>>, vector<2x512xf32>
    tpu.vector_store %arg7[%c0_6, %c0_7], %7 {strides = array<i32>} : memref<2x512xf32, #tpu.memory_space<vmem>>, vector<2x512xf32>,
    %c4_i32 = arith.constant 4 : i32
    %9 = arith.cmpi eq, %arg1, %c4_i32 : i32
    %10 = arith.extui %9 : i1 to i32
    %c0_i32_8 = arith.constant 0 : i32
    %11 = arith.cmpi ne, %10, %c0_i32_8 : i32
    scf.if %11 {
      %c0_9 = arith.constant 0 : index
      %c0_10 = arith.constant 0 : index
      %12 = vector.load %arg7[%c0_9, %c0_10] : memref<2x512xf32, #tpu.memory_space<vmem>>, vector<2x512xf32>
      %c0_11 = arith.constant 0 : index
      %c0_12 = arith.constant 0 : index
      %13 = vector.load %arg4[%c0_11, %c0_12] : memref<1x512xf32, #tpu.memory_space<vmem>>, vector<1x512xf32>
      %14 = vector.broadcast %13 : vector<1x512xf32> to vector<2x512xf32>
      %15 = arith.addf %12, %14 : vector<2x512xf32>
      %cst_13 = arith.constant 0.000000e+00 : f32
      %16 = vector.broadcast %cst_13 : f32 to vector<2x512xf32>
      %17 = arith.maximumf %15, %16 : vector<2x512xf32>
      %18 = arith.truncf %17 : vector<2x512xf32> to vector<2x512xbf16>
      %c0_14 = arith.constant 0 : index
      %c0_15 = arith.constant 0 : index
      %19 = vector.load %arg5[%c0_14, %c0_15] : memref<512x128xbf16, #tpu.memory_space<vmem>>, vector<512x128xbf16>
      %cst_16 = arith.constant dense<0.000000e+00> : vector<2x128xf32>
      %20 = tpu.matmul %18, %19, %cst_16 {dimension_numbers = #tpu.dot_dimension_numbers<[1], [0], [0], [1], [0, 0, 1, 1], [], []>} : vector<2x512xbf16>, vector<512x128xbf16>, vector<2x128xf32> -> vector<2x128xf32>
      %21 = vector.shape_cast %20 : vector<2x128xf32> to vector<1x2x128xf32>
      %c0_17 = arith.constant 0 : index
      %c0_18 = arith.constant 0 : index
      %c0_19 = arith.constant 0 : index
      %22 = vector.load %arg6[%c0_17, %c0_18, %c0_19] : memref<1x2x128xf32, #tpu.memory_space<vmem>>, vector<1x2x128xf32>
      tpu.vector_store %arg6[%c0_17, %c0_18, %c0_19], %21 {strides = array<i32>} : memref<1x2x128xf32, #tpu.memory_space<vmem>>, vector<1x2x128xf32>,
    } else {
    }
    return
  }
  func.func @transform_0(%arg0: i32, %arg1: i32) -> (i32, i32) {
    %c0_i32 = arith.constant 0 : i32
    %c0_i32_0 = arith.constant 0 : i32
    return %c0_i32, %arg1 : i32, i32
  }
  func.func @transform_1(%arg0: i32, %arg1: i32) -> (i32, i32) {
    %c0_i32 = arith.constant 0 : i32
    return %arg1, %arg0 : i32, i32
  }
  func.func @transform_2(%arg0: i32, %arg1: i32) -> (i32, i32) {
    %c0_i32 = arith.constant 0 : i32
    %c0_i32_0 = arith.constant 0 : i32
    return %c0_i32, %arg0 : i32, i32
  }
  func.func @transform_3(%arg0: i32, %arg1: i32) -> (i32, i32) {
    %c0_i32 = arith.constant 0 : i32
    %c0_i32_0 = arith.constant 0 : i32
    return %arg0, %c0_i32 : i32, i32
  }
  func.func @transform_4(%arg0: i32, %arg1: i32) -> (i32, i32, i32) {
    %c0_i32 = arith.constant 0 : i32
    %c0_i32_0 = arith.constant 0 : i32
    %c0_i32_1 = arith.constant 0 : i32
    return %arg0, %c0_i32, %c0_i32_0 : i32, i32, i32
  }
}

</mosaic_0001>

<bundles_post_ra>
// kernel: actor_critic_forward.4
= control target key start
LH: loop header
LB: loop body
LE: loop exit
PB: predicated region body
PF: predicated region fallthrough
CT: control target
= control target key end

     0   :  { %v1366_v42 = vmov 0   ;;  %vm1173_vm0 = vcmask 1043456   ;;  %vm1174_vm1 = vcmask 441348   ;;  %s1920_s1 = inlined_call_operand.vmem [shape: bf16[256,950], index: 1, kind: input, shape index: {}]   ;;  %s1921_s0 = inlined_call_operand.vmem [shape: bf16[32,256], index: 0, kind: input, shape index: {}]   ;;  %s1922_s2 = inlined_call_operand.vmem [shape: f32[32,1], index: 2, kind: input, shape index: {}]   ;;  %s1923_s3 = inlined_call_operand.vmem [shape: bf16[32,950], index: 3, kind: output, shape index: {}]  }
   0x1   :  { %v18_v0 = vld [vmem:[%s1920_s1] sm:$0xff]  ;;  %v19_v2 = vld [vmem:[%s1920_s1 + $0x8] sm:$0xff]  ;;  %1358 = vset.pattern.permute.xlu0 %v1366_v42  ;;  %1359 = vset.pattern.permute.xlu1 %v1366_v42  ;;  %vm1876_vm2 = vmor %vm1174_vm1, %vm1173_vm0 }
   0x2   :  { %v22_v1 = vld [vmem:[%s1920_s1 + $0x20] sm:$0xff]  ;;  %v23_v4 = vld [vmem:[%s1920_s1 + $0x28] sm:$0xff] }
   0x3   :  { %v1198_v3 = vcombine.high %v18_v0, %v22_v1  ;;  %v1197_v5 = vcombine.low %v18_v0, %v22_v1  ;;  %v26_v6 = vld [vmem:[%s1920_s1 + $0x40] sm:$0xff]  ;;  %v1200_v8 = vcombine.high %v19_v2, %v23_v4  ;;  %v1199_v9 = vcombine.low %v19_v2, %v23_v4  ;;  %v27_v11 = vld [vmem:[%s1920_s1 + $0x48] sm:$0xff] }
   0x4   :  { %v30_v7 = vld [vmem:[%s1920_s1 + $0x60] sm:$0xff]  ;;  %v31_v12 = vld [vmem:[%s1920_s1 + $0x68] sm:$0xff] }
   0x5   :  { %v1206_v10 = vcombine.high %v26_v6, %v30_v7  ;;  %v34_v13 = vld [vmem:[%s1920_s1 + $0x80] sm:$0xff]  ;;  %830 = vmatprep.subr.bf16.mxu0 %v1198_v3  ;;  %v1208_v14 = vcombine.high %v27_v11, %v31_v12  ;;  %v35_v16 = vld [vmem:[%s1920_s1 + $0x88] sm:$0xff]  ;;  %883 = vmatprep.subr.bf16.mxu1 %v1200_v8  ;;  %v1205_v18 = vcombine.low %v26_v6, %v30_v7 }
   0x6   :  { %v38_v15 = vld [vmem:[%s1920_s1 + $0xa0] sm:$0xff]  ;;  %v39_v17 = vld [vmem:[%s1920_s1 + $0xa8] sm:$0xff]  ;;  %831 = vmatpush1.bf16.msra.mxu0 %v1197_v5  ;;  %884 = vmatpush1.bf16.msra.mxu1 %v1199_v9  ;;  %v1207_v19 = vcombine.low %v27_v11, %v31_v12 }
   0x7   :  { %832 = vmatprep.subr.bf16.mxu0 %v1206_v10  ;;  %v1214_v20 = vcombine.high %v34_v13, %v38_v15  ;;  %885 = vmatprep.subr.bf16.mxu1 %v1208_v14  ;;  %v1216_v21 = vcombine.high %v35_v16, %v39_v17  ;;  %v42_v22 = vld [vmem:[%s1920_s1 + $0xc0] sm:$0xff]  ;;  %v43_v24 = vld [vmem:[%s1920_s1 + $0xc8] sm:$0xff]  ;;  %v1213_v26 = vcombine.low %v34_v13, %v38_v15 }
   0x8   :  { %v46_v23 = vld [vmem:[%s1920_s1 + $0xe0] sm:$0xff]  ;;  %v47_v25 = vld [vmem:[%s1920_s1 + $0xe8] sm:$0xff]  ;;  %v1215_v27 = vcombine.low %v35_v16, %v39_v17 }
   0x9   :  { %v1222_v28 = vcombine.high %v42_v22, %v46_v23  ;;  %v1224_v29 = vcombine.high %v43_v24, %v47_v25  ;;  %v50_v30 = vld [vmem:[%s1920_s1 + $0x100] sm:$0xff]  ;;  %v51_v32 = vld [vmem:[%s1920_s1 + $0x108] sm:$0xff]  ;;  %v1221_v34 = vcombine.low %v42_v22, %v46_v23  ;;  %v1223_v35 = vcombine.low %v43_v24, %v47_v25 }
   0xa   :  { %833 = vmatpush1.bf16.msra.mxu0 %v1205_v18  ;;  %886 = vmatpush1.bf16.msra.mxu1 %v1207_v19  ;;  %v54_v31 = vld [vmem:[%s1920_s1 + $0x120] sm:$0xff]  ;;  %v55_v33 = vld [vmem:[%s1920_s1 + $0x128] sm:$0xff] }
   0xb   :  { %834 = vmatprep.subr.bf16.mxu0 %v1214_v20  ;;  %887 = vmatprep.subr.bf16.mxu1 %v1216_v21  ;;  %v1230_v36 = vcombine.high %v50_v30, %v54_v31  ;;  %v1232_v37 = vcombine.high %v51_v32, %v55_v33  ;;  %v58_v38 = vld [vmem:[%s1920_s1 + $0x140] sm:$0xff]  ;;  %v59_v40 = vld [vmem:[%s1920_s1 + $0x148] sm:$0xff]  ;;  %v1229_v43 = vcombine.low %v50_v30, %v54_v31 }
   0xc   :  { %v62_v39 = vld [vmem:[%s1920_s1 + $0x160] sm:$0xff]  ;;  %v63_v41 = vld [vmem:[%s1920_s1 + $0x168] sm:$0xff]  ;;  %v1231_v44 = vcombine.low %v51_v32, %v55_v33 }
   0xd   :  { %v1238_v45 = vcombine.high %v58_v38, %v62_v39  ;;  %v1240_v46 = vcombine.high %v59_v40, %v63_v41  ;;  %v66_v47 = vld [vmem:[%s1920_s1 + $0x180] sm:$0xff]  ;;  %v67_v49 = vld [vmem:[%s1920_s1 + $0x188] sm:$0xff]  ;;  %v1237_v51 = vcombine.low %v58_v38, %v62_v39  ;;  %v1239_v52 = vcombine.low %v59_v40, %v63_v41 }
   0xe   :  { %835 = vmatpush1.bf16.msra.mxu0 %v1213_v26  ;;  %888 = vmatpush1.bf16.msra.mxu1 %v1215_v27  ;;  %v70_v48 = vld [vmem:[%s1920_s1 + $0x1a0] sm:$0xff]  ;;  %v71_v50 = vld [vmem:[%s1920_s1 + $0x1a8] sm:$0xff] }
   0xf   :  { %836 = vmatprep.subr.bf16.mxu0 %v1222_v28  ;;  %889 = vmatprep.subr.bf16.mxu1 %v1224_v29  ;;  %v1246_v53 = vcombine.high %v66_v47, %v70_v48  ;;  %v1248_v54 = vcombine.high %v67_v49, %v71_v50  ;;  %v74_v55 = vld [vmem:[%s1920_s1 + $0x1c0] sm:$0xff]  ;;  %v75_v58 = vld [vmem:[%s1920_s1 + $0x1c8] sm:$0xff]  ;;  %v1245_v60 = vcombine.low %v66_v47, %v70_v48  ;;  %v149_v48 = vld [vmem:[%s1922_s2 + $0x18] sm:$0xff] }
  0x10   :  { %v78_v56 = vld [vmem:[%s1920_s1 + $0x1e0] sm:$0xff]  ;;  %v79_v59 = vld [vmem:[%s1920_s1 + $0x1e8] sm:$0xff]  ;;  %v1247_v61 = vcombine.low %v67_v49, %v71_v50 }
  0x11   :  { %v1480_v57 = vld [vmem:[%s1921_s0 + $0x4] ss:$8 sps:$4 sm:$0xff]   ;;  %v1254_v62 = vcombine.high %v74_v55, %v78_v56  ;;  %v1256_v63 = vcombine.high %v75_v58, %v79_v59  ;;  %v1253_v4 = vcombine.low %v74_v55, %v78_v56  ;;  %v1255_v5 = vcombine.low %v75_v58, %v79_v59 }
  0x12   :  { %837 = vmatpush1.bf16.msra.mxu0 %v1221_v34  ;;  %890 = vmatpush1.bf16.msra.mxu1 %v1223_v35  ;;  %v82_v0 = vld [vmem:[%s1920_s1 + $0x200] sm:$0xff]  ;;  %v83_v2 = vld [vmem:[%s1920_s1 + $0x208] sm:$0xff] }
  0x13   :  { %838 = vmatprep.subr.bf16.mxu0 %v1230_v36  ;;  %891 = vmatprep.subr.bf16.mxu1 %v1232_v37  ;;  %v86_v1 = vld [vmem:[%s1920_s1 + $0x220] sm:$0xff]  ;;  %v87_v3 = vld [vmem:[%s1920_s1 + $0x228] sm:$0xff] }
  0x14   :  { %862 = vmatprep.mubr.bf16.mxu0 %v1480_v57  ;;  %915 = vmatprep.mubr.bf16.mxu1 %v1480_v57  ;;  %v1262_v6 = vcombine.high %v82_v0, %v86_v1  ;;  %v1264_v7 = vcombine.high %v83_v2, %v87_v3  ;;  %v90_v8 = vld [vmem:[%s1920_s1 + $0x240] sm:$0xff]  ;;  %v91_v10 = vld [vmem:[%s1920_s1 + $0x248] sm:$0xff]  ;;  %v1261_v12 = vcombine.low %v82_v0, %v86_v1 }
  0x15   :  { %v94_v9 = vld [vmem:[%s1920_s1 + $0x260] sm:$0xff]  ;;  %v95_v11 = vld [vmem:[%s1920_s1 + $0x268] sm:$0xff]  ;;  %v1263_v13 = vcombine.low %v83_v2, %v87_v3 }
  0x16   :  { %839 = vmatpush1.bf16.msra.mxu0 %v1229_v43  ;;  %892 = vmatpush1.bf16.msra.mxu1 %v1231_v44  ;;  %v1270_v14 = vcombine.high %v90_v8, %v94_v9  ;;  %v1272_v15 = vcombine.high %v91_v10, %v95_v11  ;;  %v98_v16 = vld [vmem:[%s1920_s1 + $0x280] sm:$0xff]  ;;  %v99_v18 = vld [vmem:[%s1920_s1 + $0x288] sm:$0xff]  ;;  %v1269_v20 = vcombine.low %v90_v8, %v94_v9  ;;  %v148_v43 = vld [vmem:[%s1922_s2 + $0x10] sm:$0xff] }
  0x17   :  { %840 = vmatprep.subr.bf16.mxu0 %v1238_v45  ;;  %893 = vmatprep.subr.bf16.mxu1 %v1240_v46  ;;  %v102_v17 = vld [vmem:[%s1920_s1 + $0x2a0] sm:$0xff]  ;;  %v103_v19 = vld [vmem:[%s1920_s1 + $0x2a8] sm:$0xff]  ;;  %v1271_v21 = vcombine.low %v91_v10, %v95_v11  ;;  %v25_v8 = vld [vmem:[%s1920_s1 + $0x38] sm:$0xff] }
  0x18   :  { %v1278_v22 = vcombine.high %v98_v16, %v102_v17  ;;  %v1280_v23 = vcombine.high %v99_v18, %v103_v19  ;;  %v106_v24 = vld [vmem:[%s1920_s1 + $0x2c0] sm:$0xff]  ;;  %v107_v26 = vld [vmem:[%s1920_s1 + $0x2c8] sm:$0xff]  ;;  %v1277_v28 = vcombine.low %v98_v16, %v102_v17  ;;  %v1279_v29 = vcombine.low %v99_v18, %v103_v19  ;;  %162 = vperm.xlu1 %1359, %v148_v43   ;;  %v29_v16 = vld [vmem:[%s1920_s1 + $0x58] sm:$0xff] }
  0x19   :  { %v110_v25 = vld [vmem:[%s1920_s1 + $0x2e0] sm:$0xff]  ;;  %v111_v27 = vld [vmem:[%s1920_s1 + $0x2e8] sm:$0xff]  ;;  %v33_v17 = vld [vmem:[%s1920_s1 + $0x78] sm:$0xff] }
  0x1a   :  { %841 = vmatpush1.bf16.msra.mxu0 %v1237_v51  ;;  %894 = vmatpush1.bf16.msra.mxu1 %v1239_v52  ;;  %v1286_v30 = vcombine.high %v106_v24, %v110_v25  ;;  %v1288_v31 = vcombine.high %v107_v26, %v111_v27  ;;  %v114_v32 = vld [vmem:[%s1920_s1 + $0x300] sm:$0xff]  ;;  %v115_v34 = vld [vmem:[%s1920_s1 + $0x308] sm:$0xff]  ;;  %v1285_v36 = vcombine.low %v106_v24, %v110_v25  ;;  %v1636_v24 = vld [vmem:[%s1921_s0 + $0x14] ss:$8 sps:$4 sm:$0xff]  }
  0x1b   :  { %842 = vmatprep.subr.bf16.mxu0 %v1246_v53  ;;  %895 = vmatprep.subr.bf16.mxu1 %v1248_v54  ;;  %v118_v33 = vld [vmem:[%s1920_s1 + $0x320] sm:$0xff]  ;;  %v119_v35 = vld [vmem:[%s1920_s1 + $0x328] sm:$0xff]  ;;  %v1287_v37 = vcombine.low %v107_v26, %v111_v27  ;;  %v37_v25 = vld [vmem:[%s1920_s1 + $0x98] sm:$0xff] }
  0x1c   :  { %v1294_v38 = vcombine.high %v114_v32, %v118_v33  ;;  %v146_v39 = vld [vmem:[%s1922_s2] sm:$0xff]  ;;  %v1296_v40 = vcombine.high %v115_v34, %v119_v35  ;;  %v123_v44 = vld [vmem:[%s1920_s1 + $0x348] sm:$0xff]  ;;  %v1293_v47 = vcombine.low %v114_v32, %v118_v33  ;;  %v1295_v49 = vcombine.low %v115_v34, %v119_v35  ;;  %167 = vperm.xlu1 %1359, %v149_v48   ;;  %v41_v26 = vld [vmem:[%s1920_s1 + $0xb8] sm:$0xff] }
  0x1d   :  { %v122_v41 = vld [vmem:[%s1920_s1 + $0x340] sm:$0xff]  ;;  %152 = vperm.xlu0 %1358, %v146_v39   ;;  %v127_v45 = vld [vmem:[%s1920_s1 + $0x368] sm:$0xff]  ;;  %v48_v32 = vld [vmem:[%s1920_s1 + $0xf0] sm:$0xff] }
  0x1e   :  { %843 = vmatpush1.bf16.msra.mxu0 %v1245_v60  ;;  %896 = vmatpush1.bf16.msra.mxu1 %v1247_v61  ;;  %v126_v42 = vld [vmem:[%s1920_s1 + $0x360] sm:$0xff]  ;;  %v147_v46 = vld [vmem:[%s1922_s2 + $0x8] sm:$0xff]  ;;  %v1304_v51 = vcombine.high %v123_v44, %v127_v45  ;;  %v1303_v58 = vcombine.low %v123_v44, %v127_v45  ;;  %v45_v33 = vld [vmem:[%s1920_s1 + $0xd8] sm:$0xff] }
  0x1f   :  { %844 = vmatprep.subr.bf16.mxu0 %v1254_v62  ;;  %897 = vmatprep.subr.bf16.mxu1 %v1256_v63  ;;  %v1302_v50 = vcombine.high %v122_v41, %v126_v42  ;;  %v130_v52 = vld [vmem:[%s1920_s1 + $0x380] sm:$0xff]  ;;  %v131_v54 = vld [vmem:[%s1920_s1 + $0x388] sm:$0xff]  ;;  %v1301_v56 = vcombine.low %v122_v41, %v126_v42  ;;  %v49_v34 = vld [vmem:[%s1920_s1 + $0xf8] sm:$0xff] }
  0x20   :  { %v134_v53 = vld [vmem:[%s1920_s1 + $0x3a0] sm:$0xff]  ;;  %v135_v55 = vld [vmem:[%s1920_s1 + $0x3a8] sm:$0xff]  ;;  %v1663_v35 = vld [vmem:[%s1921_s0 + $0x10] ss:$8 sps:$4 sm:$0xff]   ;;  %v1228_v39 = vcombine.high %v45_v33, %v49_v34  ;;  %v1227_v45 = vcombine.low %v45_v33, %v49_v34 }
  0x21   :  { %157 = vperm.xlu0 %1358, %v147_v46   ;;  %v1310_v59 = vcombine.high %v130_v52, %v134_v53  ;;  %v1312_v60 = vcombine.high %v131_v54, %v135_v55  ;;  %v138_v61 = vld [vmem:[%s1920_s1 + $0x3c0] sm:$0xff]  ;;  %v139_v63 = vld [vmem:[%s1920_s1 + $0x3c8] sm:$0xff]  ;;  %v1309_v1 = vcombine.low %v130_v52, %v134_v53  ;;  %v1311_v2 = vcombine.low %v131_v54, %v135_v55  ;;  %v56_v41 = vld [vmem:[%s1920_s1 + $0x130] sm:$0xff] }
  0x22   :  { %845 = vmatpush1.bf16.msra.mxu0 %v1253_v4  ;;  %898 = vmatpush1.bf16.msra.mxu1 %v1255_v5  ;;  %v142_v62 = vld [vmem:[%s1920_s1 + $0x3e0] sm:$0xff]  ;;  %v143_v0 = vld [vmem:[%s1920_s1 + $0x3e8] sm:$0xff]  ;;  %v20_v5 = vld [vmem:[%s1920_s1 + $0x10] sm:$0xff] }
  0x23   :  { %846 = vmatprep.subr.bf16.mxu0 %v1262_v6  ;;  %899 = vmatprep.subr.bf16.mxu1 %v1264_v7  ;;  %v1318_v3 = vcombine.high %v138_v61, %v142_v62  ;;  %v1320_v4 = vcombine.high %v139_v63, %v143_v0  ;;  %v24_v6 = vld [vmem:[%s1920_s1 + $0x30] sm:$0xff]  ;;  %v21_v7 = vld [vmem:[%s1920_s1 + $0x18] sm:$0xff]  ;;  %v1317_v9 = vcombine.low %v138_v61, %v142_v62 }
  0x24   :  { %v1319_v10 = vcombine.low %v139_v63, %v143_v0  ;;  %v1202_v11 = vcombine.high %v20_v5, %v24_v6  ;;  %v1201_v18 = vcombine.low %v20_v5, %v24_v6  ;;  %v1203_v19 = vcombine.low %v21_v7, %v25_v8  ;;  %v53_v42 = vld [vmem:[%s1920_s1 + $0x118] sm:$0xff]  ;;  %v60_v48 = vld [vmem:[%s1920_s1 + $0x150] sm:$0xff] }
  0x25   :  { %v57_v43 = vld [vmem:[%s1920_s1 + $0x138] sm:$0xff]  ;;  %v76_v0 = vld [vmem:[%s1920_s1 + $0x1d0] sm:$0xff] }
  0x26   :  { %847 = vmatpush1.bf16.msra.mxu0 %v1261_v12  ;;  %900 = vmatpush1.bf16.msra.mxu1 %v1263_v13  ;;  %v1204_v12 = vcombine.high %v21_v7, %v25_v8  ;;  %v28_v13 = vld [vmem:[%s1920_s1 + $0x50] sm:$0xff]  ;;  %v1235_v53 = vcombine.low %v53_v42, %v57_v43 }
  0x27   :  { %848 = vmatprep.subr.bf16.mxu0 %v1270_v14  ;;  %901 = vmatprep.subr.bf16.mxu1 %v1272_v15  ;;  %v32_v14 = vld [vmem:[%s1920_s1 + $0x70] sm:$0xff]  ;;  %v1619_v15 = vld [vmem:[%s1921_s0] ss:$8 sps:$4 sm:$0xff]  }
  0x28   :  { %v1209_v27 = vcombine.low %v28_v13, %v32_v14  ;;  %v84_v8 = vld [vmem:[%s1920_s1 + $0x210] sm:$0xff] }
  0x29   :  { %v108_v34 = vld [vmem:[%s1920_s1 + $0x2d0] sm:$0xff] }
  0x2a   :  { %849 = vmatpush1.bf16.msra.mxu0 %v1269_v20  ;;  %902 = vmatpush1.bf16.msra.mxu1 %v1271_v21  ;;  %v1210_v20 = vcombine.high %v28_v13, %v32_v14  ;;  %v1212_v21 = vcombine.high %v29_v16, %v33_v17 }
  0x2b   :  { %850 = vmatprep.subr.bf16.mxu0 %v1278_v22  ;;  %903 = vmatprep.subr.bf16.mxu1 %v1280_v23  ;;  %v36_v22 = vld [vmem:[%s1920_s1 + $0x90] sm:$0xff] }
  0x2c   :  { %v40_v23 = vld [vmem:[%s1920_s1 + $0xb0] sm:$0xff] }
  0x2e   :  { %851 = vmatpush1.bf16.msra.mxu0 %v1277_v28  ;;  %904 = vmatpush1.bf16.msra.mxu1 %v1279_v29  ;;  %v1211_v28 = vcombine.low %v29_v16, %v33_v17  ;;  %v1218_v29 = vcombine.high %v36_v22, %v40_v23  ;;  %v92_v17 = vld [vmem:[%s1920_s1 + $0x250] sm:$0xff] }
  0x2f   :  { %852 = vmatprep.subr.bf16.mxu0 %v1286_v30  ;;  %905 = vmatprep.subr.bf16.mxu1 %v1288_v31  ;;  %v1220_v30 = vcombine.high %v37_v25, %v41_v26  ;;  %v44_v31 = vld [vmem:[%s1920_s1 + $0xd0] sm:$0xff] }
  0x30   :  { %v1225_v44 = vcombine.low %v44_v31, %v48_v32 }
  0x32   :  { %853 = vmatpush1.bf16.msra.mxu0 %v1285_v36  ;;  %906 = vmatpush1.bf16.msra.mxu1 %v1287_v37  ;;  %v1217_v36 = vcombine.low %v36_v22, %v40_v23  ;;  %v1219_v37 = vcombine.low %v37_v25, %v41_v26  ;;  %v100_v26 = vld [vmem:[%s1920_s1 + $0x290] sm:$0xff] }
  0x33   :  { %854 = vmatprep.subr.bf16.mxu0 %v1294_v38  ;;  %907 = vmatprep.subr.bf16.mxu1 %v1296_v40  ;;  %v1226_v38 = vcombine.high %v44_v31, %v48_v32  ;;  %v52_v40 = vld [vmem:[%s1920_s1 + $0x110] sm:$0xff] }
  0x34   :  { %v1234_v46 = vcombine.high %v52_v40, %v56_v41  ;;  %v1233_v52 = vcombine.low %v52_v40, %v56_v41 }
  0x36   :  { %855 = vmatpush1.bf16.msra.mxu0 %v1293_v47  ;;  %908 = vmatpush1.bf16.msra.mxu1 %v1295_v49  ;;  %v1236_v47 = vcombine.high %v53_v42, %v57_v43  ;;  %v64_v49 = vld [vmem:[%s1920_s1 + $0x170] sm:$0xff] }
  0x37   :  { %856 = vmatprep.subr.bf16.mxu0 %v1302_v50  ;;  %909 = vmatprep.subr.bf16.mxu1 %v1304_v51  ;;  %v61_v50 = vld [vmem:[%s1920_s1 + $0x158] sm:$0xff]  ;;  %v1242_v54 = vcombine.high %v60_v48, %v64_v49  ;;  %v116_v43 = vld [vmem:[%s1920_s1 + $0x310] sm:$0xff] }
  0x38   :  { %v65_v51 = vld [vmem:[%s1920_s1 + $0x178] sm:$0xff] }
  0x39   :  { %v1244_v55 = vcombine.high %v61_v50, %v65_v51  ;;  %v1243_v61 = vcombine.low %v61_v50, %v65_v51  ;;  %v124_v51 = vld [vmem:[%s1920_s1 + $0x350] sm:$0xff] }
  0x3a   :  { %857 = vmatpush1.bf16.msra.mxu0 %v1301_v56  ;;  %910 = vmatpush1.bf16.msra.mxu1 %v1303_v58  ;;  %v68_v56 = vld [vmem:[%s1920_s1 + $0x190] sm:$0xff] }
  0x3b   :  { %858 = vmatprep.subr.bf16.mxu0 %v1310_v59  ;;  %911 = vmatprep.subr.bf16.mxu1 %v1312_v60  ;;  %v72_v58 = vld [vmem:[%s1920_s1 + $0x1b0] sm:$0xff]  ;;  %v73_v59 = vld [vmem:[%s1920_s1 + $0x1b8] sm:$0xff]  ;;  %v1241_v60 = vcombine.low %v60_v48, %v64_v49 }
  0x3c   :  { %v1250_v62 = vcombine.high %v68_v56, %v72_v58 }
  0x3e   :  { %859 = vmatpush1.bf16.msra.mxu0 %v1309_v1  ;;  %912 = vmatpush1.bf16.msra.mxu1 %v1311_v2  ;;  %v80_v1 = vld [vmem:[%s1920_s1 + $0x1f0] sm:$0xff]  ;;  %v77_v2 = vld [vmem:[%s1920_s1 + $0x1d8] sm:$0xff] }
  0x3f   :  { %860 = vmatprep.subr.bf16.mxu0 %v1318_v3  ;;  %913 = vmatprep.subr.bf16.mxu1 %v1320_v4  ;;  %v81_v3 = vld [vmem:[%s1920_s1 + $0x1f8] sm:$0xff]  ;;  %v1249_v4 = vcombine.low %v68_v56, %v72_v58  ;;  %v1258_v6 = vcombine.high %v76_v0, %v80_v1 }
  0x40   :  { %v1260_v7 = vcombine.high %v77_v2, %v81_v3  ;;  %v1259_v13 = vcombine.low %v77_v2, %v81_v3  ;;  %v140_v3 = vld [vmem:[%s1920_s1 + $0x3d0] sm:$0xff] }
  0x42   :  { %861 = vmatpush1.bf16.msra.mxu0 %v1317_v9  ;;  %914 = vmatpush1.bf16.msra.mxu1 %v1319_v10  ;;  %v88_v9 = vld [vmem:[%s1920_s1 + $0x230] sm:$0xff]  ;;  %v85_v10 = vld [vmem:[%s1920_s1 + $0x218] sm:$0xff] }
  0x43   :  { %936 = vmatprep.subr.bf16.mxu0 %v1202_v11  ;;  %989 = vmatprep.subr.bf16.mxu1 %v1204_v12  ;;  %v89_v11 = vld [vmem:[%s1920_s1 + $0x238] sm:$0xff]  ;;  %v1257_v12 = vcombine.low %v76_v0, %v80_v1  ;;  %v1266_v14 = vcombine.high %v84_v8, %v88_v9 }
  0x44   :  { %v1268_v16 = vcombine.high %v85_v10, %v89_v11  ;;  %v1267_v22 = vcombine.low %v85_v10, %v89_v11 }
  0x45   :  { %863 = vmatmul.mubr.bf16.vlgmr.msra.gmra.mrb[0].mxu0 %v1619_v15  ;;  %916 = vmatmul.mubr.bf16.vlgmr.msra.gmra.mrb[0].mxu1 %v1619_v15 }
  0x46   :  { %937 = vmatpush1.bf16.msra.mxu0 %v1201_v18  ;;  %990 = vmatpush1.bf16.msra.mxu1 %v1203_v19  ;;  %v96_v18 = vld [vmem:[%s1920_s1 + $0x270] sm:$0xff]  ;;  %v93_v19 = vld [vmem:[%s1920_s1 + $0x258] sm:$0xff] }
  0x47   :  { %938 = vmatprep.subr.bf16.mxu0 %v1210_v20  ;;  %991 = vmatprep.subr.bf16.mxu1 %v1212_v21  ;;  %v97_v20 = vld [vmem:[%s1920_s1 + $0x278] sm:$0xff]  ;;  %v1265_v21 = vcombine.low %v84_v8, %v88_v9  ;;  %v1274_v23 = vcombine.high %v92_v17, %v96_v18 }
  0x48   :  { %872 = vmatprep.mubr.bf16.mxu0 %v1636_v24  ;;  %925 = vmatprep.mubr.bf16.mxu1 %v1636_v24  ;;  %v1276_v25 = vcombine.high %v93_v19, %v97_v20  ;;  %v1275_v31 = vcombine.low %v93_v19, %v97_v20 }
  0x4a   :  { %939 = vmatpush1.bf16.msra.mxu0 %v1209_v27  ;;  %992 = vmatpush1.bf16.msra.mxu1 %v1211_v28  ;;  %v104_v27 = vld [vmem:[%s1920_s1 + $0x2b0] sm:$0xff]  ;;  %v101_v28 = vld [vmem:[%s1920_s1 + $0x298] sm:$0xff] }
  0x4b   :  { %940 = vmatprep.subr.bf16.mxu0 %v1218_v29  ;;  %993 = vmatprep.subr.bf16.mxu1 %v1220_v30  ;;  %v105_v29 = vld [vmem:[%s1920_s1 + $0x2b8] sm:$0xff]  ;;  %v1273_v30 = vcombine.low %v92_v17, %v96_v18  ;;  %v1282_v32 = vcombine.high %v100_v26, %v104_v27 }
  0x4c   :  { %v1284_v33 = vcombine.high %v101_v28, %v105_v29  ;;  %v1283_v40 = vcombine.low %v101_v28, %v105_v29 }
  0x4d   :  { %873 = vmatmul.mubr.bf16.gmra.mrb[4].mxu0 %v1663_v35  ;;  %926 = vmatmul.mubr.bf16.gmra.mrb[4].mxu1 %v1663_v35 }
  0x4e   :  { %941 = vmatpush1.bf16.msra.mxu0 %v1217_v36  ;;  %994 = vmatpush1.bf16.msra.mxu1 %v1219_v37  ;;  %v112_v36 = vld [vmem:[%s1920_s1 + $0x2f0] sm:$0xff]  ;;  %v109_v37 = vld [vmem:[%s1920_s1 + $0x2d8] sm:$0xff] }
  0x4f   :  { %942 = vmatprep.subr.bf16.mxu0 %v1226_v38  ;;  %995 = vmatprep.subr.bf16.mxu1 %v1228_v39  ;;  %v113_v38 = vld [vmem:[%s1920_s1 + $0x2f8] sm:$0xff]  ;;  %v1281_v39 = vcombine.low %v100_v26, %v104_v27  ;;  %v1290_v41 = vcombine.high %v108_v34, %v112_v36 }
  0x50   :  { %968 = vmatprep.mubr.bf16.mxu0 %v1480_v57  ;;  %1021 = vmatprep.mubr.bf16.mxu1 %v1480_v57  ;;  %v69_v57 = vld [vmem:[%s1920_s1 + $0x198] sm:$0xff]  ;;  %v1292_v42 = vcombine.high %v109_v37, %v113_v38  ;;  %v1291_v48 = vcombine.low %v109_v37, %v113_v38 }
  0x51   :  { %v1252_v63 = vcombine.high %v69_v57, %v73_v59  ;;  %v1251_v5 = vcombine.low %v69_v57, %v73_v59  ;;  %v132_v59 = vld [vmem:[%s1920_s1 + $0x390] sm:$0xff] }
  0x52   :  { %943 = vmatpush1.bf16.msra.mxu0 %v1225_v44  ;;  %996 = vmatpush1.bf16.msra.mxu1 %v1227_v45  ;;  %v120_v44 = vld [vmem:[%s1920_s1 + $0x330] sm:$0xff]  ;;  %v117_v45 = vld [vmem:[%s1920_s1 + $0x318] sm:$0xff] }
  0x53   :  { %944 = vmatprep.subr.bf16.mxu0 %v1234_v46  ;;  %997 = vmatprep.subr.bf16.mxu1 %v1236_v47  ;;  %v121_v46 = vld [vmem:[%s1920_s1 + $0x338] sm:$0xff]  ;;  %v1289_v47 = vcombine.low %v108_v34, %v112_v36  ;;  %v1298_v49 = vcombine.high %v116_v43, %v120_v44 }
  0x54   :  { %v1300_v50 = vcombine.high %v117_v45, %v121_v46  ;;  %v1299_v56 = vcombine.low %v117_v45, %v121_v46 }
  0x56   :  { %945 = vmatpush1.bf16.msra.mxu0 %v1233_v52  ;;  %998 = vmatpush1.bf16.msra.mxu1 %v1235_v53  ;;  %v128_v52 = vld [vmem:[%s1920_s1 + $0x370] sm:$0xff]  ;;  %v125_v53 = vld [vmem:[%s1920_s1 + $0x358] sm:$0xff] }
  0x57   :  { %946 = vmatprep.subr.bf16.mxu0 %v1242_v54  ;;  %999 = vmatprep.subr.bf16.mxu1 %v1244_v55  ;;  %v129_v54 = vld [vmem:[%s1920_s1 + $0x378] sm:$0xff]  ;;  %v1297_v55 = vcombine.low %v116_v43, %v120_v44  ;;  %v1306_v58 = vcombine.high %v124_v51, %v128_v52 }
  0x58   :  { %v1308_v57 = vcombine.high %v125_v53, %v129_v54  ;;  %v1307_v0 = vcombine.low %v125_v53, %v129_v54 }
  0x5a   :  { %947 = vmatpush1.bf16.msra.mxu0 %v1241_v60  ;;  %1000 = vmatpush1.bf16.msra.mxu1 %v1243_v61  ;;  %v136_v60 = vld [vmem:[%s1920_s1 + $0x3b0] sm:$0xff]  ;;  %v133_v61 = vld [vmem:[%s1920_s1 + $0x398] sm:$0xff] }
  0x5b   :  { %948 = vmatprep.subr.bf16.mxu0 %v1250_v62  ;;  %1001 = vmatprep.subr.bf16.mxu1 %v1252_v63  ;;  %v137_v62 = vld [vmem:[%s1920_s1 + $0x3b8] sm:$0xff]  ;;  %v1305_v63 = vcombine.low %v124_v51, %v128_v52  ;;  %v1314_v1 = vcombine.high %v132_v59, %v136_v60 }
  0x5c   :  { %v1316_v2 = vcombine.high %v133_v61, %v137_v62  ;;  %v1315_v8 = vcombine.low %v133_v61, %v137_v62 }
  0x5e   :  { %949 = vmatpush1.bf16.msra.mxu0 %v1249_v4  ;;  %1002 = vmatpush1.bf16.msra.mxu1 %v1251_v5  ;;  %v144_v4 = vld [vmem:[%s1920_s1 + $0x3f0] sm:$0xff]  ;;  %v141_v5 = vld [vmem:[%s1920_s1 + $0x3d8] sm:$0xff] }
  0x5f   :  { %950 = vmatprep.subr.bf16.mxu0 %v1258_v6  ;;  %1003 = vmatprep.subr.bf16.mxu1 %v1260_v7  ;;  %v145_v6 = vld [vmem:[%s1920_s1 + $0x3f8] sm:$0xff]  ;;  %v1313_v7 = vcombine.low %v132_v59, %v136_v60  ;;  %v1322_v9 = vcombine.high %v140_v3, %v144_v4  ;;  %v1321_v11 = vcombine.low %v140_v3, %v144_v4 }
  0x60   :  { %v1324_v10 = vcombine.high %v141_v5, %v145_v6 }
  0x62   :  { %951 = vmatpush1.bf16.msra.mxu0 %v1257_v12  ;;  %1004 = vmatpush1.bf16.msra.mxu1 %v1259_v13  ;;  %v1323_v12 = vcombine.low %v141_v5, %v145_v6 }
  0x63   :  { %952 = vmatprep.subr.bf16.mxu0 %v1266_v14  ;;  %1005 = vmatprep.subr.bf16.mxu1 %v1268_v16 }
  0x66   :  { %953 = vmatpush1.bf16.msra.mxu0 %v1265_v21  ;;  %1006 = vmatpush1.bf16.msra.mxu1 %v1267_v22 }
  0x67   :  { %954 = vmatprep.subr.bf16.mxu0 %v1274_v23  ;;  %1007 = vmatprep.subr.bf16.mxu1 %v1276_v25 }
  0x6a   :  { %955 = vmatpush1.bf16.msra.mxu0 %v1273_v30  ;;  %1008 = vmatpush1.bf16.msra.mxu1 %v1275_v31 }
  0x6b   :  { %956 = vmatprep.subr.bf16.mxu0 %v1282_v32  ;;  %1009 = vmatprep.subr.bf16.mxu1 %v1284_v33 }
  0x6e   :  { %957 = vmatpush1.bf16.msra.mxu0 %v1281_v39  ;;  %1010 = vmatpush1.bf16.msra.mxu1 %v1283_v40 }
  0x6f   :  { %958 = vmatprep.subr.bf16.mxu0 %v1290_v41  ;;  %1011 = vmatprep.subr.bf16.mxu1 %v1292_v42 }
  0x72   :  { %959 = vmatpush1.bf16.msra.mxu0 %v1289_v47  ;;  %1012 = vmatpush1.bf16.msra.mxu1 %v1291_v48 }
  0x73   :  { %960 = vmatprep.subr.bf16.mxu0 %v1298_v49  ;;  %1013 = vmatprep.subr.bf16.mxu1 %v1300_v50 }
  0x76   :  { %961 = vmatpush1.bf16.msra.mxu0 %v1297_v55  ;;  %1014 = vmatpush1.bf16.msra.mxu1 %v1299_v56 }
  0x77   :  { %962 = vmatprep.subr.bf16.mxu0 %v1306_v58  ;;  %1015 = vmatprep.subr.bf16.mxu1 %v1308_v57 }
  0x7a   :  { %963 = vmatpush1.bf16.msra.mxu0 %v1305_v63  ;;  %1016 = vmatpush1.bf16.msra.mxu1 %v1307_v0 }
  0x7b   :  { %964 = vmatprep.subr.bf16.mxu0 %v1314_v1  ;;  %1017 = vmatprep.subr.bf16.mxu1 %v1316_v2 }
  0x7e   :  { %965 = vmatpush1.bf16.msra.mxu0 %v1313_v7  ;;  %1018 = vmatpush1.bf16.msra.mxu1 %v1315_v8 }
  0x7f   :  { %966 = vmatprep.subr.bf16.mxu0 %v1322_v9  ;;  %1019 = vmatprep.subr.bf16.mxu1 %v1324_v10 }
  0x82   :  { %967 = vmatpush1.bf16.msra.mxu0 %v1321_v11  ;;  %1020 = vmatpush1.bf16.msra.mxu1 %v1323_v12 }
  0x85   :  { %969 = vmatmul.mubr.bf16.vlgmr.msra.gmra.mrb[8].mxu0 %v1619_v15  ;;  %1022 = vmatmul.mubr.bf16.vlgmr.msra.gmra.mrb[8].mxu1 %v1619_v15 }
  0x86   :  { %978 = vmatprep.mubr.bf16.mxu0 %v1636_v24  ;;  %1031 = vmatprep.mubr.bf16.mxu1 %v1636_v24 }
  0x8d   :  { %979 = vmatmul.mubr.bf16.gmra.mrb[12].mxu0 %v1663_v35  ;;  %1032 = vmatmul.mubr.bf16.gmra.mrb[12].mxu1 %v1663_v35 }
  0x97   :  { %v1821_v14 = vpop.permute.xlu1 %162 }
  0x9b   :  { %v1836_v44 = vpop.permute.xlu1 %167 }
  0x9c   :  { %v1819_v13 = vpop.permute.xlu0 %152 }
  0xa0   :  { %v1823_v17 = vpop.permute.xlu0 %157 }
 0x118   :  { %v864_v16 = vpop.f32.mrb[0].mxu0  ;;  %v917_v19 = vpop.f32.mrb[0].mxu1 }
 0x119   :  { %v865_v18 = vadd.f32 %v864_v16, %v1819_v13  ;;  %v866_v20 = vpop.f32.mrb[1].mxu0  ;;  %v918_v15 = vadd.f32 %v917_v19, %v1819_v13  ;;  %v919_v24 = vpop.f32.mrb[1].mxu1 }
 0x11a   :  { %v867_v21 = vadd.f32 %v866_v20, %v1819_v13  ;;  %v868_v22 = vpop.f32.mrb[2].mxu0  ;;  %v920_v35 = vadd.f32 %v919_v24, %v1819_v13  ;;  %v921_v26 = vpop.f32.mrb[2].mxu1 }
 0x11b   :  { %v1042_v23 = vmax.f32 %v865_v18, 0.0  ;;  %v869_v25 = vadd.f32 %v868_v22, %v1823_v17  ;;  %v870_v27 = vpop.f32.mrb[3].mxu0  ;;  %v1044_v28 = vmax.f32 %v918_v15, 0.0  ;;  %v922_v30 = vadd.f32 %v921_v26, %v1823_v17  ;;  %v923_v32 = vpop.f32.mrb[3].mxu1 }
 0x11c   :  { %v1043_v29 = vmax.f32 %v867_v21, 0.0  ;;  %v871_v31 = vadd.f32 %v870_v27, %v1823_v17  ;;  %v1045_v33 = vmax.f32 %v920_v35, 0.0  ;;  %v924_v36 = vadd.f32 %v923_v32, %v1823_v17 }
 0x11d   :  { %v1050_v34 = vmax.f32 %v869_v25, 0.0  ;;  %v1052_v38 = vmax.f32 %v922_v30, 0.0 }
 0x11e   :  { %v1341_v37 = vpack.c.bf16 %v1043_v29, %v1042_v23  ;;  %v1051_v39 = vmax.f32 %v871_v31, 0.0  ;;  %v1342_v40 = vpack.c.bf16 %v1045_v33, %v1044_v28  ;;  %v1053_v41 = vmax.f32 %v924_v36, 0.0 }
 0x120   :  { %1170 = vst [vmem:[%s1923_s3] sm:$0xff] %v1341_v37  ;;  %v1345_v42 = vpack.c.bf16 %v1051_v39, %v1050_v34  ;;  %v874_v43 = vpop.f32.mrb[4].mxu0  ;;  %1171 = vst [vmem:[%s1923_s3 + $0x8] sm:$0xff] %v1342_v40  ;;  %v1346_v45 = vpack.c.bf16 %v1053_v41, %v1052_v38  ;;  %v927_v47 = vpop.f32.mrb[4].mxu1 }
 0x121   :  { %v875_v46 = vadd.f32 %v874_v43, %v1821_v14  ;;  %v876_v48 = vpop.f32.mrb[5].mxu0  ;;  %v928_v49 = vadd.f32 %v927_v47, %v1821_v14  ;;  %v929_v51 = vpop.f32.mrb[5].mxu1 }
 0x122   :  { %1177 = vst [vmem:[%s1923_s3 + $0x20] sm:$0xff] %v1345_v42  ;;  %v877_v50 = vadd.f32 %v876_v48, %v1821_v14  ;;  %v878_v52 = vpop.f32.mrb[6].mxu0  ;;  %1178 = vst [vmem:[%s1923_s3 + $0x28] sm:$0xff] %v1346_v45  ;;  %v930_v54 = vadd.f32 %v929_v51, %v1821_v14  ;;  %v931_v55 = vpop.f32.mrb[6].mxu1 }
 0x123   :  { %v1058_v53 = vmax.f32 %v875_v46, 0.0  ;;  %v879_v56 = vadd.f32 %v878_v52, %v1836_v44  ;;  %v880_v58 = vpop.f32.mrb[7].mxu0  ;;  %v1060_v57 = vmax.f32 %v928_v49, 0.0  ;;  %v932_v61 = vadd.f32 %v931_v55, %v1836_v44  ;;  %v933_v62 = vpop.f32.mrb[7].mxu1 }
 0x124   :  { %v1059_v59 = vmax.f32 %v877_v50, 0.0  ;;  %v881_v60 = vadd.f32 %v880_v58, %v1836_v44  ;;  %v1061_v63 = vmax.f32 %v930_v54, 0.0  ;;  %v934_v1 = vadd.f32 %v933_v62, %v1836_v44 }
 0x125   :  { %v1066_v0 = vmax.f32 %v879_v56, 0.0  ;;  %v1068_v4 = vmax.f32 %v932_v61, 0.0 }
 0x126   :  { %v1349_v2 = vpack.c.bf16 %v1059_v59, %v1058_v53  ;;  %v1067_v3 = vmax.f32 %v881_v60, 0.0  ;;  %v1350_v5 = vpack.c.bf16 %v1061_v63, %v1060_v57  ;;  %v1069_v6 = vmax.f32 %v934_v1, 0.0 }
 0x128   :  { %1181 = vst [vmem:[%s1923_s3 + $0x40] sm:$0xff] %v1349_v2  ;;  %v1353_v7 = vpack.c.bf16 %v1067_v3, %v1066_v0  ;;  %1182 = vst [vmem:[%s1923_s3 + $0x48] sm:$0xff] %v1350_v5  ;;  %v1354_v8 = vpack.c.bf16 %v1069_v6, %v1068_v4 }
 0x12a   :  { %1185 = vst [vmem:[%s1923_s3 + $0x60] sm:$0xff] %v1353_v7  ;;  %1186 = vst [vmem:[%s1923_s3 + $0x68] sm:$0xff] %v1354_v8 }
 0x158   :  { %v970_v9 = vpop.f32.mrb[8].mxu0  ;;  %v1023_v11 = vpop.f32.mrb[8].mxu1 }
 0x159   :  { %v971_v10 = vadd.f32 %v970_v9, %v1819_v13  ;;  %v972_v12 = vpop.f32.mrb[9].mxu0  ;;  %v1024_v16 = vadd.f32 %v1023_v11, %v1819_v13  ;;  %v1025_v19 = vpop.f32.mrb[9].mxu1 }
 0x15a   :  { %v973_v18 = vadd.f32 %v972_v12, %v1819_v13  ;;  %v974_v20 = vpop.f32.mrb[10].mxu0  ;;  %v1026_v21 = vadd.f32 %v1025_v19, %v1819_v13  ;;  %v1027_v22 = vpop.f32.mrb[10].mxu1 }
 0x15b   :  { %v1046_v15 = vmax.f32 %v971_v10, 0.0  ;;  %v975_v24 = vadd.f32 %v974_v20, %v1823_v17  ;;  %v976_v23 = vpop.f32.mrb[11].mxu0  ;;  %v1048_v35 = vmax.f32 %v1024_v16, 0.0  ;;  %v1028_v26 = vadd.f32 %v1027_v22, %v1823_v17  ;;  %v1029_v28 = vpop.f32.mrb[11].mxu1 }
 0x15c   :  { %v1047_v25 = vmax.f32 %v973_v18, 0.0  ;;  %v977_v27 = vadd.f32 %v976_v23, %v1823_v17  ;;  %v1049_v29 = vmax.f32 %v1026_v21, 0.0  ;;  %v1030_v31 = vadd.f32 %v1029_v28, %v1823_v17 }
 0x15d   :  { %v1054_v30 = vmax.f32 %v975_v24, 0.0  ;;  %v1056_v33 = vmax.f32 %v1028_v26, 0.0 }
 0x15e   :  { %v1343_v32 = vpack.c.bf16 %v1047_v25, %v1046_v15  ;;  %v1055_v34 = vmax.f32 %v977_v27, 0.0  ;;  %v1344_v36 = vpack.c.bf16 %v1049_v29, %v1048_v35  ;;  %v1057_v37 = vmax.f32 %v1030_v31, 0.0 }
 0x160   :  { %1172 = vst [vmem:[%s1923_s3 + $0x10] sm:$0xff] %v1343_v32  ;;  %v1347_v38 = vpack.c.bf16 %v1055_v34, %v1054_v30  ;;  %v980_v39 = vpop.f32.mrb[12].mxu0  ;;  %1176 = vst.msk [vmem:[%s1923_s3 + $0x18] sm:$0xff] %vm1876_vm2, %v1344_v36  ;;  %v1348_v17 = vpack.c.bf16 %v1057_v37, %v1056_v33  ;;  %v1033_v41 = vpop.f32.mrb[12].mxu1 }
 0x161   :  { %v981_v40 = vadd.f32 %v980_v39, %v1821_v14  ;;  %v982_v42 = vpop.f32.mrb[13].mxu0  ;;  %v1034_v43 = vadd.f32 %v1033_v41, %v1821_v14  ;;  %v1035_v46 = vpop.f32.mrb[13].mxu1 }
 0x162   :  { %1179 = vst [vmem:[%s1923_s3 + $0x30] sm:$0xff] %v1347_v38  ;;  %v983_v45 = vadd.f32 %v982_v42, %v1821_v14  ;;  %v984_v47 = vpop.f32.mrb[14].mxu0  ;;  %1180 = vst.msk [vmem:[%s1923_s3 + $0x38] sm:$0xff] %vm1876_vm2, %v1348_v17  ;;  %v1036_v49 = vadd.f32 %v1035_v46, %v1821_v14  ;;  %v1037_v51 = vpop.f32.mrb[14].mxu1 }
 0x163   :  { %v1062_v48 = vmax.f32 %v981_v40, 0.0  ;;  %v985_v50 = vadd.f32 %v984_v47, %v1836_v44  ;;  %v986_v52 = vpop.f32.mrb[15].mxu0  ;;  %v1064_v53 = vmax.f32 %v1034_v43, 0.0  ;;  %v1038_v55 = vadd.f32 %v1037_v51, %v1836_v44  ;;  %v1039_v58 = vpop.f32.mrb[15].mxu1 }
 0x164   :  { %v1063_v54 = vmax.f32 %v983_v45, 0.0  ;;  %v987_v56 = vadd.f32 %v986_v52, %v1836_v44  ;;  %v1065_v57 = vmax.f32 %v1036_v49, 0.0  ;;  %v1040_v60 = vadd.f32 %v1039_v58, %v1836_v44 }
 0x165   :  { %v1070_v59 = vmax.f32 %v985_v50, 0.0  ;;  %v1072_v62 = vmax.f32 %v1038_v55, 0.0 }
 0x166   :  { %v1351_v61 = vpack.c.bf16 %v1063_v54, %v1062_v48  ;;  %v1071_v63 = vmax.f32 %v987_v56, 0.0  ;;  %v1352_v0 = vpack.c.bf16 %v1065_v57, %v1064_v53  ;;  %v1073_v14 = vmax.f32 %v1040_v60, 0.0 }
 0x168   :  { %1183 = vst [vmem:[%s1923_s3 + $0x50] sm:$0xff] %v1351_v61  ;;  %v1355_v1 = vpack.c.bf16 %v1071_v63, %v1070_v59  ;;  %1184 = vst.msk [vmem:[%s1923_s3 + $0x58] sm:$0xff] %vm1876_vm2, %v1352_v0  ;;  %v1356_v2 = vpack.c.bf16 %v1073_v14, %v1072_v62 }
 0x16a   :  { %1187 = vst [vmem:[%s1923_s3 + $0x70] sm:$0xff] %v1355_v1  ;;  %1188 = vst.msk [vmem:[%s1923_s3 + $0x78] sm:$0xff] %vm1876_vm2, %v1356_v2 }

// kernel: actor_critic_forward.5
= control target key start
LH: loop header
LB: loop body
LE: loop exit
PB: predicated region body
PF: predicated region fallthrough
CT: control target
= control target key end

     0   :  { %v1611_v28 = vmov 0   ;;  %vm1180_vm0 = vcmask 27648   ;;  %s2104_s1 = inlined_call_operand.vmem [shape: bf16[512,260], index: 1, kind: input, shape index: {}]   ;;  %s2105_s0 = inlined_call_operand.vmem [shape: bf16[64,512], index: 0, kind: input, shape index: {}]   ;;  %s2106_s2 = inlined_call_operand.vmem [shape: f32[64,1], index: 2, kind: input, shape index: {}]   ;;  %s2107_s3 = inlined_call_operand.vmem [shape: bf16[64,260], index: 3, kind: output, shape index: {}]  }
   0x1   :  { %v1459_v0 = vld [vmem:[%s2104_s1 + $0x4] ss:$12 sps:$4 sm:$0xff]   ;;  %v1461_v1 = vld [vmem:[%s2104_s1] ss:$12 sps:$4 sm:$0xff]   ;;  %v1462_v2 = vld [vmem:[%s2104_s1 + $0x1c] ss:$12 sps:$4 sm:$0xff]   ;;  %1457 = vset.pattern.permute.xlu0 %v1611_v28  ;;  %1458 = vset.pattern.permute.xlu1 %v1611_v28 }
   0x2   :  { %799 = vmatprep.subr.bf16.mxu0 %v1459_v0  ;;  %v1464_v3 = vld [vmem:[%s2104_s1 + $0x18] ss:$12 sps:$4 sm:$0xff]   ;;  %v1465_v4 = vld [vmem:[%s2104_s1 + $0x34] ss:$12 sps:$4 sm:$0xff]   ;;  %v1467_v5 = vld [vmem:[%s2104_s1 + $0x30] ss:$12 sps:$4 sm:$0xff]  }
   0x3   :  { %800 = vmatpush1.bf16.msra.mxu0 %v1461_v1  ;;  %v1468_v6 = vld [vmem:[%s2104_s1 + $0x4c] ss:$12 sps:$4 sm:$0xff]   ;;  %v1470_v7 = vld [vmem:[%s2104_s1 + $0x48] ss:$12 sps:$4 sm:$0xff]   ;;  %v1471_v8 = vld [vmem:[%s2104_s1 + $0x64] ss:$12 sps:$4 sm:$0xff]  }
   0x4   :  { %801 = vmatprep.subr.bf16.mxu0 %v1462_v2  ;;  %v1483_v9 = vld [vmem:[%s2104_s1 + $0xc8] ss:$12 sps:$4 sm:$0xff]   ;;  %v1473_v11 = vld [vmem:[%s2104_s1 + $0x60] ss:$12 sps:$4 sm:$0xff]   ;;  %v1476_v15 = vld [vmem:[%s2104_s1 + $0x78] ss:$12 sps:$4 sm:$0xff]  }
   0x5   :  { %v1484_v10 = vld [vmem:[%s2104_s1 + $0x8] ss:$12 sps:$4 sm:$0xff]   ;;  %1344 = vmatprep.subr.bf16.mxu1 %v1483_v9  ;;  %v1488_v12 = vld [vmem:[%s2104_s1 + $0xe0] ss:$12 sps:$4 sm:$0xff]   ;;  %v1493_v16 = vld [vmem:[%s2104_s1 + $0xf8] ss:$12 sps:$4 sm:$0xff]  }
   0x6   :  { %1345 = vmatpush3.bf16.msra.mxu1 %v1484_v10  ;;  %v1489_v13 = vld [vmem:[%s2104_s1 + $0x20] ss:$12 sps:$4 sm:$0xff]   ;;  %v1474_v14 = vld [vmem:[%s2104_s1 + $0x7c] ss:$12 sps:$4 sm:$0xff]   ;;  %v1494_v17 = vld [vmem:[%s2104_s1 + $0x38] ss:$12 sps:$4 sm:$0xff]  }
   0x7   :  { %802 = vmatpush1.bf16.msra.mxu0 %v1464_v3  ;;  %1346 = vmatprep.subr.bf16.mxu1 %v1488_v12  ;;  %v1477_v18 = vld [vmem:[%s2104_s1 + $0x94] ss:$12 sps:$4 sm:$0xff]   ;;  %v1498_v19 = vld [vmem:[%s2104_s1 + $0x110] ss:$12 sps:$4 sm:$0xff]   ;;  %v1480_v22 = vld [vmem:[%s2104_s1 + $0xac] ss:$12 sps:$4 sm:$0xff]  }
   0x8   :  { %803 = vmatprep.subr.bf16.mxu0 %v1465_v4  ;;  %v1499_v20 = vld [vmem:[%s2104_s1 + $0x50] ss:$12 sps:$4 sm:$0xff]   ;;  %v1503_v23 = vld [vmem:[%s2104_s1 + $0x128] ss:$12 sps:$4 sm:$0xff]   ;;  %v1508_v27 = vld [vmem:[%s2104_s1 + $0x140] ss:$12 sps:$4 sm:$0xff]  }
   0x9   :  { %v1479_v21 = vld [vmem:[%s2104_s1 + $0x90] ss:$12 sps:$4 sm:$0xff]   ;;  %v1482_v24 = vld [vmem:[%s2104_s1 + $0xa8] ss:$12 sps:$4 sm:$0xff]   ;;  %v1487_v29 = vld [vmem:[%s2104_s1 + $0xc0] ss:$12 sps:$4 sm:$0xff]  }
   0xa   :  { %1347 = vmatpush3.bf16.msra.mxu1 %v1489_v13  ;;  %v1504_v25 = vld [vmem:[%s2104_s1 + $0x68] ss:$12 sps:$4 sm:$0xff]   ;;  %v1485_v26 = vld [vmem:[%s2104_s1 + $0xc4] ss:$12 sps:$4 sm:$0xff]   ;;  %v1509_v30 = vld [vmem:[%s2104_s1 + $0x80] ss:$12 sps:$4 sm:$0xff]  }
   0xb   :  { %804 = vmatpush1.bf16.msra.mxu0 %v1467_v5  ;;  %1348 = vmatprep.subr.bf16.mxu1 %v1493_v16  ;;  %v1513_v31 = vld [vmem:[%s2104_s1 + $0x158] ss:$12 sps:$4 sm:$0xff]   ;;  %v1490_v32 = vld [vmem:[%s2104_s1 + $0xdc] ss:$12 sps:$4 sm:$0xff]   ;;  %v1495_v36 = vld [vmem:[%s2104_s1 + $0xf4] ss:$12 sps:$4 sm:$0xff]  }
   0xc   :  { %805 = vmatprep.subr.bf16.mxu0 %v1468_v6  ;;  %v1492_v33 = vld [vmem:[%s2104_s1 + $0xd8] ss:$12 sps:$4 sm:$0xff]   ;;  %v1518_v35 = vld [vmem:[%s2104_s1 + $0x170] ss:$12 sps:$4 sm:$0xff]   ;;  %v1526_v40 = vld [vmem:[%s2104_s1 + $0x248] ss:$12 sps:$4 sm:$0xff]  }
   0xd   :  { %v1514_v34 = vld [vmem:[%s2104_s1 + $0x98] ss:$12 sps:$4 sm:$0xff]   ;;  %v1497_v37 = vld [vmem:[%s2104_s1 + $0xf0] ss:$12 sps:$4 sm:$0xff]   ;;  %v1502_v42 = vld [vmem:[%s2104_s1 + $0x108] ss:$12 sps:$4 sm:$0xff]  }
   0xe   :  { %1349 = vmatpush3.bf16.msra.mxu1 %v1494_v17  ;;  %v1519_v38 = vld [vmem:[%s2104_s1 + $0xb0] ss:$12 sps:$4 sm:$0xff]   ;;  %v1524_v39 = vld [vmem:[%s2105_s0 + $0x4] ss:$16 sps:$4 sm:$0xff]   ;;  %v1500_v41 = vld [vmem:[%s2104_s1 + $0x10c] ss:$12 sps:$4 sm:$0xff]  }
   0xf   :  { %806 = vmatpush1.bf16.msra.mxu0 %v1470_v7  ;;  %1350 = vmatprep.subr.bf16.mxu1 %v1498_v19  ;;  %v1522_v43 = vld [vmem:[%s2105_s0] ss:$16 sps:$4 sm:$0xff]   ;;  %v1527_v44 = vld [vmem:[%s2104_s1 + $0x188] ss:$12 sps:$4 sm:$0xff]   ;;  %v1539_v50 = vld [vmem:[%s2104_s1 + $0x278] ss:$12 sps:$4 sm:$0xff]  }
  0x10   :  { %807 = vmatprep.subr.bf16.mxu0 %v1471_v8  ;;  %977 = vmatprep.mubr.bf16.mxu1 %v1524_v39  ;;  %v1531_v45 = vld [vmem:[%s2104_s1 + $0x260] ss:$12 sps:$4 sm:$0xff]   ;;  %v1505_v46 = vld [vmem:[%s2104_s1 + $0x124] ss:$12 sps:$4 sm:$0xff]   ;;  %v1510_v51 = vld [vmem:[%s2104_s1 + $0x13c] ss:$12 sps:$4 sm:$0xff]  }
  0x11   :  { %831 = vmatprep.mubr.bf16.mxu0 %v1524_v39  ;;  %v1507_v47 = vld [vmem:[%s2104_s1 + $0x120] ss:$12 sps:$4 sm:$0xff]   ;;  %v1536_v49 = vld [vmem:[%s2105_s0 + $0x24] ss:$16 sps:$4 sm:$0xff]   ;;  %v1544_v55 = vld [vmem:[%s2104_s1 + $0x290] ss:$12 sps:$4 sm:$0xff]  }
  0x12   :  { %1351 = vmatpush3.bf16.msra.mxu1 %v1499_v20  ;;  %v1532_v48 = vld [vmem:[%s2104_s1 + $0x1a0] ss:$12 sps:$4 sm:$0xff]   ;;  %v1512_v52 = vld [vmem:[%s2104_s1 + $0x138] ss:$12 sps:$4 sm:$0xff]   ;;  %v1517_v57 = vld [vmem:[%s2104_s1 + $0x150] ss:$12 sps:$4 sm:$0xff]  }
  0x13   :  { %808 = vmatpush1.bf16.msra.mxu0 %v1473_v11  ;;  %1352 = vmatprep.subr.bf16.mxu1 %v1503_v23  ;;  %v1538_v53 = vld [vmem:[%s2105_s0 + $0x20] ss:$16 sps:$4 sm:$0xff]   ;;  %v1540_v54 = vld [vmem:[%s2104_s1 + $0x1b8] ss:$12 sps:$4 sm:$0xff]   ;;  %v1552_v60 = vld [vmem:[%s2104_s1 + $0x2a8] ss:$12 sps:$4 sm:$0xff]  }
  0x14   :  { %809 = vmatprep.subr.bf16.mxu0 %v1474_v14  ;;  %v1515_v56 = vld [vmem:[%s2104_s1 + $0x154] ss:$12 sps:$4 sm:$0xff]   ;;  %v1545_v58 = vld [vmem:[%s2104_s1 + $0x1d0] ss:$12 sps:$4 sm:$0xff]   ;;  %v1520_v61 = vld [vmem:[%s2104_s1 + $0x16c] ss:$12 sps:$4 sm:$0xff]  }
  0x15   :  { %v1549_v59 = vld [vmem:[%s2105_s0 + $0x44] ss:$16 sps:$4 sm:$0xff]   ;;  %v1551_v63 = vld [vmem:[%s2105_s0 + $0x40] ss:$16 sps:$4 sm:$0xff]   ;;  %v1535_v7 = vld [vmem:[%s2104_s1 + $0x19c] ss:$12 sps:$4 sm:$0xff]  }
  0x16   :  { %1353 = vmatpush3.bf16.msra.mxu1 %v1504_v25  ;;  %v1525_v62 = vld [vmem:[%s2104_s1 + $0x168] ss:$12 sps:$4 sm:$0xff]   ;;  %v1557_v1 = vld [vmem:[%s2104_s1 + $0x2c0] ss:$12 sps:$4 sm:$0xff]   ;;  %v1530_v2 = vld [vmem:[%s2104_s1 + $0x184] ss:$12 sps:$4 sm:$0xff]  }
  0x17   :  { %810 = vmatpush1.bf16.msra.mxu0 %v1476_v15  ;;  %1354 = vmatprep.subr.bf16.mxu1 %v1508_v27  ;;  %v1553_v0 = vld [vmem:[%s2104_s1 + $0x1e8] ss:$12 sps:$4 sm:$0xff]   ;;  %v1528_v3 = vld [vmem:[%s2104_s1 + $0x180] ss:$12 sps:$4 sm:$0xff]   ;;  %v1565_v6 = vld [vmem:[%s2104_s1 + $0x2d8] ss:$12 sps:$4 sm:$0xff]  }
  0x18   :  { %811 = vmatprep.subr.bf16.mxu0 %v1477_v18  ;;  %v1558_v4 = vld [vmem:[%s2104_s1 + $0x200] ss:$12 sps:$4 sm:$0xff]   ;;  %v1562_v5 = vld [vmem:[%s2105_s0 + $0x64] ss:$16 sps:$4 sm:$0xff]   ;;  %v1570_v11 = vld [vmem:[%s2104_s1 + $0x2f0] ss:$12 sps:$4 sm:$0xff]  }
  0x19   :  { %v1533_v8 = vld [vmem:[%s2104_s1 + $0x198] ss:$12 sps:$4 sm:$0xff]   ;;  %v1564_v9 = vld [vmem:[%s2105_s0 + $0x60] ss:$16 sps:$4 sm:$0xff]   ;;  %v1577_v14 = vld [vmem:[%s2105_s0 + $0xc] ss:$16 sps:$4 sm:$0xff]  }
  0x1a   :  { %1355 = vmatpush3.bf16.msra.mxu1 %v1509_v30  ;;  %v1566_v10 = vld [vmem:[%s2104_s1 + $0x218] ss:$12 sps:$4 sm:$0xff]   ;;  %v1543_v12 = vld [vmem:[%s2104_s1 + $0x1b4] ss:$12 sps:$4 sm:$0xff]   ;;  %v1571_v13 = vld [vmem:[%s2104_s1 + $0x230] ss:$12 sps:$4 sm:$0xff]  }
  0x1b   :  { %812 = vmatpush1.bf16.msra.mxu0 %v1479_v21  ;;  %1356 = vmatprep.subr.bf16.mxu1 %v1513_v31  ;;  %v1541_v15 = vld [vmem:[%s2104_s1 + $0x1b0] ss:$12 sps:$4 sm:$0xff]   ;;  %v1548_v16 = vld [vmem:[%s2104_s1 + $0x1cc] ss:$12 sps:$4 sm:$0xff]   ;;  %v1546_v19 = vld [vmem:[%s2104_s1 + $0x1c8] ss:$12 sps:$4 sm:$0xff]  }
  0x1c   :  { %813 = vmatprep.subr.bf16.mxu0 %v1480_v22  ;;  %v1875_v17 = vld [vmem:[%s2105_s0 + $0x8] ss:$16 sps:$4 sm:$0xff]   ;;  %v1880_v18 = vld [vmem:[%s2105_s0 + $0x2c] ss:$16 sps:$4 sm:$0xff]   ;;  %v1556_v20 = vld [vmem:[%s2104_s1 + $0x1e4] ss:$12 sps:$4 sm:$0xff]  }
  0x1d   :  { %v1554_v21 = vld [vmem:[%s2104_s1 + $0x1e0] ss:$12 sps:$4 sm:$0xff]   ;;  %v1561_v22 = vld [vmem:[%s2104_s1 + $0x1fc] ss:$12 sps:$4 sm:$0xff]   ;;  %v1559_v25 = vld [vmem:[%s2104_s1 + $0x1f8] ss:$12 sps:$4 sm:$0xff]  }
  0x1e   :  { %1357 = vmatpush3.bf16.msra.mxu1 %v1514_v34  ;;  %v1899_v23 = vld [vmem:[%s2105_s0 + $0x28] ss:$16 sps:$4 sm:$0xff]   ;;  %v159_v27 = vld [vmem:[%s2106_s2] sm:$0xff]  ;;  %v161_v28 = vld [vmem:[%s2106_s2 + $0x10] sm:$0xff] }
  0x1f   :  { %814 = vmatpush1.bf16.msra.mxu0 %v1482_v24  ;;  %1358 = vmatprep.subr.bf16.mxu1 %v1518_v35  ;;  %v1904_v24 = vld [vmem:[%s2105_s0 + $0x4c] ss:$16 sps:$4 sm:$0xff]   ;;  %v1572_v35 = vld [vmem:[%s2104_s1 + $0x228] ss:$12 sps:$4 sm:$0xff]  }
  0x20   :  { %815 = vmatprep.subr.bf16.mxu0 %v1485_v26  ;;  %v1569_v26 = vld [vmem:[%s2104_s1 + $0x214] ss:$12 sps:$4 sm:$0xff]   ;;  %169 = vperm.xlu0 %1457, %v159_v27   ;;  %v160_v30 = vld [vmem:[%s2106_s2 + $0x8] sm:$0xff] }
  0x21   :  { %179 = vperm.xlu1 %1458, %v161_v28   ;;  %v1574_v31 = vld [vmem:[%s2104_s1 + $0x22c] ss:$12 sps:$4 sm:$0xff]  }
  0x22   :  { %1359 = vmatpush3.bf16.msra.mxu1 %v1519_v38  ;;  %v1602_v34 = vld [vmem:[%s2105_s0 + $0x6c] ss:$16 sps:$4 sm:$0xff]  }
  0x23   :  { %816 = vmatpush1.bf16.msra.mxu0 %v1487_v29  ;;  %1384 = vmatprep.subr.bf16.mxu1 %v1526_v40  ;;  %v1567_v29 = vld [vmem:[%s2104_s1 + $0x210] ss:$12 sps:$4 sm:$0xff]   ;;  %v164_v38 = vld [vmem:[%s2106_s2 + $0x28] sm:$0xff] }
  0x24   :  { %817 = vmatprep.subr.bf16.mxu0 %v1490_v32  ;;  %v1595_v32 = vld [vmem:[%s2105_s0 + $0x48] ss:$16 sps:$4 sm:$0xff]   ;;  %174 = vperm.xlu0 %1457, %v160_v30   ;;  %v1578_v39 = vld [vmem:[%s2104_s1 + $0x240] ss:$12 sps:$4 sm:$0xff]   ;;  %v165_v40 = vld [vmem:[%s2106_s2 + $0x30] sm:$0xff] }
  0x25   :  { %978 = vmatmul.mubr.bf16.vlgmr.msra.gmra.mrb[0].mxu1 %v1522_v43 }
  0x26   :  { %1385 = vmatpush3.bf16.msra.mxu1 %v1527_v44  ;;  %985 = vmatprep.mubr.bf16.mxu1 %v1536_v49  ;;  %v1581_v44 = vld [vmem:[%s2104_s1 + $0x258] ss:$12 sps:$4 sm:$0xff]  }
  0x27   :  { %818 = vmatpush1.bf16.msra.mxu0 %v1492_v33  ;;  %1386 = vmatprep.subr.bf16.mxu1 %v1531_v45  ;;  %v162_v33 = vld [vmem:[%s2106_s2 + $0x18] sm:$0xff]  ;;  %v1589_v45 = vld [vmem:[%s2104_s1 + $0x274] ss:$12 sps:$4 sm:$0xff]  }
  0x28   :  { %819 = vmatprep.subr.bf16.mxu0 %v1495_v36  ;;  %v163_v36 = vld [vmem:[%s2106_s2 + $0x20] sm:$0xff]  ;;  %184 = vperm.xlu1 %1458, %v162_v33  }
  0x29   :  { %189 = vperm.xlu0 %1457, %v163_v36  }
  0x2a   :  { %1387 = vmatpush3.bf16.msra.mxu1 %v1532_v48  ;;  %v1590_v48 = vld [vmem:[%s2104_s1 + $0x288] ss:$12 sps:$4 sm:$0xff]  }
  0x2b   :  { %820 = vmatpush1.bf16.msra.mxu0 %v1497_v37  ;;  %1388 = vmatprep.subr.bf16.mxu1 %v1539_v50  ;;  %v1580_v37 = vld [vmem:[%s2104_s1 + $0x244] ss:$12 sps:$4 sm:$0xff]   ;;  %v1596_v50 = vld [vmem:[%s2104_s1 + $0x2a0] ss:$12 sps:$4 sm:$0xff]  }
  0x2c   :  { %821 = vmatprep.subr.bf16.mxu0 %v1500_v41  ;;  %v1583_v41 = vld [vmem:[%s2104_s1 + $0x25c] ss:$12 sps:$4 sm:$0xff]   ;;  %194 = vperm.xlu1 %1458, %v164_v38  }
  0x2d   :  { %986 = vmatmul.mubr.bf16.gmra.mrb[4].mxu1 %v1538_v53  ;;  %199 = vperm.xlu0 %1457, %v165_v40  }
  0x2e   :  { %1389 = vmatpush3.bf16.msra.mxu1 %v1540_v54  ;;  %993 = vmatprep.mubr.bf16.mxu1 %v1549_v59  ;;  %v1605_v54 = vld [vmem:[%s2104_s1 + $0x2d0] ss:$12 sps:$4 sm:$0xff]  }
  0x2f   :  { %822 = vmatpush1.bf16.msra.mxu0 %v1502_v42  ;;  %1390 = vmatprep.subr.bf16.mxu1 %v1544_v55  ;;  %v1604_v42 = vld [vmem:[%s2105_s0 + $0x68] ss:$16 sps:$4 sm:$0xff]  }
  0x30   :  { %823 = vmatprep.subr.bf16.mxu0 %v1505_v46  ;;  %v1587_v46 = vld [vmem:[%s2104_s1 + $0x270] ss:$12 sps:$4 sm:$0xff]   ;;  %v1610_v55 = vld [vmem:[%s2104_s1 + $0x2ec] ss:$12 sps:$4 sm:$0xff]  }
  0x32   :  { %1391 = vmatpush3.bf16.msra.mxu1 %v1545_v58 }
  0x33   :  { %824 = vmatpush1.bf16.msra.mxu0 %v1507_v47  ;;  %1392 = vmatprep.subr.bf16.mxu1 %v1552_v60  ;;  %v1592_v47 = vld [vmem:[%s2104_s1 + $0x28c] ss:$12 sps:$4 sm:$0xff]  }
  0x34   :  { %825 = vmatprep.subr.bf16.mxu0 %v1510_v51  ;;  %v1601_v51 = vld [vmem:[%s2104_s1 + $0x2bc] ss:$12 sps:$4 sm:$0xff]  }
  0x35   :  { %994 = vmatmul.mubr.bf16.gmra.mrb[8].mxu1 %v1551_v63 }
  0x36   :  { %1393 = vmatpush3.bf16.msra.mxu1 %v1553_v0  ;;  %1001 = vmatprep.mubr.bf16.mxu1 %v1562_v5 }
  0x37   :  { %826 = vmatpush1.bf16.msra.mxu0 %v1512_v52  ;;  %1394 = vmatprep.subr.bf16.mxu1 %v1557_v1  ;;  %v1599_v52 = vld [vmem:[%s2104_s1 + $0x2b8] ss:$12 sps:$4 sm:$0xff]  }
  0x38   :  { %827 = vmatprep.subr.bf16.mxu0 %v1515_v56  ;;  %v1608_v56 = vld [vmem:[%s2104_s1 + $0x2e8] ss:$12 sps:$4 sm:$0xff]  }
  0x3a   :  { %1395 = vmatpush3.bf16.msra.mxu1 %v1558_v4 }
  0x3b   :  { %828 = vmatpush1.bf16.msra.mxu0 %v1517_v57  ;;  %1396 = vmatprep.subr.bf16.mxu1 %v1565_v6 }
  0x3c   :  { %829 = vmatprep.subr.bf16.mxu0 %v1520_v61 }
  0x3d   :  { %1002 = vmatmul.mubr.bf16.gmra.mrb[12].mxu1 %v1564_v9 }
  0x3e   :  { %1397 = vmatpush3.bf16.msra.mxu1 %v1566_v10  ;;  %1042 = vmatprep.mubr.bf16.mxu1 %v1577_v14 }
  0x3f   :  { %830 = vmatpush1.bf16.msra.mxu0 %v1525_v62  ;;  %1398 = vmatprep.subr.bf16.mxu1 %v1570_v11 }
  0x40   :  { %872 = vmatprep.subr.bf16.mxu0 %v1530_v2 }
  0x42   :  { %832 = vmatmul.mubr.bf16.vlgmr.msra.gmra.mrb[0].mxu0 %v1522_v43  ;;  %1399 = vmatpush3.bf16.msra.mxu1 %v1571_v13  ;;  %v166_v43 = vld [vmem:[%s2106_s2 + $0x38] sm:$0xff] }
  0x43   :  { %873 = vmatpush1.bf16.msra.mxu0 %v1528_v3  ;;  %841 = vmatprep.mubr.bf16.mxu0 %v1536_v49  ;;  %v1598_v49 = vld [vmem:[%s2104_s1 + $0x2a4] ss:$12 sps:$4 sm:$0xff]  }
  0x44   :  { %874 = vmatprep.subr.bf16.mxu0 %v1535_v7  ;;  %204 = vperm.xlu1 %1458, %v166_v43  }
  0x45   :  { %1043 = vmatmul.mubr.bf16.vlgmr.msra.gmra.mrb[16].mxu1 %v1875_v17 }
  0x46   :  { %1050 = vmatprep.mubr.bf16.mxu1 %v1880_v18 }
  0x47   :  { %875 = vmatpush1.bf16.msra.mxu0 %v1533_v8 }
  0x48   :  { %876 = vmatprep.subr.bf16.mxu0 %v1543_v12 }
  0x4a   :  { %842 = vmatmul.mubr.bf16.gmra.mrb[4].mxu0 %v1538_v53  ;;  %v1607_v53 = vld [vmem:[%s2104_s1 + $0x2d4] ss:$12 sps:$4 sm:$0xff]  }
  0x4b   :  { %877 = vmatpush1.bf16.msra.mxu0 %v1541_v15  ;;  %851 = vmatprep.mubr.bf16.mxu0 %v1549_v59 }
  0x4c   :  { %878 = vmatprep.subr.bf16.mxu0 %v1548_v16 }
  0x4d   :  { %1051 = vmatmul.mubr.bf16.gmra.mrb[20].mxu1 %v1899_v23 }
  0x4e   :  { %1058 = vmatprep.mubr.bf16.mxu1 %v1904_v24 }
  0x4f   :  { %879 = vmatpush1.bf16.msra.mxu0 %v1546_v19 }
  0x50   :  { %880 = vmatprep.subr.bf16.mxu0 %v1556_v20 }
  0x52   :  { %852 = vmatmul.mubr.bf16.gmra.mrb[8].mxu0 %v1551_v63 }
  0x53   :  { %881 = vmatpush1.bf16.msra.mxu0 %v1554_v21  ;;  %861 = vmatprep.mubr.bf16.mxu0 %v1562_v5 }
  0x54   :  { %882 = vmatprep.subr.bf16.mxu0 %v1561_v22 }
  0x55   :  { %1059 = vmatmul.mubr.bf16.gmra.mrb[24].mxu1 %v1595_v32 }
  0x56   :  { %1066 = vmatprep.mubr.bf16.mxu1 %v1602_v34 }
  0x57   :  { %883 = vmatpush1.bf16.msra.mxu0 %v1559_v25 }
  0x58   :  { %884 = vmatprep.subr.bf16.mxu0 %v1569_v26 }
  0x5a   :  { %862 = vmatmul.mubr.bf16.gmra.mrb[12].mxu0 %v1564_v9 }
  0x5b   :  { %885 = vmatpush1.bf16.msra.mxu0 %v1567_v29  ;;  %904 = vmatprep.mubr.bf16.mxu0 %v1577_v14 }
  0x5c   :  { %886 = vmatprep.subr.bf16.mxu0 %v1574_v31 }
  0x5d   :  { %1067 = vmatmul.mubr.bf16.gmra.mrb[28].mxu1 %v1604_v42 }
  0x5f   :  { %887 = vmatpush1.bf16.msra.mxu0 %v1572_v35 }
  0x60   :  { %888 = vmatprep.subr.bf16.mxu0 %v1580_v37 }
  0x63   :  { %889 = vmatpush1.bf16.msra.mxu0 %v1578_v39 }
  0x64   :  { %890 = vmatprep.subr.bf16.mxu0 %v1583_v41 }
  0x67   :  { %891 = vmatpush1.bf16.msra.mxu0 %v1581_v44 }
  0x68   :  { %892 = vmatprep.subr.bf16.mxu0 %v1589_v45 }
  0x6b   :  { %893 = vmatpush1.bf16.msra.mxu0 %v1587_v46 }
  0x6c   :  { %894 = vmatprep.subr.bf16.mxu0 %v1592_v47 }
  0x6f   :  { %895 = vmatpush1.bf16.msra.mxu0 %v1590_v48 }
  0x70   :  { %896 = vmatprep.subr.bf16.mxu0 %v1598_v49 }
  0x73   :  { %897 = vmatpush1.bf16.msra.mxu0 %v1596_v50 }
  0x74   :  { %898 = vmatprep.subr.bf16.mxu0 %v1601_v51 }
  0x77   :  { %899 = vmatpush1.bf16.msra.mxu0 %v1599_v52 }
  0x78   :  { %900 = vmatprep.subr.bf16.mxu0 %v1607_v53 }
  0x7b   :  { %901 = vmatpush1.bf16.msra.mxu0 %v1605_v54 }
  0x7c   :  { %902 = vmatprep.subr.bf16.mxu0 %v1610_v55 }
  0x7f   :  { %903 = vmatpush1.bf16.msra.mxu0 %v1608_v56 }
  0x82   :  { %905 = vmatmul.mubr.bf16.vlgmr.msra.gmra.mrb[0].mxu0 %v1875_v17 }
  0x83   :  { %914 = vmatprep.mubr.bf16.mxu0 %v1880_v18 }
  0x8a   :  { %915 = vmatmul.mubr.bf16.gmra.mrb[4].mxu0 %v1899_v23 }
  0x8b   :  { %924 = vmatprep.mubr.bf16.mxu0 %v1904_v24 }
  0x92   :  { %925 = vmatmul.mubr.bf16.gmra.mrb[8].mxu0 %v1595_v32 }
  0x93   :  { %934 = vmatprep.mubr.bf16.mxu0 %v1602_v34 }
  0x9a   :  { %935 = vmatmul.mubr.bf16.gmra.mrb[12].mxu0 %v1604_v42 }
  0x9f   :  { %v2008_v13 = vpop.permute.xlu0 %169 }
  0xa0   :  { %v2013_v22 = vpop.permute.xlu1 %179 }
  0xa3   :  { %v2010_v18 = vpop.permute.xlu0 %174 }
  0xa7   :  { %v2016_v31 = vpop.permute.xlu1 %184 }
  0xa8   :  { %v2028_v44 = vpop.permute.xlu0 %189 }
  0xab   :  { %v2030_v47 = vpop.permute.xlu1 %194 }
  0xf8   :  { %v1360_v57 = vpop.f32.mrb[0].mxu1 }
  0xf9   :  { %v1361_v58 = vpop.f32.mrb[1].mxu1 }
  0xfa   :  { %v1362_v59 = vadd.f32 %v1361_v58, %v1360_v57  ;;  %v1363_v60 = vpop.f32.mrb[2].mxu1 }
  0xfb   :  { %v1364_v61 = vpop.f32.mrb[3].mxu1 }
  0xfc   :  { %v1365_v62 = vadd.f32 %v1364_v61, %v1363_v60  ;;  %v980_v19 = vadd.f32 %v1362_v59, %v2008_v13  ;;  %v2042_v60 = vpop.permute.xlu0 %199 }
  0xfe   :  { %v983_v25 = vadd.f32 %v1365_v62, %v2010_v18 }
 0x100   :  { %v1366_v63 = vpop.f32.mrb[4].mxu1 }
 0x101   :  { %v1367_v0 = vpop.f32.mrb[5].mxu1 }
 0x102   :  { %v1368_v1 = vadd.f32 %v1367_v0, %v1366_v63  ;;  %v1369_v2 = vpop.f32.mrb[6].mxu1  ;;  %v2044_v63 = vpop.permute.xlu1 %204 }
 0x103   :  { %v1370_v3 = vpop.f32.mrb[7].mxu1 }
 0x104   :  { %v1371_v4 = vadd.f32 %v1370_v3, %v1369_v2  ;;  %v988_v34 = vadd.f32 %v1368_v1, %v2013_v22 }
 0x106   :  { %v991_v40 = vadd.f32 %v1371_v4, %v2016_v31 }
 0x108   :  { %v1372_v5 = vpop.f32.mrb[8].mxu1 }
 0x109   :  { %v1373_v6 = vpop.f32.mrb[9].mxu1 }
 0x10a   :  { %v1374_v7 = vadd.f32 %v1373_v6, %v1372_v5  ;;  %v1375_v8 = vpop.f32.mrb[10].mxu1 }
 0x10b   :  { %v1376_v9 = vpop.f32.mrb[11].mxu1 }
 0x10c   :  { %v1377_v10 = vadd.f32 %v1376_v9, %v1375_v8  ;;  %v996_v51 = vadd.f32 %v1374_v7, %v2028_v44 }
 0x10e   :  { %v999_v56 = vadd.f32 %v1377_v10, %v2030_v47 }
 0x110   :  { %v1378_v11 = vpop.f32.mrb[12].mxu1 }
 0x111   :  { %v1379_v12 = vpop.f32.mrb[13].mxu1 }
 0x112   :  { %v1380_v14 = vadd.f32 %v1379_v12, %v1378_v11  ;;  %v1381_v15 = vpop.f32.mrb[14].mxu1 }
 0x113   :  { %v1382_v16 = vpop.f32.mrb[15].mxu1 }
 0x114   :  { %v1383_v17 = vadd.f32 %v1382_v16, %v1381_v15  ;;  %v1004_v3 = vadd.f32 %v1380_v14, %v2042_v60 }
 0x116   :  { %v1007_v8 = vadd.f32 %v1383_v17, %v2044_v63 }
 0x118   :  { %v1400_v20 = vpop.f32.mrb[16].mxu1 }
 0x119   :  { %v1401_v21 = vpop.f32.mrb[17].mxu1 }
 0x11a   :  { %v1402_v23 = vadd.f32 %v1401_v21, %v1400_v20  ;;  %v1403_v24 = vpop.f32.mrb[18].mxu1 }
 0x11b   :  { %v1404_v26 = vpop.f32.mrb[19].mxu1 }
 0x11c   :  { %v1045_v27 = vadd.f32 %v1402_v23, %v980_v19  ;;  %v1405_v28 = vadd.f32 %v1404_v26, %v1403_v24 }
 0x11e   :  { %v1077_v29 = vmax.f32 %v1045_v27, 0.0  ;;  %v1048_v30 = vadd.f32 %v1405_v28, %v983_v25 }
 0x120   :  { %v1329_v32 = vpack.c.bf16 %v1077_v29, %v1077_v29  ;;  %v1080_v33 = vmax.f32 %v1048_v30, 0.0  ;;  %v1406_v35 = vpop.f32.mrb[20].mxu1 }
 0x121   :  { %v1407_v36 = vpop.f32.mrb[21].mxu1 }
 0x122   :  { %1181 = vst.msk [vmem:[%s2107_s3 + $0x8] sm:$0xf] %vm1180_vm0, %v1329_v32  ;;  %v1331_v37 = vpack.c.bf16 %v1080_v33, %v1080_v33  ;;  %v1408_v38 = vadd.f32 %v1407_v36, %v1406_v35  ;;  %v1409_v39 = vpop.f32.mrb[22].mxu1 }
 0x123   :  { %v1410_v41 = vpop.f32.mrb[23].mxu1 }
 0x124   :  { %1183 = vst.msk [vmem:[%s2107_s3 + $0x14] sm:$0xf] %vm1180_vm0, %v1331_v37  ;;  %v1053_v42 = vadd.f32 %v1408_v38, %v988_v34  ;;  %v1411_v43 = vadd.f32 %v1410_v41, %v1409_v39 }
 0x126   :  { %v1083_v45 = vmax.f32 %v1053_v42, 0.0  ;;  %v1056_v46 = vadd.f32 %v1411_v43, %v991_v40 }
 0x128   :  { %v1333_v48 = vpack.c.bf16 %v1083_v45, %v1083_v45  ;;  %v1086_v49 = vmax.f32 %v1056_v46, 0.0  ;;  %v1412_v50 = vpop.f32.mrb[24].mxu1 }
 0x129   :  { %v1413_v52 = vpop.f32.mrb[25].mxu1 }
 0x12a   :  { %1185 = vst.msk [vmem:[%s2107_s3 + $0x20] sm:$0xf] %vm1180_vm0, %v1333_v48  ;;  %v1335_v53 = vpack.c.bf16 %v1086_v49, %v1086_v49  ;;  %v1414_v54 = vadd.f32 %v1413_v52, %v1412_v50  ;;  %v1415_v55 = vpop.f32.mrb[26].mxu1 }
 0x12b   :  { %v1416_v57 = vpop.f32.mrb[27].mxu1 }
 0x12c   :  { %1187 = vst.msk [vmem:[%s2107_s3 + $0x2c] sm:$0xf] %vm1180_vm0, %v1335_v53  ;;  %v1061_v58 = vadd.f32 %v1414_v54, %v996_v51  ;;  %v1417_v59 = vadd.f32 %v1416_v57, %v1415_v55 }
 0x12e   :  { %v1089_v61 = vmax.f32 %v1061_v58, 0.0  ;;  %v1064_v62 = vadd.f32 %v1417_v59, %v999_v56 }
 0x130   :  { %v1337_v0 = vpack.c.bf16 %v1089_v61, %v1089_v61  ;;  %v1092_v1 = vmax.f32 %v1064_v62, 0.0  ;;  %v1418_v2 = vpop.f32.mrb[28].mxu1 }
 0x131   :  { %v1419_v4 = vpop.f32.mrb[29].mxu1 }
 0x132   :  { %1189 = vst.msk [vmem:[%s2107_s3 + $0x38] sm:$0xf] %vm1180_vm0, %v1337_v0  ;;  %v1339_v5 = vpack.c.bf16 %v1092_v1, %v1092_v1  ;;  %v1420_v6 = vadd.f32 %v1419_v4, %v1418_v2  ;;  %v1421_v7 = vpop.f32.mrb[30].mxu1 }
 0x133   :  { %v1422_v9 = vpop.f32.mrb[31].mxu1 }
 0x134   :  { %1191 = vst.msk [vmem:[%s2107_s3 + $0x44] sm:$0xf] %vm1180_vm0, %v1339_v5  ;;  %v1069_v10 = vadd.f32 %v1420_v6, %v1004_v3  ;;  %v1423_v11 = vadd.f32 %v1422_v9, %v1421_v7 }
 0x136   :  { %v1095_v12 = vmax.f32 %v1069_v10, 0.0  ;;  %v1072_v14 = vadd.f32 %v1423_v11, %v1007_v8 }
 0x138   :  { %v1341_v15 = vpack.c.bf16 %v1095_v12, %v1095_v12  ;;  %v1098_v16 = vmax.f32 %v1072_v14, 0.0 }
 0x13a   :  { %1193 = vst.msk [vmem:[%s2107_s3 + $0x50] sm:$0xf] %vm1180_vm0, %v1341_v15  ;;  %v1343_v19 = vpack.c.bf16 %v1098_v16, %v1098_v16 }
 0x13c   :  { %1195 = vst.msk [vmem:[%s2107_s3 + $0x5c] sm:$0xf] %vm1180_vm0, %v1343_v19 }
 0x155   :  { %v906_v17 = vpop.f32.mrb[0].mxu0 }
 0x156   :  { %v1424_v20 = vadd.f32 %v906_v17, %v2008_v13  ;;  %v908_v21 = vpop.f32.mrb[1].mxu0 }
 0x157   :  { %v1425_v23 = vadd.f32 %v908_v21, %v2008_v13  ;;  %v910_v24 = vpop.f32.mrb[2].mxu0 }
 0x158   :  { %v1075_v25 = vmax.f32 %v1424_v20, 0.0  ;;  %v1426_v26 = vadd.f32 %v910_v24, %v2010_v18  ;;  %v912_v27 = vpop.f32.mrb[3].mxu0 }
 0x159   :  { %v1076_v28 = vmax.f32 %v1425_v23, 0.0  ;;  %v1427_v29 = vadd.f32 %v912_v27, %v2010_v18 }
 0x15a   :  { %v1078_v30 = vmax.f32 %v1426_v26, 0.0 }
 0x15b   :  { %v1328_v32 = vpack.c.bf16 %v1076_v28, %v1075_v25  ;;  %v1079_v33 = vmax.f32 %v1427_v29, 0.0 }
 0x15d   :  { %1179 = vst [vmem:[%s2107_s3] sm:$0xff] %v1328_v32  ;;  %v1330_v34 = vpack.c.bf16 %v1079_v33, %v1078_v30  ;;  %v916_v35 = vpop.f32.mrb[4].mxu0 }
 0x15e   :  { %v1428_v36 = vadd.f32 %v916_v35, %v2013_v22  ;;  %v918_v13 = vpop.f32.mrb[5].mxu0 }
 0x15f   :  { %1182 = vst [vmem:[%s2107_s3 + $0xc] sm:$0xff] %v1330_v34  ;;  %v1429_v37 = vadd.f32 %v918_v13, %v2013_v22  ;;  %v920_v38 = vpop.f32.mrb[6].mxu0 }
 0x160   :  { %v1081_v18 = vmax.f32 %v1428_v36, 0.0  ;;  %v1430_v39 = vadd.f32 %v920_v38, %v2016_v31  ;;  %v922_v40 = vpop.f32.mrb[7].mxu0 }
 0x161   :  { %v1082_v41 = vmax.f32 %v1429_v37, 0.0  ;;  %v1431_v42 = vadd.f32 %v922_v40, %v2016_v31 }
 0x162   :  { %v1084_v43 = vmax.f32 %v1430_v39, 0.0 }
 0x163   :  { %v1332_v45 = vpack.c.bf16 %v1082_v41, %v1081_v18  ;;  %v1085_v46 = vmax.f32 %v1431_v42, 0.0 }
 0x165   :  { %1184 = vst [vmem:[%s2107_s3 + $0x18] sm:$0xff] %v1332_v45  ;;  %v1334_v48 = vpack.c.bf16 %v1085_v46, %v1084_v43  ;;  %v926_v49 = vpop.f32.mrb[8].mxu0 }
 0x166   :  { %v1432_v50 = vadd.f32 %v926_v49, %v2028_v44  ;;  %v928_v22 = vpop.f32.mrb[9].mxu0 }
 0x167   :  { %1186 = vst [vmem:[%s2107_s3 + $0x24] sm:$0xff] %v1334_v48  ;;  %v1433_v51 = vadd.f32 %v928_v22, %v2028_v44  ;;  %v930_v52 = vpop.f32.mrb[10].mxu0 }
 0x168   :  { %v1087_v31 = vmax.f32 %v1432_v50, 0.0  ;;  %v1434_v53 = vadd.f32 %v930_v52, %v2030_v47  ;;  %v932_v54 = vpop.f32.mrb[11].mxu0 }
 0x169   :  { %v1088_v55 = vmax.f32 %v1433_v51, 0.0  ;;  %v1435_v56 = vadd.f32 %v932_v54, %v2030_v47 }
 0x16a   :  { %v1090_v57 = vmax.f32 %v1434_v53, 0.0 }
 0x16b   :  { %v1336_v58 = vpack.c.bf16 %v1088_v55, %v1087_v31  ;;  %v1091_v59 = vmax.f32 %v1435_v56, 0.0 }
 0x16d   :  { %1188 = vst [vmem:[%s2107_s3 + $0x30] sm:$0xff] %v1336_v58  ;;  %v1338_v61 = vpack.c.bf16 %v1091_v59, %v1090_v57  ;;  %v936_v62 = vpop.f32.mrb[12].mxu0 }
 0x16e   :  { %v1436_v0 = vadd.f32 %v936_v62, %v2042_v60  ;;  %v938_v44 = vpop.f32.mrb[13].mxu0 }
 0x16f   :  { %1190 = vst [vmem:[%s2107_s3 + $0x3c] sm:$0xff] %v1338_v61  ;;  %v1437_v1 = vadd.f32 %v938_v44, %v2042_v60  ;;  %v940_v2 = vpop.f32.mrb[14].mxu0 }
 0x170   :  { %v1093_v47 = vmax.f32 %v1436_v0, 0.0  ;;  %v1438_v3 = vadd.f32 %v940_v2, %v2044_v63  ;;  %v942_v4 = vpop.f32.mrb[15].mxu0 }
 0x171   :  { %v1094_v5 = vmax.f32 %v1437_v1, 0.0  ;;  %v1439_v6 = vadd.f32 %v942_v4, %v2044_v63 }
 0x172   :  { %v1096_v7 = vmax.f32 %v1438_v3, 0.0 }
 0x173   :  { %v1340_v8 = vpack.c.bf16 %v1094_v5, %v1093_v47  ;;  %v1097_v9 = vmax.f32 %v1439_v6, 0.0 }
 0x175   :  { %1192 = vst [vmem:[%s2107_s3 + $0x48] sm:$0xff] %v1340_v8  ;;  %v1342_v10 = vpack.c.bf16 %v1097_v9, %v1096_v7 }
 0x177   :  { %1194 = vst [vmem:[%s2107_s3 + $0x54] sm:$0xff] %v1342_v10 }

// kernel: actor_critic_forward.6
= control target key start
LH: loop header
LB: loop body
LE: loop exit
PB: predicated region body
PF: predicated region fallthrough
CT: control target
= control target key end

     0   :  { %s3250_s16 = smov 126   ;;  %s3251_s10 = smov 127   ;;  %v3252_v12 = vmov 0   ;;  %vm551_vm0 = vcmask 1031168   ;;  %vm144_vm1 = vcmask 1039360   ;;  %vm165_vm2 = vcmask 523264   ;;  %s4167_s0 = inlined_call_operand.vmem [shape: bf16[64,392], index: 0, kind: input, shape index: {}]   ;;  %s4168_s1 = inlined_call_operand.vmem [shape: bf16[9,64,64], index: 1, kind: input, shape index: {}]   ;;  %s4169_s2 = inlined_call_operand.vmem [shape: f32[64,1], index: 2, kind: input, shape index: {}]   ;;  %s4170_s3 = inlined_call_operand.vmem [shape: bf16[64,360], index: 3, kind: output, shape index: {}]  }
   0x1   :  { %v3282_v0 = vld [vmem:[%s4167_s0 + $0x4] ss:$16 sps:$4 sm:$0xff]   ;;  %v3287_v1 = vld [vmem:[%s4167_s0] ss:$16 sps:$4 sm:$0xff]   ;;  %v3293_v2 = vld [vmem:[%s4167_s0 + $0x8] ss:$16 sps:$4 sm:$0xff]   ;;  %616 = vmatprep.mubr.bf16.mxu0 %v3252_v12  ;;  %210 = vmatprep.mubr.bf16.mxu1 %v3252_v12 }
   0x2   :  { %529 = vrot.lane.b32.xlu0 %v3282_v0, %s3250_s16  ;;  %527 = vrot.lane.b32.xlu1 %v3287_v1, %s3250_s16  ;;  %v3299_v3 = vld [vmem:[%s4167_s0 + $0x24] ss:$16 sps:$4 sm:$0xff]   ;;  %v3305_v4 = vld [vmem:[%s4167_s0 + $0x28] ss:$16 sps:$4 sm:$0xff]   ;;  %s3253_s11 = smov 116   ;;  %s3254_s12 = smov 115  }
   0x3   :  { %v3311_v5 = vld [vmem:[%s4167_s0 + $0x20] ss:$16 sps:$4 sm:$0xff]   ;;  %v3316_v6 = vld [vmem:[%s4167_s0 + $0x44] ss:$16 sps:$4 sm:$0xff]   ;;  %v3321_v7 = vld [vmem:[%s4167_s0 + $0x48] ss:$16 sps:$4 sm:$0xff]   ;;  %3184 = vset.pattern.permute.xlu0 %v3252_v12  ;;  %3185 = vset.pattern.permute.xlu1 %v3252_v12 }
   0x4   :  { %v3329_v8 = vld [vmem:[%s4167_s0 + $0x40] ss:$16 sps:$4 sm:$0xff]   ;;  %v3335_v9 = vld [vmem:[%s4167_s0 + $0x64] ss:$16 sps:$4 sm:$0xff]   ;;  %v3341_v10 = vld [vmem:[%s4167_s0 + $0x68] ss:$16 sps:$4 sm:$0xff]  }
   0x5   :  { %v3347_v11 = vld [vmem:[%s4167_s0 + $0x60] ss:$16 sps:$4 sm:$0xff]   ;;  %s3255_s13 = smov 114   ;;  %s3256_s14 = smov 104   ;;  %v3458_v37 = vld [vmem:[%s4167_s0 + $0x8] ss:$16 sps:$4 sm:$0xff]  }
   0x6   :  { %531 = vrot.lane.b32.xlu0 %v3293_v2, %s3250_s16  ;;  %535 = vrot.lane.b32.xlu1 %v3299_v3, %s3250_s16  ;;  %v3444_v33 = vld [vmem:[%s4168_s1 + $0x40] sm:$0xff]   ;;  %s3257_s19 = smov 103   ;;  %v3469_v42 = vld [vmem:[%s4168_s1 + $0x48] sm:$0xff]   ;;  %vm799_vm3 = vcmask 949248   ;;  %s3258_s9 = smov 102   ;;  %vm1047_vm4 = vcmask 941056  }
   0x7   :  { %v3478_v46 = vld [vmem:[%s4167_s0 + $0x28] ss:$16 sps:$4 sm:$0xff]   ;;  %v3498_v52 = vld [vmem:[%s4168_s1 + $0x50] sm:$0xff]   ;;  %v3513_v59 = vld [vmem:[%s4168_s1 + $0x20] sm:$0xff]   ;;  %vm1295_vm5 = vcmask 932864   ;;  %vm1543_vm6 = vcmask 850944  }
   0x8   :  { %v3493_v50 = vld [vmem:[%s4167_s0 + $0x48] ss:$16 sps:$4 sm:$0xff]   ;;  %vm1879_vm7 = vcmask 842752   ;;  %vm2139_vm8 = vcmask 834560   ;;  %vm2515_vm9 = vcmask 846848  }
   0x9   :  { %v3520_v60 = vld [vmem:[%s4167_s0 + $0x68] ss:$16 sps:$4 sm:$0xff]  }
   0xa   :  { %537 = vrot.lane.b32.xlu0 %v3305_v4, %s3250_s16  ;;  %533 = vrot.lane.b32.xlu1 %v3311_v5, %s3250_s16  ;;  %v3529_v63 = vld [vmem:[%s4168_s1 + $0x58] sm:$0xff]  }
   0xe   :  { %541 = vrot.lane.b32.xlu0 %v3316_v6, %s3250_s16  ;;  %543 = vrot.lane.b32.xlu1 %v3321_v7, %s3250_s16 }
  0x12   :  { %539 = vrot.lane.b32.xlu0 %v3329_v8, %s3250_s16  ;;  %547 = vrot.lane.b32.xlu1 %v3335_v9, %s3250_s16 }
  0x16   :  { %549 = vrot.lane.b32.xlu0 %v3341_v10, %s3250_s16  ;;  %545 = vrot.lane.b32.xlu1 %v3347_v11, %s3250_s16 }
  0x1a   :  { %122 = vrot.lane.b32.xlu0 %v3282_v0, %s3251_s10  ;;  %124 = vrot.lane.b32.xlu1 %v3293_v2, %s3251_s10 }
  0x1e   :  { %120 = vrot.lane.b32.xlu0 %v3287_v1, %s3251_s10  ;;  %128 = vrot.lane.b32.xlu1 %v3299_v3, %s3251_s10 }
  0x22   :  { %130 = vrot.lane.b32.xlu0 %v3305_v4, %s3251_s10  ;;  %126 = vrot.lane.b32.xlu1 %v3311_v5, %s3251_s10 }
  0x26   :  { %134 = vrot.lane.b32.xlu0 %v3316_v6, %s3251_s10  ;;  %136 = vrot.lane.b32.xlu1 %v3321_v7, %s3251_s10 }
  0x2a   :  { %132 = vrot.lane.b32.xlu0 %v3329_v8, %s3251_s10  ;;  %140 = vrot.lane.b32.xlu1 %v3335_v9, %s3251_s10 }
  0x2e   :  { %142 = vrot.lane.b32.xlu0 %v3341_v10, %s3251_s10  ;;  %138 = vrot.lane.b32.xlu1 %v3347_v11, %s3251_s10 }
  0x32   :  { %777 = vrot.lane.b32.xlu0 %v3282_v0, %s3253_s11  ;;  %779 = vrot.lane.b32.xlu1 %v3293_v2, %s3253_s11 }
  0x36   :  { %775 = vrot.lane.b32.xlu0 %v3287_v1, %s3253_s11  ;;  %783 = vrot.lane.b32.xlu1 %v3299_v3, %s3253_s11 }
  0x3a   :  { %785 = vrot.lane.b32.xlu0 %v3305_v4, %s3253_s11  ;;  %781 = vrot.lane.b32.xlu1 %v3311_v5, %s3253_s11 }
  0x3e   :  { %789 = vrot.lane.b32.xlu0 %v3316_v6, %s3253_s11  ;;  %791 = vrot.lane.b32.xlu1 %v3321_v7, %s3253_s11 }
  0x42   :  { %787 = vrot.lane.b32.xlu0 %v3329_v8, %s3253_s11  ;;  %795 = vrot.lane.b32.xlu1 %v3335_v9, %s3253_s11 }
  0x46   :  { %797 = vrot.lane.b32.xlu0 %v3341_v10, %s3253_s11  ;;  %793 = vrot.lane.b32.xlu1 %v3347_v11, %s3253_s11 }
  0x4a   :  { %1025 = vrot.lane.b32.xlu0 %v3282_v0, %s3254_s12  ;;  %1027 = vrot.lane.b32.xlu1 %v3293_v2, %s3254_s12 }
  0x4e   :  { %1023 = vrot.lane.b32.xlu0 %v3287_v1, %s3254_s12  ;;  %1031 = vrot.lane.b32.xlu1 %v3299_v3, %s3254_s12 }
  0x52   :  { %1033 = vrot.lane.b32.xlu0 %v3305_v4, %s3254_s12  ;;  %1029 = vrot.lane.b32.xlu1 %v3311_v5, %s3254_s12 }
  0x56   :  { %1037 = vrot.lane.b32.xlu0 %v3316_v6, %s3254_s12  ;;  %1039 = vrot.lane.b32.xlu1 %v3321_v7, %s3254_s12 }
  0x5a   :  { %1035 = vrot.lane.b32.xlu0 %v3329_v8, %s3254_s12  ;;  %1043 = vrot.lane.b32.xlu1 %v3335_v9, %s3254_s12 }
  0x5e   :  { %1045 = vrot.lane.b32.xlu0 %v3341_v10, %s3254_s12  ;;  %1041 = vrot.lane.b32.xlu1 %v3347_v11, %s3254_s12 }
  0x62   :  { %1273 = vrot.lane.b32.xlu0 %v3282_v0, %s3255_s13  ;;  %1275 = vrot.lane.b32.xlu1 %v3293_v2, %s3255_s13 }
  0x66   :  { %1271 = vrot.lane.b32.xlu0 %v3287_v1, %s3255_s13  ;;  %1279 = vrot.lane.b32.xlu1 %v3299_v3, %s3255_s13 }
  0x6a   :  { %1281 = vrot.lane.b32.xlu0 %v3305_v4, %s3255_s13  ;;  %1277 = vrot.lane.b32.xlu1 %v3311_v5, %s3255_s13 }
  0x6e   :  { %1285 = vrot.lane.b32.xlu0 %v3316_v6, %s3255_s13  ;;  %1287 = vrot.lane.b32.xlu1 %v3321_v7, %s3255_s13 }
  0x72   :  { %1283 = vrot.lane.b32.xlu0 %v3329_v8, %s3255_s13  ;;  %1291 = vrot.lane.b32.xlu1 %v3335_v9, %s3255_s13 }
  0x74   :  { %v530_v13 = vpop.permute.xlu0 %529  ;;  %v528_v14 = vpop.permute.xlu1 %527 }
  0x75   :  { %v552_v18 = vsel %vm551_vm0, %v528_v14, %v530_v13 }
  0x76   :  { %1293 = vrot.lane.b32.xlu0 %v3341_v10, %s3255_s13  ;;  %1289 = vrot.lane.b32.xlu1 %v3347_v11, %s3255_s13 }
  0x78   :  { %v3403_v15 = vpop.permute.xlu0 %531  ;;  %v536_v16 = vpop.permute.xlu1 %535 }
  0x79   :  { %v553_v17 = vsel %vm551_vm0, %v530_v13, %v3403_v15 }
  0x7a   :  { %584 = vmatprep.subr.bf16.mxu0 %v553_v17  ;;  %1521 = vrot.lane.b32.xlu0 %v3282_v0, %s3256_s14 }
  0x7b   :  { %585 = vmatpush1.bf16.msra.mxu0 %v552_v18  ;;  %1523 = vrot.lane.b32.xlu1 %v3293_v2, %s3256_s14  ;;  %v3546_v18 = vld [vmem:[%s4168_s1 + $0x28] sm:$0xff]  }
  0x7c   :  { %v3412_v19 = vpop.permute.xlu0 %537  ;;  %v534_v20 = vpop.permute.xlu1 %533 }
  0x7d   :  { %v555_v21 = vsel %vm551_vm0, %v536_v16, %v3412_v19  ;;  %v554_v22 = vsel %vm551_vm0, %v534_v20, %v536_v16 }
  0x7e   :  { %586 = vmatprep.subr.bf16.mxu0 %v555_v21  ;;  %1519 = vrot.lane.b32.xlu0 %v3287_v1, %s3256_s14  ;;  %v3558_v21 = vld [vmem:[%s4167_s0 + $0xc] ss:$16 sps:$4 sm:$0xff]  }
  0x7f   :  { %587 = vmatpush1.bf16.msra.mxu0 %v554_v22  ;;  %1527 = vrot.lane.b32.xlu1 %v3299_v3, %s3256_s14 }
  0x80   :  { %v542_v23 = vpop.permute.xlu0 %541  ;;  %v3421_v24 = vpop.permute.xlu1 %543 }
  0x81   :  { %v557_v25 = vsel %vm551_vm0, %v542_v23, %v3421_v24 }
  0x82   :  { %1529 = vrot.lane.b32.xlu0 %v3305_v4, %s3256_s14  ;;  %588 = vmatprep.subr.bf16.mxu0 %v557_v25 }
  0x83   :  { %1525 = vrot.lane.b32.xlu1 %v3311_v5, %s3256_s14 }
  0x84   :  { %v540_v26 = vpop.permute.xlu0 %539  ;;  %v548_v27 = vpop.permute.xlu1 %547 }
  0x85   :  { %v556_v28 = vsel %vm551_vm0, %v540_v26, %v542_v23 }
  0x86   :  { %589 = vmatpush1.bf16.msra.mxu0 %v556_v28  ;;  %1533 = vrot.lane.b32.xlu0 %v3316_v6, %s3256_s14 }
  0x87   :  { %1535 = vrot.lane.b32.xlu1 %v3321_v7, %s3256_s14 }
  0x88   :  { %v3434_v29 = vpop.permute.xlu0 %549  ;;  %v546_v30 = vpop.permute.xlu1 %545 }
  0x89   :  { %v559_v31 = vsel %vm551_vm0, %v548_v27, %v3434_v29  ;;  %v558_v32 = vsel %vm551_vm0, %v546_v30, %v548_v27  ;;  %v3217_v30 = vld [vmem:[%s4168_s1 + $0x30] sm:$0xff]  }
  0x8a   :  { %590 = vmatprep.subr.bf16.mxu0 %v559_v31  ;;  %1531 = vrot.lane.b32.xlu0 %v3329_v8, %s3256_s14 }
  0x8b   :  { %591 = vmatpush1.bf16.msra.mxu0 %v558_v32  ;;  %1539 = vrot.lane.b32.xlu1 %v3335_v9, %s3256_s14  ;;  %v3219_v32 = vld [vmem:[%s4167_s0 + $0x2c] ss:$16 sps:$4 sm:$0xff]  }
  0x8c   :  { %v123_v34 = vpop.permute.xlu0 %122  ;;  %v125_v35 = vpop.permute.xlu1 %124 }
  0x8d   :  { %v146_v36 = vsel %vm144_vm1, %v123_v34, %v125_v35 }
  0x8e   :  { %1541 = vrot.lane.b32.xlu0 %v3341_v10, %s3256_s14  ;;  %2591 = vmatmul.mubr.msk.bf16.vlgmr.msra.gmra.mrb[0].mxu0 %vm165_vm2, %v3444_v33 }
  0x8f   :  { %178 = vmatprep.subr.bf16.mxu1 %v146_v36  ;;  %1537 = vrot.lane.b32.xlu1 %v3347_v11, %s3256_s14 }
  0x90   :  { %v121_v38 = vpop.permute.xlu0 %120  ;;  %626 = vmatprep.mubr.bf16.mxu0 %v3252_v12  ;;  %v129_v39 = vpop.permute.xlu1 %128 }
  0x91   :  { %v145_v40 = vsel %vm144_vm1, %v121_v38, %v123_v34 }
  0x92   :  { %179 = vmatpush1.bf16.msra.mxu1 %v145_v40  ;;  %1849 = vrot.lane.b32.xlu0 %v3282_v0, %s3257_s19  ;;  %v3602_v40 = vld [vmem:[%s4168_s1 + $0x60] sm:$0xff]  }
  0x93   :  { %1851 = vrot.lane.b32.xlu1 %v3458_v37, %s3257_s19 }
  0x94   :  { %v131_v41 = vpop.permute.xlu0 %130  ;;  %v127_v43 = vpop.permute.xlu1 %126 }
  0x95   :  { %v148_v44 = vsel %vm144_vm1, %v129_v39, %v131_v41  ;;  %v147_v45 = vsel %vm144_vm1, %v127_v43, %v129_v39  ;;  %v3220_v39 = vld [vmem:[%s4168_s1 + $0x38] sm:$0xff]  }
  0x96   :  { %180 = vmatprep.subr.bf16.mxu1 %v148_v44  ;;  %1847 = vrot.lane.b32.xlu0 %v3287_v1, %s3257_s19  ;;  %v3222_v43 = vld [vmem:[%s4167_s0 + $0x4c] ss:$16 sps:$4 sm:$0xff]  }
  0x97   :  { %181 = vmatpush1.bf16.msra.mxu1 %v147_v45  ;;  %1857 = vrot.lane.b32.xlu1 %v3299_v3, %s3257_s19 }
  0x98   :  { %v135_v47 = vpop.permute.xlu0 %134  ;;  %2592 = vmatmul.mubr.msk.bf16.gmra.mrb[4].mxu0 %vm165_vm2, %v3469_v42  ;;  %v137_v48 = vpop.permute.xlu1 %136 }
  0x99   :  { %636 = vmatprep.mubr.bf16.mxu0 %v3252_v12  ;;  %v150_v49 = vsel %vm144_vm1, %v135_v47, %v137_v48 }
  0x9a   :  { %1859 = vrot.lane.b32.xlu0 %v3478_v46, %s3257_s19  ;;  %182 = vmatprep.subr.bf16.mxu1 %v150_v49  ;;  %v3628_v49 = vld [vmem:[%s4168_s1 + $0x68] sm:$0xff]  }
  0x9b   :  { %1855 = vrot.lane.b32.xlu1 %v3311_v5, %s3257_s19 }
  0x9c   :  { %v133_v51 = vpop.permute.xlu0 %132  ;;  %v141_v53 = vpop.permute.xlu1 %140 }
  0x9d   :  { %v149_v54 = vsel %vm144_vm1, %v133_v51, %v135_v47 }
  0x9e   :  { %183 = vmatpush1.bf16.msra.mxu1 %v149_v54  ;;  %1865 = vrot.lane.b32.xlu0 %v3316_v6, %s3257_s19 }
  0x9f   :  { %1867 = vrot.lane.b32.xlu1 %v3493_v50, %s3257_s19 }
  0xa0   :  { %v143_v55 = vpop.permute.xlu0 %142  ;;  %2593 = vmatmul.mubr.msk.bf16.gmra.mrb[8].mxu0 %vm165_vm2, %v3498_v52  ;;  %v139_v56 = vpop.permute.xlu1 %138 }
  0xa1   :  { %v152_v57 = vsel %vm144_vm1, %v141_v53, %v143_v55  ;;  %646 = vmatprep.mubr.bf16.mxu0 %v3252_v12  ;;  %v151_v58 = vsel %vm144_vm1, %v139_v56, %v141_v53 }
  0xa2   :  { %184 = vmatprep.subr.bf16.mxu1 %v152_v57  ;;  %1863 = vrot.lane.b32.xlu0 %v3329_v8, %s3257_s19 }
  0xa3   :  { %185 = vmatpush1.bf16.msra.mxu1 %v151_v58  ;;  %1873 = vrot.lane.b32.xlu1 %v3335_v9, %s3257_s19  ;;  %v3656_v58 = vld [vmem:[%s4168_s1 + $0x70] sm:$0xff]  }
  0xa4   :  { %v778_v61 = vpop.permute.xlu0 %777  ;;  %2839 = vmatprep.subr.bf16.mxu1 %v125_v35  ;;  %v3524_v62 = vpop.permute.xlu1 %779 }
  0xa5   :  { %v801_v13 = vsel %vm799_vm3, %v778_v61, %v3524_v62 }
  0xa6   :  { %2559 = vmatmul.mubr.msk.bf16.vlgmr.msra.gmra.mrb[0].mxu1 %vm165_vm2, %v3513_v59  ;;  %1875 = vrot.lane.b32.xlu0 %v3520_v60, %s3257_s19 }
  0xa7   :  { %832 = vmatprep.subr.bf16.mxu0 %v801_v13  ;;  %2840 = vmatpush3.bf16.msra.mxu1 %v125_v35 }
  0xa8   :  { %v776_v14 = vpop.permute.xlu0 %775  ;;  %2841 = vmatprep.subr.bf16.mxu1 %v131_v41  ;;  %1871 = vrot.lane.b32.xlu1 %v3347_v11, %s3257_s19  ;;  %v784_v17 = vpop.permute.xlu1 %783 }
  0xa9   :  { %v800_v16 = vsel %vm799_vm3, %v776_v14, %v778_v61  ;;  %220 = vmatprep.mubr.bf16.mxu1 %v3252_v12  ;;  %2594 = vmatmul.mubr.msk.bf16.gmra.mrb[12].mxu0 %vm165_vm2, %v3529_v63 }
  0xaa   :  { %833 = vmatpush1.bf16.msra.mxu0 %v800_v16  ;;  %2109 = vrot.lane.b32.xlu0 %v3282_v0, %s3258_s9 }
  0xab   :  { %2842 = vmatpush3.bf16.msra.mxu1 %v131_v41  ;;  %864 = vmatprep.mubr.bf16.mxu0 %v3252_v12 }
  0xac   :  { %v3551_v20 = vpop.permute.xlu0 %785  ;;  %2843 = vmatprep.subr.bf16.mxu1 %v137_v48  ;;  %2111 = vrot.lane.b32.xlu1 %v3458_v37, %s3258_s9  ;;  %v782_v22 = vpop.permute.xlu1 %781 }
  0xad   :  { %v803_v23 = vsel %vm799_vm3, %v784_v17, %v3551_v20  ;;  %v802_v25 = vsel %vm799_vm3, %v782_v22, %v784_v17  ;;  %v3712_v22 = vld [vmem:[%s4168_s1 + $0x80] sm:$0xff]  }
  0xae   :  { %2560 = vmatmul.mubr.msk.bf16.gmra.mrb[4].mxu1 %vm165_vm2, %v3546_v18  ;;  %834 = vmatprep.subr.bf16.mxu0 %v803_v23 }
  0xaf   :  { %2844 = vmatpush3.bf16.msra.mxu1 %v137_v48  ;;  %835 = vmatpush1.bf16.msra.mxu0 %v802_v25 }
  0xb0   :  { %v790_v26 = vpop.permute.xlu0 %789  ;;  %2845 = vmatprep.subr.bf16.mxu1 %v143_v55  ;;  %1853 = vrot.lane.b32.xlu1 %v3558_v21, %s3257_s19  ;;  %v3567_v27 = vpop.permute.xlu1 %791 }
  0xb1   :  { %230 = vmatprep.mubr.bf16.mxu1 %v3252_v12  ;;  %2107 = vrot.lane.b32.xlu0 %v3287_v1, %s3258_s9  ;;  %v805_v28 = vsel %vm799_vm3, %v790_v26, %v3567_v27 }
  0xb2   :  { %836 = vmatprep.subr.bf16.mxu0 %v805_v28 }
  0xb3   :  { %2846 = vmatpush3.bf16.msra.mxu1 %v143_v55 }
  0xb4   :  { %v788_v31 = vpop.permute.xlu0 %787  ;;  %2119 = vrot.lane.b32.xlu1 %v3478_v46, %s3258_s9  ;;  %360 = vmatprep.subr.bf16.mxu1 %v3282_v0  ;;  %v796_v35 = vpop.permute.xlu1 %795 }
  0xb5   :  { %v804_v34 = vsel %vm799_vm3, %v788_v31, %v790_v26  ;;  %2117 = vrot.lane.b32.xlu0 %v3299_v3, %s3258_s9  ;;  %v3229_v31 = vld [vmem:[%s4168_s1 + $0x10] sm:$0xff]  }
  0xb6   :  { %2561 = vmatmul.mubr.msk.bf16.gmra.mrb[8].mxu1 %vm165_vm2, %v3217_v30  ;;  %837 = vmatpush1.bf16.msra.mxu0 %v804_v34 }
  0xb7   :  { %240 = vmatprep.mubr.bf16.mxu1 %v3252_v12 }
  0xb8   :  { %v3588_v36 = vpop.permute.xlu0 %797  ;;  %1861 = vrot.lane.b32.xlu1 %v3219_v32, %s3257_s19  ;;  %v794_v37 = vpop.permute.xlu1 %793 }
  0xb9   :  { %v807_v38 = vsel %vm799_vm3, %v796_v35, %v3588_v36  ;;  %2115 = vrot.lane.b32.xlu0 %v3311_v5, %s3258_s9  ;;  %v806_v0 = vsel %vm799_vm3, %v794_v37, %v796_v35 }
  0xba   :  { %838 = vmatprep.subr.bf16.mxu0 %v807_v38 }
  0xbb   :  { %839 = vmatpush1.bf16.msra.mxu0 %v806_v0 }
  0xbc   :  { %v1026_v41 = vpop.permute.xlu0 %1025  ;;  %2127 = vrot.lane.b32.xlu1 %v3493_v50, %s3258_s9  ;;  %v3609_v44 = vpop.permute.xlu1 %1027  ;;  %v3215_v50 = vld [vmem:[%s4167_s0 + $0x6c] ss:$16 sps:$4 sm:$0xff]  }
  0xbd   :  { %2125 = vrot.lane.b32.xlu0 %v3316_v6, %s3258_s9  ;;  %v1049_v45 = vsel %vm1047_vm4, %v1026_v41, %v3609_v44 }
  0xbe   :  { %2562 = vmatmul.mubr.msk.bf16.gmra.mrb[12].mxu1 %vm165_vm2, %v3220_v39  ;;  %2611 = vmatmul.mubr.msk.bf16.vlgmr.msra.gmra.mrb[0].mxu0 %vm165_vm2, %v3602_v40 }
  0xbf   :  { %2847 = vmatprep.mubr.msk.bf16.mxu1 %vm165_vm2, %v3513_v59  ;;  %874 = vmatprep.mubr.bf16.mxu0 %v3252_v12 }
  0xc0   :  { %v1024_v46 = vpop.permute.xlu0 %1023  ;;  %1869 = vrot.lane.b32.xlu1 %v3222_v43, %s3257_s19  ;;  %1080 = vmatprep.subr.bf16.mxu0 %v1049_v45  ;;  %v1032_v48 = vpop.permute.xlu1 %1031 }
  0xc1   :  { %v1048_v47 = vsel %vm1047_vm4, %v1024_v46, %v1026_v41  ;;  %2123 = vrot.lane.b32.xlu0 %v3329_v8, %s3258_s9  ;;  %v3759_v41 = vld [vmem:[%s4168_s1 + $0x90] sm:$0xff]  }
  0xc2   :  { %1081 = vmatpush1.bf16.msra.mxu0 %v1048_v47 }
  0xc4   :  { %2135 = vrot.lane.b32.xlu1 %v3520_v60, %s3258_s9  ;;  %v3635_v51 = vpop.permute.xlu0 %1033  ;;  %v1030_v53 = vpop.permute.xlu1 %1029 }
  0xc5   :  { %2133 = vrot.lane.b32.xlu0 %v3335_v9, %s3258_s9  ;;  %v1051_v54 = vsel %vm1047_vm4, %v1032_v48, %v3635_v51  ;;  %v1050_v55 = vsel %vm1047_vm4, %v1030_v53, %v1032_v48  ;;  %v3775_v53 = vld [vmem:[%s4168_s1 + $0x98] sm:$0xff]  }
  0xc6   :  { %2848 = vmatmul.mubr.msk.bf16.vlgmr.msra.gmra.mrb[16].mxu1 %vm165_vm2, %v3546_v18  ;;  %2612 = vmatmul.mubr.msk.bf16.gmra.mrb[4].mxu0 %vm165_vm2, %v3628_v49 }
  0xc7   :  { %361 = vmatpush1.bf16.msra.mxu1 %v3287_v1  ;;  %2851 = vmatprep.mubr.msk.bf16.mxu1 %vm165_vm2, %v3217_v30 }
  0xc8   :  { %362 = vmatprep.subr.bf16.mxu1 %v3299_v3  ;;  %1877 = vrot.lane.b32.xlu1 %v3215_v50, %s3257_s19  ;;  %v1038_v56 = vpop.permute.xlu0 %1037  ;;  %v3651_v57 = vpop.permute.xlu1 %1039 }
  0xc9   :  { %884 = vmatprep.mubr.bf16.mxu0 %v3252_v12  ;;  %1082 = vmatprep.subr.bf16.mxu0 %v1051_v54  ;;  %v1053_v1 = vsel %vm1047_vm4, %v1038_v56, %v3651_v57 }
  0xca   :  { %1083 = vmatpush1.bf16.msra.mxu0 %v1050_v55  ;;  %2131 = vrot.lane.b32.xlu0 %v3347_v11, %s3258_s9 }
  0xcb   :  { %363 = vmatpush1.bf16.msra.mxu1 %v3311_v5  ;;  %1084 = vmatprep.subr.bf16.mxu0 %v1053_v1 }
  0xcc   :  { %364 = vmatprep.subr.bf16.mxu1 %v3316_v6  ;;  %v1036_v3 = vpop.permute.xlu0 %1035  ;;  %2121 = vrot.lane.b32.xlu1 %v3219_v32, %s3258_s9  ;;  %v1044_v59 = vpop.permute.xlu1 %1043 }
  0xcd   :  { %v1052_v60 = vsel %vm1047_vm4, %v1036_v3, %v1038_v56  ;;  %v3791_v3 = vld [vmem:[%s4168_s1 + $0xa0] sm:$0xff]  }
  0xce   :  { %2852 = vmatmul.mubr.msk.bf16.gmra.mrb[20].mxu1 %vm165_vm2, %v3220_v39  ;;  %2613 = vmatmul.mubr.msk.bf16.gmra.mrb[8].mxu0 %vm165_vm2, %v3656_v58  ;;  %v3231_v39 = vld [vmem:[%s4168_s1 + $0x18] sm:$0xff]  }
  0xcf   :  { %365 = vmatpush1.bf16.msra.mxu1 %v3329_v8  ;;  %2113 = vrot.lane.b32.xlu0 %v3558_v21, %s3258_s9  ;;  %v3682_v8 = vld [vmem:[%s4168_s1] sm:$0xff]   ;;  %v3227_v21 = vld [vmem:[%s4168_s1 + $0x8] sm:$0xff]  }
  0xd0   :  { %366 = vmatprep.subr.bf16.mxu1 %v3335_v9  ;;  %392 = vmatprep.mubr.bf16.mxu1 %v3252_v12  ;;  %v3674_v5 = vpop.permute.xlu0 %1045  ;;  %v1042_v6 = vpop.permute.xlu1 %1041  ;;  %v3687_v9 = vld [vmem:[%s4168_s1 + $0x78] sm:$0xff]  }
  0xd1   :  { %894 = vmatprep.mubr.bf16.mxu0 %v3252_v12  ;;  %1085 = vmatpush1.bf16.msra.mxu0 %v1052_v60  ;;  %v1055_v61 = vsel %vm1047_vm4, %v1044_v59, %v3674_v5  ;;  %v1054_v13 = vsel %vm1047_vm4, %v1042_v6, %v1044_v59 }
  0xd2   :  { %1086 = vmatprep.subr.bf16.mxu0 %v1055_v61  ;;  %2137 = vrot.lane.b32.xlu1 %v3215_v50, %s3258_s9 }
  0xd3   :  { %367 = vmatpush1.bf16.msra.mxu1 %v3347_v11  ;;  %2129 = vrot.lane.b32.xlu0 %v3222_v43, %s3258_s9 }
  0xd4   :  { %2855 = vmatprep.subr.bf16.mxu1 %v3293_v2  ;;  %v1274_v14 = vpop.permute.xlu0 %1273  ;;  %v3694_v16 = vpop.permute.xlu1 %1275 }
  0xd5   :  { %1087 = vmatpush1.bf16.msra.mxu0 %v1054_v13  ;;  %v1297_v17 = vsel %vm1295_vm5, %v1274_v14, %v3694_v16 }
  0xd6   :  { %2571 = vmatmul.mubr.msk.bf16.vlgmr.msra.gmra.mrb[0].mxu1 %vm165_vm2, %v3682_v8  ;;  %2614 = vmatmul.mubr.msk.bf16.gmra.mrb[12].mxu0 %vm165_vm2, %v3687_v9 }
  0xd7   :  { %2856 = vmatpush3.bf16.msra.mxu1 %v3293_v2  ;;  %402 = vmatprep.mubr.bf16.mxu1 %v3252_v12 }
  0xd8   :  { %2857 = vmatprep.subr.bf16.mxu1 %v3305_v4  ;;  %1112 = vmatprep.mubr.bf16.mxu0 %v3252_v12  ;;  %v1272_v11 = vpop.permute.xlu0 %1271  ;;  %v1280_v18 = vpop.permute.xlu1 %1279 }
  0xd9   :  { %1328 = vmatprep.subr.bf16.mxu0 %v1297_v17  ;;  %v1296_v25 = vsel %vm1295_vm5, %v1272_v11, %v1274_v14 }
  0xdb   :  { %2858 = vmatpush3.bf16.msra.mxu1 %v3305_v4 }
  0xdc   :  { %2859 = vmatprep.subr.bf16.mxu1 %v3321_v7  ;;  %v3716_v2 = vpop.permute.xlu0 %1281  ;;  %v1278_v23 = vpop.permute.xlu1 %1277 }
  0xdd   :  { %v1299_v26 = vsel %vm1295_vm5, %v1280_v18, %v3716_v2  ;;  %v1298_v30 = vsel %vm1295_vm5, %v1278_v23, %v1280_v18  ;;  %v3835_v18 = vld [vmem:[%s4168_s1 + $0xb0] sm:$0xff]  }
  0xde   :  { %2572 = vmatmul.mubr.msk.bf16.gmra.mrb[4].mxu1 %vm165_vm2, %v3227_v21  ;;  %2631 = vmatmul.mubr.msk.bf16.vlgmr.msra.gmra.mrb[0].mxu0 %vm165_vm2, %v3712_v22 }
  0xdf   :  { %2860 = vmatpush3.bf16.msra.mxu1 %v3321_v7  ;;  %412 = vmatprep.mubr.bf16.mxu1 %v3252_v12  ;;  %v3737_v7 = vld [vmem:[%s4168_s1 + $0x88] sm:$0xff]  }
  0xe0   :  { %2861 = vmatprep.subr.bf16.mxu1 %v3341_v10  ;;  %1122 = vmatprep.mubr.bf16.mxu0 %v3252_v12  ;;  %v1286_v4 = vpop.permute.xlu0 %1285  ;;  %v3728_v28 = vpop.permute.xlu1 %1287 }
  0xe1   :  { %1329 = vmatpush1.bf16.msra.mxu0 %v1296_v25  ;;  %v1301_v35 = vsel %vm1295_vm5, %v1286_v4, %v3728_v28 }
  0xe2   :  { %1330 = vmatprep.subr.bf16.mxu0 %v1299_v26 }
  0xe3   :  { %2862 = vmatpush3.bf16.msra.mxu1 %v3341_v10 }
  0xe4   :  { %2871 = vmatprep.subr.bf16.mxu1 %v3403_v15  ;;  %v1284_v32 = vpop.permute.xlu0 %1283  ;;  %v1292_v34 = vpop.permute.xlu1 %1291 }
  0xe5   :  { %1331 = vmatpush1.bf16.msra.mxu0 %v1298_v30  ;;  %v1300_v37 = vsel %vm1295_vm5, %v1284_v32, %v1286_v4  ;;  %v3923_v32 = vld [vmem:[%s4168_s1 + $0xd0] sm:$0xff]  }
  0xe6   :  { %2573 = vmatmul.mubr.msk.bf16.gmra.mrb[8].mxu1 %vm165_vm2, %v3229_v31  ;;  %2632 = vmatmul.mubr.msk.bf16.gmra.mrb[4].mxu0 %vm165_vm2, %v3737_v7 }
  0xe7   :  { %422 = vmatprep.mubr.bf16.mxu1 %v3252_v12  ;;  %1132 = vmatprep.mubr.bf16.mxu0 %v3252_v12 }
  0xe8   :  { %v3749_v10 = vpop.permute.xlu0 %1293  ;;  %1332 = vmatprep.subr.bf16.mxu0 %v1301_v35  ;;  %v1290_v38 = vpop.permute.xlu1 %1289 }
  0xe9   :  { %1333 = vmatpush1.bf16.msra.mxu0 %v1300_v37  ;;  %v1303_v0 = vsel %vm1295_vm5, %v1292_v34, %v3749_v10  ;;  %v1302_v43 = vsel %vm1295_vm5, %v1290_v38, %v1292_v34  ;;  %v3945_v38 = vld [vmem:[%s4168_s1 + $0xd8] sm:$0xff]  }
  0xea   :  { %1334 = vmatprep.subr.bf16.mxu0 %v1303_v0  ;;  %v2338_v0 = vld [vmem:[%s4169_s2] sm:$0xff] }
  0xeb   :  { %2348 = vperm.xlu0 %3184, %v2338_v0  }
  0xec   :  { %v1522_v45 = vpop.permute.xlu0 %1521 }
  0xed   :  { %v3762_v46 = vpop.permute.xlu1 %1523  ;;  %1335 = vmatpush1.bf16.msra.mxu0 %v1302_v43 }
  0xee   :  { %2574 = vmatmul.mubr.msk.bf16.gmra.mrb[12].mxu1 %vm165_vm2, %v3231_v39  ;;  %2633 = vmatmul.mubr.msk.bf16.gmra.mrb[8].mxu0 %vm165_vm2, %v3759_v41  ;;  %v1545_v47 = vsel %vm1543_vm6, %v1522_v45, %v3762_v46 }
  0xef   :  { %2863 = vmatprep.mubr.msk.bf16.mxu1 %vm165_vm2, %v3682_v8  ;;  %1142 = vmatprep.mubr.bf16.mxu0 %v3252_v12 }
  0xf0   :  { %v1520_v48 = vpop.permute.xlu0 %1519  ;;  %1576 = vmatprep.subr.bf16.mxu0 %v1545_v47 }
  0xf1   :  { %v1528_v50 = vpop.permute.xlu1 %1527  ;;  %v1544_v60 = vsel %vm1543_vm6, %v1520_v48, %v1522_v45  ;;  %v3242_v45 = vld [vmem:[%s4168_s1 + $0xe0] sm:$0xff]  }
  0xf4   :  { %v3777_v54 = vpop.permute.xlu0 %1529 }
  0xf5   :  { %v1526_v55 = vpop.permute.xlu1 %1525  ;;  %v1547_v6 = vsel %vm1543_vm6, %v1528_v50, %v3777_v54 }
  0xf6   :  { %2864 = vmatmul.mubr.msk.bf16.vlgmr.msra.gmra.mrb[16].mxu1 %vm165_vm2, %v3227_v21  ;;  %2634 = vmatmul.mubr.msk.bf16.gmra.mrb[12].mxu0 %vm165_vm2, %v3775_v53  ;;  %v1546_v8 = vsel %vm1543_vm6, %v1526_v55, %v1528_v50  ;;  %v2342_v50 = vld [vmem:[%s4169_s2 + $0x20] sm:$0xff] }
  0xf7   :  { %2872 = vmatpush3.bf16.msra.mxu1 %v3403_v15  ;;  %2867 = vmatprep.mubr.msk.bf16.mxu1 %vm165_vm2, %v3229_v31 }
  0xf8   :  { %2873 = vmatprep.subr.bf16.mxu1 %v3412_v19  ;;  %1360 = vmatprep.mubr.bf16.mxu0 %v3252_v12  ;;  %v1534_v56 = vpop.permute.xlu0 %1533 }
  0xf9   :  { %v3786_v1 = vpop.permute.xlu1 %1535 }
  0xfa   :  { %v1549_v14 = vsel %vm1543_vm6, %v1534_v56, %v3786_v1 }
  0xfb   :  { %2874 = vmatpush3.bf16.msra.mxu1 %v3412_v19 }
  0xfc   :  { %2875 = vmatprep.subr.bf16.mxu1 %v3421_v24  ;;  %v1532_v59 = vpop.permute.xlu0 %1531 }
  0xfd   :  { %v1540_v15 = vpop.permute.xlu1 %1539  ;;  %v1548_v17 = vsel %vm1543_vm6, %v1532_v59, %v1534_v56 }
  0xfe   :  { %2868 = vmatmul.mubr.msk.bf16.gmra.mrb[20].mxu1 %vm165_vm2, %v3231_v39  ;;  %2651 = vmatmul.mubr.msk.bf16.vlgmr.msra.gmra.mrb[0].mxu0 %vm165_vm2, %v3791_v3  ;;  %v2339_v39 = vld [vmem:[%s4169_s2 + $0x8] sm:$0xff] }
  0xff   :  { %2876 = vmatpush3.bf16.msra.mxu1 %v3421_v24  ;;  %2879 = vmatprep.mubr.msk.bf16.mxu1 %vm165_vm2, %v3444_v33  ;;  %v3812_v24 = vld [vmem:[%s4168_s1 + $0xa8] sm:$0xff]  }
 0x100   :  { %2877 = vmatprep.subr.bf16.mxu1 %v3434_v29  ;;  %1370 = vmatprep.mubr.bf16.mxu0 %v3252_v12  ;;  %v3806_v19 = vpop.permute.xlu0 %1541 }
 0x101   :  { %1577 = vmatpush1.bf16.msra.mxu0 %v1544_v60  ;;  %v1538_v61 = vpop.permute.xlu1 %1537  ;;  %2353 = vperm.xlu1 %3185, %v2339_v39  }
 0x102   :  { %1578 = vmatprep.subr.bf16.mxu0 %v1547_v6  ;;  %v1550_v21 = vsel %vm1543_vm6, %v1538_v61, %v1540_v15 }
 0x103   :  { %2878 = vmatpush3.bf16.msra.mxu1 %v3434_v29 }
 0x104   :  { %2887 = vmatprep.subr.bf16.mxu1 %v3524_v62  ;;  %v1850_v33 = vpop.permute.xlu0 %1849 }
 0x105   :  { %v3816_v13 = vpop.permute.xlu1 %1851  ;;  %1579 = vmatpush1.bf16.msra.mxu0 %v1546_v8 }
 0x106   :  { %2880 = vmatmul.mubr.msk.bf16.vlgmr.msra.gmra.mrb[16].mxu1 %vm165_vm2, %v3469_v42  ;;  %2652 = vmatmul.mubr.msk.bf16.gmra.mrb[4].mxu0 %vm165_vm2, %v3812_v24  ;;  %v1551_v42 = vsel %vm1543_vm6, %v1540_v15, %v3806_v19 }
 0x107   :  { %2888 = vmatpush3.bf16.msra.mxu1 %v3524_v62  ;;  %2883 = vmatprep.mubr.msk.bf16.mxu1 %vm165_vm2, %v3498_v52 }
 0x108   :  { %2889 = vmatprep.subr.bf16.mxu1 %v3551_v20  ;;  %1380 = vmatprep.mubr.bf16.mxu0 %v3252_v12  ;;  %v1848_v29 = vpop.permute.xlu0 %1847 }
 0x109   :  { %v1858_v11 = vpop.permute.xlu1 %1857  ;;  %1580 = vmatprep.subr.bf16.mxu0 %v1549_v14 }
 0x10a   :  { %1581 = vmatpush1.bf16.msra.mxu0 %v1548_v17 }
 0x10b   :  { %2890 = vmatpush3.bf16.msra.mxu1 %v3551_v20  ;;  %1582 = vmatprep.subr.bf16.mxu0 %v1551_v42  ;;  %v1881_v20 = vsel %vm1879_vm7, %v1850_v33, %v3816_v13 }
 0x10c   :  { %2891 = vmatprep.subr.bf16.mxu1 %v3567_v27  ;;  %v3839_v52 = vpop.permute.xlu0 %1859 }
 0x10d   :  { %v1856_v62 = vpop.permute.xlu1 %1855 }
 0x10e   :  { %2884 = vmatmul.mubr.msk.bf16.gmra.mrb[20].mxu1 %vm165_vm2, %v3529_v63  ;;  %2653 = vmatmul.mubr.msk.bf16.gmra.mrb[8].mxu0 %vm165_vm2, %v3835_v18  ;;  %v3858_v63 = vld [vmem:[%s4168_s1 + $0xb8] sm:$0xff]  }
 0x10f   :  { %2892 = vmatpush3.bf16.msra.mxu1 %v3567_v27  ;;  %2895 = vmatprep.mubr.msk.bf16.mxu1 %vm165_vm2, %v3602_v40 }
 0x110   :  { %2893 = vmatprep.subr.bf16.mxu1 %v3588_v36  ;;  %1390 = vmatprep.mubr.bf16.mxu0 %v3252_v12  ;;  %v1866_v23 = vpop.permute.xlu0 %1865 }
 0x111   :  { %v3853_v25 = vpop.permute.xlu1 %1867  ;;  %1583 = vmatpush1.bf16.msra.mxu0 %v1550_v21 }
 0x112   :  { %1916 = vmatprep.subr.bf16.mxu0 %v1881_v20  ;;  %v1887_v30 = vsel %vm1879_vm7, %v1866_v23, %v3853_v25 }
 0x113   :  { %2894 = vmatpush3.bf16.msra.mxu1 %v3588_v36  ;;  %v3874_v36 = vld [vmem:[%s4168_s1 + $0xc0] sm:$0xff]  }
 0x114   :  { %2903 = vmatprep.subr.bf16.mxu1 %v3609_v44  ;;  %v1864_v27 = vpop.permute.xlu0 %1863 }
 0x115   :  { %v1874_v40 = vpop.permute.xlu1 %1873  ;;  %v1886_v31 = vsel %vm1879_vm7, %v1864_v27, %v1866_v23  ;;  %v3246_v23 = vld [vmem:[%s4168_s1 + $0x100] sm:$0xff]  }
 0x116   :  { %2896 = vmatmul.mubr.msk.bf16.vlgmr.msra.gmra.mrb[16].mxu1 %vm165_vm2, %v3628_v49  ;;  %2654 = vmatmul.mubr.msk.bf16.gmra.mrb[12].mxu0 %vm165_vm2, %v3858_v63 }
 0x117   :  { %2904 = vmatpush3.bf16.msra.mxu1 %v3609_v44  ;;  %2899 = vmatprep.mubr.msk.bf16.mxu1 %vm165_vm2, %v3656_v58  ;;  %v1880_v44 = vsel %vm1879_vm7, %v1848_v29, %v1850_v33  ;;  %v1884_v58 = vsel %vm1879_vm7, %v1858_v11, %v3839_v52 }
 0x118   :  { %2905 = vmatprep.subr.bf16.mxu1 %v3635_v51  ;;  %1608 = vmatprep.mubr.bf16.mxu0 %v3252_v12  ;;  %v3876_v26 = vpop.permute.xlu0 %1875 }
 0x11a   :  { %v1872_v49 = vpop.permute.xlu1 %1871 }
 0x11b   :  { %2906 = vmatpush3.bf16.msra.mxu1 %v3635_v51  ;;  %v1889_v34 = vsel %vm1879_vm7, %v1872_v49, %v1874_v40 }
 0x11c   :  { %2907 = vmatprep.subr.bf16.mxu1 %v3651_v57  ;;  %v3892_v51 = vpop.permute.xlu0 %2109 }
 0x11e   :  { %2900 = vmatmul.mubr.msk.bf16.gmra.mrb[20].mxu1 %vm165_vm2, %v3687_v9  ;;  %2671 = vmatmul.mubr.msk.bf16.vlgmr.msra.gmra.mrb[0].mxu0 %vm165_vm2, %v3874_v36  ;;  %v1883_v9 = vsel %vm1879_vm7, %v1856_v62, %v1858_v11  ;;  %v3895_v4 = vpop.permute.xlu1 %2111 }
 0x11f   :  { %2908 = vmatpush3.bf16.msra.mxu1 %v3651_v57  ;;  %2911 = vmatprep.mubr.msk.bf16.mxu1 %vm165_vm2, %v3712_v22  ;;  %v3900_v57 = vld [vmem:[%s4168_s1 + $0xc8] sm:$0xff]  }
 0x120   :  { %2909 = vmatprep.subr.bf16.mxu1 %v3674_v5  ;;  %1618 = vmatprep.mubr.bf16.mxu0 %v3252_v12 }
 0x121   :  { %1917 = vmatpush1.bf16.msra.mxu0 %v1880_v44 }
 0x122   :  { %1918 = vmatprep.subr.bf16.mxu0 %v1884_v58 }
 0x123   :  { %2910 = vmatpush3.bf16.msra.mxu1 %v3674_v5  ;;  %v2108_v22 = vpop.permute.xlu0 %2107  ;;  %v3915_v5 = vpop.permute.xlu1 %1853 }
 0x124   :  { %2919 = vmatprep.subr.bf16.mxu1 %v3694_v16  ;;  %v2140_v47 = vsel %vm2139_vm8, %v2108_v22, %v3892_v51  ;;  %v1882_v59 = vsel %vm1879_vm7, %v3816_v13, %v3915_v5  ;;  %v3244_v13 = vld [vmem:[%s4168_s1 + $0xf0] sm:$0xff]  }
 0x125   :  { %1919 = vmatpush1.bf16.msra.mxu0 %v1883_v9 }
 0x126   :  { %2912 = vmatmul.mubr.msk.bf16.vlgmr.msra.gmra.mrb[16].mxu1 %vm165_vm2, %v3737_v7  ;;  %2672 = vmatmul.mubr.msk.bf16.gmra.mrb[4].mxu0 %vm165_vm2, %v3900_v57  ;;  %v1890_v7 = vsel %vm1879_vm7, %v1874_v40, %v3876_v26  ;;  %v3247_v40 = vld [vmem:[%s4168_s1 + $0x108] sm:$0xff]  }
 0x127   :  { %2920 = vmatpush3.bf16.msra.mxu1 %v3694_v16  ;;  %2915 = vmatprep.mubr.msk.bf16.mxu1 %vm165_vm2, %v3759_v41  ;;  %v2118_v16 = vpop.permute.xlu0 %2117  ;;  %v3928_v35 = vpop.permute.xlu1 %2119  ;;  %v2340_v41 = vld [vmem:[%s4169_s2 + $0x10] sm:$0xff] }
 0x128   :  { %2921 = vmatprep.subr.bf16.mxu1 %v3716_v2  ;;  %1628 = vmatprep.mubr.bf16.mxu0 %v3252_v12 }
 0x129   :  { %1920 = vmatprep.subr.bf16.mxu0 %v1887_v30  ;;  %2358 = vperm.xlu1 %3185, %v2340_v41  }
 0x12a   :  { %1921 = vmatpush1.bf16.msra.mxu0 %v1886_v31 }
 0x12b   :  { %2922 = vmatpush3.bf16.msra.mxu1 %v3716_v2  ;;  %1922 = vmatprep.subr.bf16.mxu0 %v1890_v7  ;;  %v2141_v2 = vsel %vm2139_vm8, %v3892_v51, %v3895_v4  ;;  %v2116_v37 = vpop.permute.xlu0 %2115 }
 0x12c   :  { %2923 = vmatprep.subr.bf16.mxu1 %v3728_v28  ;;  %v2143_v56 = vsel %vm2139_vm8, %v2116_v37, %v2118_v16 }
 0x12d   :  { %2368 = vperm.xlu1 %3185, %v2342_v50  }
 0x12e   :  { %2916 = vmatmul.mubr.msk.bf16.gmra.mrb[20].mxu1 %vm165_vm2, %v3775_v53  ;;  %2673 = vmatmul.mubr.msk.bf16.gmra.mrb[8].mxu0 %vm165_vm2, %v3923_v32  ;;  %v2144_v53 = vsel %vm2139_vm8, %v2118_v16, %v3928_v35 }
 0x12f   :  { %2924 = vmatpush3.bf16.msra.mxu1 %v3728_v28  ;;  %2927 = vmatprep.mubr.msk.bf16.mxu1 %vm165_vm2, %v3791_v3  ;;  %v1862_v28 = vpop.permute.xlu1 %1861  ;;  %v2344_v3 = vld [vmem:[%s4169_s2 + $0x30] sm:$0xff] }
 0x130   :  { %2925 = vmatprep.subr.bf16.mxu1 %v3749_v10  ;;  %1638 = vmatprep.mubr.bf16.mxu0 %v3252_v12  ;;  %v1885_v8 = vsel %vm1879_vm7, %v3839_v52, %v1862_v28 }
 0x131   :  { %1923 = vmatpush1.bf16.msra.mxu0 %v1889_v34  ;;  %2378 = vperm.xlu1 %3185, %v2344_v3  }
 0x132   :  { %2176 = vmatprep.subr.bf16.mxu0 %v2141_v2 }
 0x133   :  { %2926 = vmatpush3.bf16.msra.mxu1 %v3749_v10  ;;  %v2126_v10 = vpop.permute.xlu0 %2125  ;;  %v3967_v43 = vpop.permute.xlu1 %2127 }
 0x134   :  { %2935 = vmatprep.subr.bf16.mxu1 %v3762_v46  ;;  %v2147_v6 = vsel %vm2139_vm8, %v2126_v10, %v3967_v43 }
 0x136   :  { %2928 = vmatmul.mubr.msk.bf16.vlgmr.msra.gmra.mrb[16].mxu1 %vm165_vm2, %v3812_v24  ;;  %2674 = vmatmul.mubr.msk.bf16.gmra.mrb[12].mxu0 %vm165_vm2, %v3945_v38 }
 0x137   :  { %2936 = vmatpush3.bf16.msra.mxu1 %v3762_v46  ;;  %2931 = vmatprep.mubr.msk.bf16.mxu1 %vm165_vm2, %v3835_v18  ;;  %v2341_v46 = vld [vmem:[%s4169_s2 + $0x18] sm:$0xff]  ;;  %v2124_v48 = vpop.permute.xlu0 %2123  ;;  %v1870_v55 = vpop.permute.xlu1 %1869 }
 0x138   :  { %2937 = vmatprep.subr.bf16.mxu1 %v3777_v54  ;;  %1948 = vmatprep.mubr.bf16.mxu0 %v3252_v12  ;;  %v2146_v61 = vsel %vm2139_vm8, %v2124_v48, %v2126_v10  ;;  %v1888_v14 = vsel %vm1879_vm7, %v3853_v25, %v1870_v55  ;;  %v3245_v18 = vld [vmem:[%s4168_s1 + $0xf8] sm:$0xff]  }
 0x139   :  { %2363 = vperm.xlu0 %3184, %v2341_v46  }
 0x13b   :  { %2938 = vmatpush3.bf16.msra.mxu1 %v3777_v54  ;;  %v2343_v54 = vld [vmem:[%s4169_s2 + $0x28] sm:$0xff]  ;;  %v2134_v15 = vpop.permute.xlu0 %2133  ;;  %v2136_v60 = vpop.permute.xlu1 %2135 }
 0x13c   :  { %2939 = vmatprep.subr.bf16.mxu1 %v3786_v1  ;;  %v2150_v24 = vsel %vm2139_vm8, %v2134_v15, %v2136_v60 }
 0x13d   :  { %2373 = vperm.xlu0 %3184, %v2343_v54  }
 0x13e   :  { %2932 = vmatmul.mubr.msk.bf16.gmra.mrb[20].mxu1 %vm165_vm2, %v3858_v63  ;;  %2707 = vmatmul.mubr.msk.bf16.vlgmr.msra.gmra.mrb[0].mxu0 %vm165_vm2, %v3242_v45 }
 0x13f   :  { %2940 = vmatpush3.bf16.msra.mxu1 %v3786_v1  ;;  %2943 = vmatprep.mubr.msk.bf16.mxu1 %vm165_vm2, %v3874_v36  ;;  %v3243_v1 = vld [vmem:[%s4168_s1 + $0xe8] sm:$0xff]   ;;  %v2132_v33 = vpop.permute.xlu0 %2131  ;;  %v1878_v17 = vpop.permute.xlu1 %1877  ;;  %v3248_v36 = vld [vmem:[%s4168_s1 + $0x110] sm:$0xff]  }
 0x140   :  { %2941 = vmatprep.subr.bf16.mxu1 %v3806_v19  ;;  %1958 = vmatprep.mubr.bf16.mxu0 %v3252_v12  ;;  %v2149_v29 = vsel %vm2139_vm8, %v2132_v33, %v2134_v15  ;;  %v1891_v42 = vsel %vm1879_vm7, %v3876_v26, %v1878_v17  ;;  %v3249_v26 = vld [vmem:[%s4168_s1 + $0x118] sm:$0xff]  }
 0x141   :  { %2177 = vmatpush1.bf16.msra.mxu0 %v2140_v47 }
 0x142   :  { %2178 = vmatprep.subr.bf16.mxu0 %v2144_v53 }
 0x143   :  { %2942 = vmatpush3.bf16.msra.mxu1 %v3806_v19  ;;  %v2345_v19 = vld [vmem:[%s4169_s2 + $0x38] sm:$0xff]  ;;  %v2114_v11 = vpop.permute.xlu0 %2113  ;;  %v2122_v62 = vpop.permute.xlu1 %2121 }
 0x144   :  { %2951 = vmatprep.subr.bf16.mxu1 %v1882_v59  ;;  %2383 = vperm.xlu0 %3184, %v2345_v19   ;;  %v2142_v52 = vsel %vm2139_vm8, %v3895_v4, %v2114_v11  ;;  %v2145_v21 = vsel %vm2139_vm8, %v3928_v35, %v2122_v62 }
 0x145   :  { %2179 = vmatpush1.bf16.msra.mxu0 %v2143_v56 }
 0x146   :  { %2944 = vmatmul.mubr.msk.bf16.vlgmr.msra.gmra.mrb[16].mxu1 %vm165_vm2, %v3900_v57  ;;  %2708 = vmatmul.mubr.msk.bf16.gmra.mrb[4].mxu0 %vm165_vm2, %v3243_v1 }
 0x147   :  { %2952 = vmatpush3.bf16.msra.mxu1 %v1882_v59  ;;  %2947 = vmatprep.mubr.msk.bf16.mxu1 %vm165_vm2, %v3923_v32  ;;  %v2130_v20 = vpop.permute.xlu0 %2129  ;;  %v2138_v63 = vpop.permute.xlu1 %2137 }
 0x148   :  { %2953 = vmatprep.subr.bf16.mxu1 %v1885_v8  ;;  %1968 = vmatprep.mubr.bf16.mxu0 %v3252_v12  ;;  %v2148_v25 = vsel %vm2139_vm8, %v3967_v43, %v2130_v20  ;;  %v2151_v27 = vsel %vm2139_vm8, %v2136_v60, %v2138_v63 }
 0x149   :  { %2180 = vmatprep.subr.bf16.mxu0 %v2147_v6 }
 0x14a   :  { %2181 = vmatpush1.bf16.msra.mxu0 %v2146_v61 }
 0x14b   :  { %2954 = vmatpush3.bf16.msra.mxu1 %v1885_v8  ;;  %2182 = vmatprep.subr.bf16.mxu0 %v2150_v24 }
 0x14c   :  { %2955 = vmatprep.subr.bf16.mxu1 %v1888_v14 }
 0x14e   :  { %2948 = vmatmul.mubr.msk.bf16.gmra.mrb[20].mxu1 %vm165_vm2, %v3945_v38  ;;  %2709 = vmatmul.mubr.msk.bf16.gmra.mrb[8].mxu0 %vm165_vm2, %v3244_v13 }
 0x14f   :  { %2956 = vmatpush3.bf16.msra.mxu1 %v1888_v14  ;;  %1978 = vmatprep.mubr.bf16.mxu0 %v3252_v12 }
 0x150   :  { %2957 = vmatprep.subr.bf16.mxu1 %v1891_v42  ;;  %2959 = vmatprep.mubr.msk.bf16.mxu1 %vm165_vm2, %v3242_v45 }
 0x151   :  { %2183 = vmatpush1.bf16.msra.mxu0 %v2149_v29 }
 0x153   :  { %2958 = vmatpush3.bf16.msra.mxu1 %v1891_v42 }
 0x154   :  { %2967 = vmatprep.subr.bf16.mxu1 %v2142_v52 }
 0x156   :  { %2710 = vmatmul.mubr.msk.bf16.gmra.mrb[12].mxu0 %vm165_vm2, %v3245_v18  ;;  %2960 = vmatmul.mubr.msk.bf16.vlgmr.msra.gmra.mrb[16].mxu1 %vm165_vm2, %v3243_v1 }
 0x157   :  { %2968 = vmatpush3.bf16.msra.mxu1 %v2142_v52  ;;  %2963 = vmatprep.mubr.msk.bf16.mxu1 %vm165_vm2, %v3244_v13 }
 0x158   :  { %2969 = vmatprep.subr.bf16.mxu1 %v2145_v21  ;;  %2208 = vmatprep.mubr.bf16.mxu0 %v3252_v12 }
 0x15b   :  { %2970 = vmatpush3.bf16.msra.mxu1 %v2145_v21 }
 0x15c   :  { %2971 = vmatprep.subr.bf16.mxu1 %v2148_v25 }
 0x15e   :  { %2964 = vmatmul.mubr.msk.bf16.gmra.mrb[20].mxu1 %vm165_vm2, %v3245_v18  ;;  %2727 = vmatmul.mubr.msk.bf16.vlgmr.msra.gmra.mrb[0].mxu0 %vm165_vm2, %v3246_v23 }
 0x15f   :  { %2972 = vmatpush3.bf16.msra.mxu1 %v2148_v25  ;;  %2218 = vmatprep.mubr.bf16.mxu0 %v3252_v12 }
 0x160   :  { %2973 = vmatprep.subr.bf16.mxu1 %v2151_v27  ;;  %2975 = vmatprep.mubr.msk.bf16.mxu1 %vm165_vm2, %v3246_v23 }
 0x163   :  { %2974 = vmatpush3.bf16.msra.mxu1 %v2151_v27 }
 0x166   :  { %2728 = vmatmul.mubr.msk.bf16.gmra.mrb[4].mxu0 %vm165_vm2, %v3247_v40  ;;  %2976 = vmatmul.mubr.msk.bf16.vlgmr.msra.gmra.mrb[16].mxu1 %vm165_vm2, %v3247_v40 }
 0x167   :  { %2228 = vmatprep.mubr.bf16.mxu0 %v3252_v12  ;;  %2979 = vmatprep.mubr.msk.bf16.mxu1 %vm165_vm2, %v3248_v36 }
 0x16a   :  { %v2349_v2 = vpop.permute.xlu0 %2348 }
 0x16e   :  { %2729 = vmatmul.mubr.msk.bf16.gmra.mrb[8].mxu0 %vm165_vm2, %v3248_v36  ;;  %2980 = vmatmul.mubr.msk.bf16.gmra.mrb[20].mxu1 %vm165_vm2, %v3249_v26 }
 0x16f   :  { %2238 = vmatprep.mubr.bf16.mxu0 %v3252_v12 }
 0x176   :  { %2730 = vmatmul.mubr.msk.bf16.gmra.mrb[12].mxu0 %vm165_vm2, %v3249_v26 }
 0x180   :  { %v2354_v35 = vpop.permute.xlu1 %2353 }
 0x1a8   :  { %v2359_v38 = vpop.permute.xlu1 %2358 }
 0x1a9   :  { %v394_v49 = vpop.f32.mrb[0].mxu1 }
 0x1aa   :  { %v396_v44 = vpop.f32.mrb[1].mxu1 }
 0x1ab   :  { %v398_v58 = vpop.f32.mrb[2].mxu1 }
 0x1ac   :  { %v400_v51 = vpop.f32.mrb[3].mxu1  ;;  %v4088_v1 = vpop.permute.xlu1 %2368 }
 0x1b1   :  { %v404_v9 = vpop.f32.mrb[4].mxu1 }
 0x1b2   :  { %v406_v4 = vpop.f32.mrb[5].mxu1 }
 0x1b3   :  { %v408_v57 = vpop.f32.mrb[6].mxu1 }
 0x1b4   :  { %v410_v22 = vpop.f32.mrb[7].mxu1 }
 0x1b8   :  { %v2364_v39 = vpop.permute.xlu0 %2363 }
 0x1b9   :  { %v4072_v30 = vpop.f32.mrb[8].mxu1 }
 0x1ba   :  { %v4074_v31 = vpop.f32.mrb[9].mxu1 }
 0x1bb   :  { %v4076_v5 = vpop.f32.mrb[10].mxu1 }
 0x1bc   :  { %v4078_v7 = vpop.f32.mrb[11].mxu1  ;;  %v4090_v3 = vpop.permute.xlu0 %2373 }
 0x1c1   :  { %v4080_v32 = vpop.f32.mrb[12].mxu1 }
 0x1c2   :  { %v4082_v12 = vpop.f32.mrb[13].mxu1 }
 0x1c3   :  { %v4084_v16 = vpop.f32.mrb[14].mxu1 }
 0x1c4   :  { %v4086_v34 = vpop.f32.mrb[15].mxu1 }
 0x231   :  { %v2210_v37 = vpop.f32.mrb[0].mxu0 }
 0x232   :  { %v2983_v28 = vadd.f32 %v2210_v37, %v394_v49  ;;  %v2212_v0 = vpop.f32.mrb[1].mxu0 }
 0x233   :  { %v2984_v10 = vadd.f32 %v2212_v0, %v396_v44  ;;  %v2214_v41 = vpop.f32.mrb[2].mxu0 }
 0x234   :  { %v2386_v43 = vadd.f32 %v2983_v28, %v2349_v2  ;;  %v2985_v45 = vadd.f32 %v2214_v41, %v398_v58  ;;  %v2216_v46 = vpop.f32.mrb[3].mxu0 }
 0x235   :  { %v2387_v47 = vadd.f32 %v2984_v10, %v2349_v2  ;;  %v2986_v48 = vadd.f32 %v2216_v46, %v400_v51 }
 0x236   :  { %v2410_v50 = vmax.f32 %v2386_v43, 0.0  ;;  %v2389_v53 = vadd.f32 %v2985_v45, %v2354_v35 }
 0x237   :  { %v2411_v54 = vmax.f32 %v2387_v47, 0.0  ;;  %v2390_v55 = vadd.f32 %v2986_v48, %v2354_v35 }
 0x238   :  { %v2413_v56 = vmax.f32 %v2389_v53, 0.0 }
 0x239   :  { %v2751_v59 = vpack.c.bf16 %v2411_v54, %v2410_v50  ;;  %v2414_v15 = vmax.f32 %v2390_v55, 0.0  ;;  %v2220_v60 = vpop.f32.mrb[4].mxu0  ;;  %v2977_v6 = vpop.f32.mrb[16].mxu1 }
 0x23a   :  { %v2987_v19 = vadd.f32 %v2220_v60, %v404_v9  ;;  %v2394_v61 = vadd.f32 %v2977_v6, %v2359_v38  ;;  %v2222_v8 = vpop.f32.mrb[5].mxu0  ;;  %v2283_v24 = vpop.f32.mrb[17].mxu1 }
 0x23b   :  { %2514 = vst [vmem:[%s4170_s3] sm:$0xff] %v2751_v59  ;;  %v2753_v33 = vpack.c.bf16 %v2414_v15, %v2413_v56  ;;  %v2988_v13 = vadd.f32 %v2222_v8, %v406_v4  ;;  %v2388_v14 = vadd.f32 %v2349_v2, %v2283_v24  ;;  %v2224_v17 = vpop.f32.mrb[6].mxu0  ;;  %v2978_v29 = vpop.f32.mrb[18].mxu1 }
 0x23c   :  { %v2392_v42 = vadd.f32 %v2987_v19, %v2359_v38  ;;  %v2418_v11 = vmax.f32 %v2394_v61, 0.0  ;;  %v2989_v18 = vadd.f32 %v2224_v17, %v408_v57  ;;  %v2397_v52 = vadd.f32 %v2978_v29, %v2364_v39  ;;  %v2226_v62 = vpop.f32.mrb[7].mxu0  ;;  %v2286_v21 = vpop.f32.mrb[19].mxu1 }
 0x23d   :  { %2517 = vst [vmem:[%s4170_s3 + $0xc] sm:$0xff] %v2753_v33  ;;  %v2393_v20 = vadd.f32 %v2988_v13, %v2359_v38  ;;  %v2412_v23 = vmax.f32 %v2388_v14, 0.0  ;;  %v2990_v25 = vadd.f32 %v2226_v62, %v410_v22  ;;  %v2391_v63 = vadd.f32 %v2354_v35, %v2286_v21  ;;  %v2379_v9 = vpop.permute.xlu1 %2378  ;;  %v4102_v2 = vpop.permute.xlu0 %2383 }
 0x23e   :  { %v2416_v27 = vmax.f32 %v2392_v42, 0.0  ;;  %v2756_v40 = vpack.c.bf16 %v2418_v11, %v2418_v11  ;;  %v2395_v36 = vadd.f32 %v2989_v18, %v2364_v39  ;;  %v2421_v26 = vmax.f32 %v2397_v52, 0.0 }
 0x23f   :  { %v2417_v49 = vmax.f32 %v2393_v20, 0.0  ;;  %v2752_v44 = vpack.c.bf16 %v2412_v23, %v2412_v23  ;;  %v2396_v58 = vadd.f32 %v2990_v25, %v2364_v39  ;;  %v2415_v51 = vmax.f32 %v2391_v63, 0.0 }
 0x240   :  { %2520 = vst.msk [vmem:[%s4170_s3 + $0x20] sm:$0xf] %vm2515_vm9, %v2756_v40  ;;  %v2419_v4 = vmax.f32 %v2395_v36, 0.0  ;;  %v2758_v57 = vpack.c.bf16 %v2421_v26, %v2421_v26 }
 0x241   :  { %v2755_v22 = vpack.c.bf16 %v2417_v49, %v2416_v27  ;;  %2516 = vst.msk [vmem:[%s4170_s3 + $0x8] sm:$0xf] %vm2515_vm9, %v2752_v44  ;;  %v2420_v35 = vmax.f32 %v2396_v58, 0.0  ;;  %v2754_v37 = vpack.c.bf16 %v2415_v51, %v2415_v51  ;;  %v2230_v38 = vpop.f32.mrb[8].mxu0  ;;  %v2981_v28 = vpop.f32.mrb[20].mxu1 }
 0x242   :  { %2522 = vst.msk [vmem:[%s4170_s3 + $0x2c] sm:$0xf] %vm2515_vm9, %v2758_v57  ;;  %v2991_v0 = vadd.f32 %v2230_v38, %v4072_v30  ;;  %v2406_v39 = vadd.f32 %v2981_v28, %v2379_v9  ;;  %v2232_v10 = vpop.f32.mrb[9].mxu0  ;;  %v2299_v41 = vpop.f32.mrb[21].mxu1 }
 0x243   :  { %2519 = vst [vmem:[%s4170_s3 + $0x18] sm:$0xff] %v2755_v22  ;;  %v2757_v43 = vpack.c.bf16 %v2420_v35, %v2419_v4  ;;  %2518 = vst.msk [vmem:[%s4170_s3 + $0x14] sm:$0xf] %vm2515_vm9, %v2754_v37  ;;  %v2992_v45 = vadd.f32 %v2232_v10, %v4074_v31  ;;  %v2400_v46 = vadd.f32 %v4088_v1, %v2299_v41  ;;  %v2234_v47 = vpop.f32.mrb[10].mxu0  ;;  %v2982_v48 = vpop.f32.mrb[22].mxu1 }
 0x244   :  { %v2398_v30 = vadd.f32 %v2991_v0, %v4088_v1  ;;  %v2430_v50 = vmax.f32 %v2406_v39, 0.0  ;;  %v2993_v53 = vadd.f32 %v2234_v47, %v4076_v5  ;;  %v2409_v54 = vadd.f32 %v2982_v48, %v4102_v2  ;;  %v2236_v55 = vpop.f32.mrb[11].mxu0  ;;  %v2302_v56 = vpop.f32.mrb[23].mxu1 }
 0x245   :  { %2521 = vst [vmem:[%s4170_s3 + $0x24] sm:$0xff] %v2757_v43  ;;  %v2399_v59 = vadd.f32 %v2992_v45, %v4088_v1  ;;  %v2424_v31 = vmax.f32 %v2400_v46, 0.0  ;;  %v2994_v15 = vadd.f32 %v2236_v55, %v4078_v7  ;;  %v2403_v60 = vadd.f32 %v4090_v3, %v2302_v56 }
 0x246   :  { %v2422_v6 = vmax.f32 %v2398_v30, 0.0  ;;  %v2764_v19 = vpack.c.bf16 %v2430_v50, %v2430_v50  ;;  %v2401_v61 = vadd.f32 %v2993_v53, %v4090_v3  ;;  %v2433_v5 = vmax.f32 %v2409_v54, 0.0 }
 0x247   :  { %v2423_v8 = vmax.f32 %v2399_v59, 0.0  ;;  %v2760_v24 = vpack.c.bf16 %v2424_v31, %v2424_v31  ;;  %v2402_v33 = vadd.f32 %v2994_v15, %v4090_v3  ;;  %v2427_v13 = vmax.f32 %v2403_v60, 0.0 }
 0x248   :  { %2528 = vst.msk [vmem:[%s4170_s3 + $0x50] sm:$0xf] %vm2515_vm9, %v2764_v19  ;;  %v2425_v1 = vmax.f32 %v2401_v61, 0.0  ;;  %v2766_v14 = vpack.c.bf16 %v2433_v5, %v2433_v5 }
 0x249   :  { %v2759_v7 = vpack.c.bf16 %v2423_v8, %v2422_v6  ;;  %2524 = vst.msk [vmem:[%s4170_s3 + $0x38] sm:$0xf] %vm2515_vm9, %v2760_v24  ;;  %v2426_v17 = vmax.f32 %v2402_v33, 0.0  ;;  %v2762_v29 = vpack.c.bf16 %v2427_v13, %v2427_v13  ;;  %v2240_v42 = vpop.f32.mrb[12].mxu0 }
 0x24a   :  { %2530 = vst.msk [vmem:[%s4170_s3 + $0x5c] sm:$0xf] %vm2515_vm9, %v2766_v14  ;;  %v2995_v3 = vadd.f32 %v2240_v42, %v4080_v32  ;;  %v2242_v11 = vpop.f32.mrb[13].mxu0 }
 0x24b   :  { %2523 = vst [vmem:[%s4170_s3 + $0x30] sm:$0xff] %v2759_v7  ;;  %v2761_v18 = vpack.c.bf16 %v2426_v17, %v2425_v1  ;;  %2526 = vst.msk [vmem:[%s4170_s3 + $0x44] sm:$0xf] %vm2515_vm9, %v2762_v29  ;;  %v2996_v52 = vadd.f32 %v2242_v11, %v4082_v12  ;;  %v2244_v62 = vpop.f32.mrb[14].mxu0 }
 0x24c   :  { %v2404_v21 = vadd.f32 %v2995_v3, %v2379_v9  ;;  %v2997_v20 = vadd.f32 %v2244_v62, %v4084_v16  ;;  %v2246_v23 = vpop.f32.mrb[15].mxu0 }
 0x24d   :  { %2525 = vst [vmem:[%s4170_s3 + $0x3c] sm:$0xff] %v2761_v18  ;;  %v2405_v32 = vadd.f32 %v2996_v52, %v2379_v9  ;;  %v2998_v25 = vadd.f32 %v2246_v23, %v4086_v34 }
 0x24e   :  { %v2428_v63 = vmax.f32 %v2404_v21, 0.0  ;;  %v2407_v27 = vadd.f32 %v2997_v20, %v4102_v2 }
 0x24f   :  { %v2429_v40 = vmax.f32 %v2405_v32, 0.0  ;;  %v2408_v36 = vadd.f32 %v2998_v25, %v4102_v2 }
 0x250   :  { %v2431_v26 = vmax.f32 %v2407_v27, 0.0 }
 0x251   :  { %v2763_v12 = vpack.c.bf16 %v2429_v40, %v2428_v63  ;;  %v2432_v49 = vmax.f32 %v2408_v36, 0.0 }
 0x253   :  { %2527 = vst [vmem:[%s4170_s3 + $0x48] sm:$0xff] %v2763_v12  ;;  %v2765_v16 = vpack.c.bf16 %v2432_v49, %v2431_v26 }
 0x255   :  { %2529 = vst [vmem:[%s4170_s3 + $0x54] sm:$0xff] %v2765_v16 }

// kernel: actor_critic_forward.7
= control target key start
LH: loop header
LB: loop body
LE: loop exit
PB: predicated region body
PF: predicated region fallthrough
CT: control target
= control target key end

     0   :  { %s5295_s15 = smov 0   ;;  %s5297_s16 = smov 0   ;;  %s5937_s0 = inlined_call_operand.vmem [shape: bf16[2,8320], index: 0, kind: input, shape index: {}]   ;;  %s5938_s1 = inlined_call_operand.vmem [shape: bf16[8320,512], index: 1, kind: input, shape index: {}]   ;;  %s5939_s2 = inlined_call_operand.vmem [shape: f32[1,512], index: 2, kind: input, shape index: {}]   ;;  %s5940_s3 = inlined_call_operand.vmem [shape: bf16[512,128], index: 3, kind: input, shape index: {}]   ;;  %s5941_s4 = inlined_call_operand.vmem [shape: f32[1,2,128], index: 4, kind: output, shape index: {}]  }
   0x1   :  { %s5299_s17 = smov 0  }
   0x2 LB: > { %s23_s18 = sadd.s32 1, %s5260_s16  ;;  %p4007_p0 = scmp.ge.s32.totalorder %s5264_s17, 1  ;;  %s5264_s17 = sphi %s5299_s17, %s14_s17   ;;  %s5260_s16 = sphi %s5297_s16, %s5943_s16   ;;  %s5256_s15 = sphi %s5295_s15, %s5942_s15  }
   0x3   : > { %p24_p1 = scmp.ge.s32.totalorder %s23_s18, 5  ;;  %p214_p2 = scmp.lt.s32.totalorder %s5264_s17, 6 }
   0x5   : > { %s5945_s18 = smov (%p24_p1, %s23_s18), 0  ;;  %p215_p3 = pnand %p4007_p0, %p214_p2 }
   0x6   : > { %s257_s19 = smul.u32 (!%p215_p3), 13, %s5256_s15  ;;  %p4010_p6 = scmp.ne.s32.totalorder (!%p215_p3), %s5256_s15, 0 }
   0x7   : > { %218 = sbr.rel (%p215_p3) target bundleno = 900 (0x384), region = 36 }
   0x8   : > { %s262_s20 = smul.u32 (!%p215_p3), 208, %s5256_s15  ;;  %p258_p4 = scmp.lt.s32.totalorder (!%p215_p3), %s257_s19, 64 }
   0xa   : > { %p264_p5 = scmp.lt.s32.totalorder (!%p215_p3), %s262_s20, 1039 }
   0xe   : > { %s5947_s19 = smov (!%p258_p4, %s257_s19), 64  ;;  %s5949_s20 = smov (!%p264_p5, %s262_s20), 1039 }
   0xf   : > { %s5320_s23 = scalar_lea.vmem %s5937_s0, %s5947_s19  ;;  %s4463_s24 = sshll.u32 %s5949_s20, 4  ;;  %v5266_v0 = vmov (!%p4010_p6), 0.0  }
  0x10   : > { %s5325_s27 = scalar_lea.vmem %s5938_s1, %s4463_s24  ;;  %293 = sbr.rel (%p4010_p6) target bundleno = 23 (0x17), region = 40  ;;  %294 = vst [vmem:[#allocation2] sm:$0xff] (!%p4010_p6), %v5266_v0 }
  0x17 PF: > { %v4584_v1 = vld [vmem:[%s5325_s27 + $0x4] ss:$16 sps:$4 sm:$0xff]   ;;  %v4586_v2 = vld [vmem:[%s5325_s27 + $0xc] ss:$16 sps:$4 sm:$0xff]   ;;  %v4588_v3 = vld [vmem:[%s5325_s27] ss:$16 sps:$4 sm:$0xff]   ;;  %v720_v39 = vlaneseq }
  0x18   : > { %2897 = vmatprep.subr.bf16.mxu0 %v4584_v1  ;;  %v4589_v4 = vld [vmem:[%s5325_s27 + $0x8] ss:$16 sps:$4 sm:$0xff]   ;;  %3184 = vmatprep.subr.bf16.mxu1 %v4586_v2  ;;  %v4590_v5 = vld [vmem:[%s5325_s27 + $0x24] ss:$16 sps:$4 sm:$0xff]   ;;  %v4592_v6 = vld [vmem:[%s5325_s27 + $0x2c] ss:$16 sps:$4 sm:$0xff]  }
  0x19   : > { %2898 = vmatpush1.bf16.msra.mxu0 %v4588_v3  ;;  %3185 = vmatpush1.bf16.msra.mxu1 %v4589_v4  ;;  %v4594_v7 = vld [vmem:[%s5325_s27 + $0x20] ss:$16 sps:$4 sm:$0xff]   ;;  %v4595_v8 = vld [vmem:[%s5325_s27 + $0x28] ss:$16 sps:$4 sm:$0xff]   ;;  %v4596_v9 = vld [vmem:[%s5325_s27 + $0x44] ss:$16 sps:$4 sm:$0xff]  }
  0x1a   : > { %2899 = vmatprep.subr.bf16.mxu0 %v4590_v5  ;;  %3186 = vmatprep.subr.bf16.mxu1 %v4592_v6  ;;  %v4598_v10 = vld [vmem:[%s5325_s27 + $0x4c] ss:$16 sps:$4 sm:$0xff]   ;;  %v4600_v11 = vld [vmem:[%s5325_s27 + $0x40] ss:$16 sps:$4 sm:$0xff]   ;;  %v4601_v12 = vld [vmem:[%s5325_s27 + $0x48] ss:$16 sps:$4 sm:$0xff]  }
  0x1b   : > { %v4602_v13 = vld [vmem:[%s5325_s27 + $0x64] ss:$16 sps:$4 sm:$0xff]   ;;  %v4604_v14 = vld [vmem:[%s5325_s27 + $0x6c] ss:$16 sps:$4 sm:$0xff]   ;;  %v4606_v15 = vld [vmem:[%s5325_s27 + $0x60] ss:$16 sps:$4 sm:$0xff]  }
  0x1c   : > { %v4607_v16 = vld [vmem:[%s5325_s27 + $0x68] ss:$16 sps:$4 sm:$0xff]   ;;  %v4608_v17 = vld [vmem:[%s5325_s27 + $0x84] ss:$16 sps:$4 sm:$0xff]   ;;  %v4610_v18 = vld [vmem:[%s5325_s27 + $0x8c] ss:$16 sps:$4 sm:$0xff]  }
  0x1d   : > { %2900 = vmatpush1.bf16.msra.mxu0 %v4594_v7  ;;  %3187 = vmatpush1.bf16.msra.mxu1 %v4595_v8  ;;  %v4612_v19 = vld [vmem:[%s5325_s27 + $0x80] ss:$16 sps:$4 sm:$0xff]   ;;  %v4613_v20 = vld [vmem:[%s5325_s27 + $0x88] ss:$16 sps:$4 sm:$0xff]   ;;  %v4614_v21 = vld [vmem:[%s5325_s27 + $0xa4] ss:$16 sps:$4 sm:$0xff]  }
  0x1e   : > { %2901 = vmatprep.subr.bf16.mxu0 %v4596_v9  ;;  %3188 = vmatprep.subr.bf16.mxu1 %v4598_v10  ;;  %v4616_v22 = vld [vmem:[%s5325_s27 + $0xac] ss:$16 sps:$4 sm:$0xff]   ;;  %v4618_v23 = vld [vmem:[%s5325_s27 + $0xa0] ss:$16 sps:$4 sm:$0xff]   ;;  %v4619_v24 = vld [vmem:[%s5325_s27 + $0xa8] ss:$16 sps:$4 sm:$0xff]  }
  0x1f   : > { %v4620_v25 = vld [vmem:[%s5325_s27 + $0xc4] ss:$16 sps:$4 sm:$0xff]   ;;  %v4622_v26 = vld [vmem:[%s5325_s27 + $0xcc] ss:$16 sps:$4 sm:$0xff]   ;;  %v4624_v27 = vld [vmem:[%s5325_s27 + $0xc0] ss:$16 sps:$4 sm:$0xff]  }
  0x20   : > { %v4625_v28 = vld [vmem:[%s5325_s27 + $0xc8] ss:$16 sps:$4 sm:$0xff]   ;;  %v4626_v29 = vld [vmem:[%s5325_s27 + $0xe4] ss:$16 sps:$4 sm:$0xff]   ;;  %v4628_v30 = vld [vmem:[%s5325_s27 + $0xec] ss:$16 sps:$4 sm:$0xff]  }
  0x21   : > { %2902 = vmatpush1.bf16.msra.mxu0 %v4600_v11  ;;  %3189 = vmatpush1.bf16.msra.mxu1 %v4601_v12  ;;  %v4630_v31 = vld [vmem:[%s5325_s27 + $0xe0] ss:$16 sps:$4 sm:$0xff]   ;;  %v4631_v32 = vld [vmem:[%s5325_s27 + $0xe8] ss:$16 sps:$4 sm:$0xff]   ;;  %v4632_v33 = vld [vmem:[%s5325_s27 + $0x104] ss:$16 sps:$4 sm:$0xff]  }
  0x22   : > { %2903 = vmatprep.subr.bf16.mxu0 %v4602_v13  ;;  %3190 = vmatprep.subr.bf16.mxu1 %v4604_v14  ;;  %v4634_v34 = vld [vmem:[%s5325_s27 + $0x10c] ss:$16 sps:$4 sm:$0xff]   ;;  %v4636_v35 = vld [vmem:[%s5325_s27 + $0x100] ss:$16 sps:$4 sm:$0xff]   ;;  %v4637_v36 = vld [vmem:[%s5325_s27 + $0x108] ss:$16 sps:$4 sm:$0xff]  }
  0x23   : > { %v5267_v37 = vmov 1966171168   ;;  %v4638_v40 = vld [vmem:[%s5325_s27 + $0x124] ss:$16 sps:$4 sm:$0xff]   ;;  %v4640_v41 = vld [vmem:[%s5325_s27 + $0x12c] ss:$16 sps:$4 sm:$0xff]  }
  0x24   : > { %v718_v38 = vunpack.c.l.s4 %v5267_v37  ;;  %v4642_v42 = vld [vmem:[%s5325_s27 + $0x120] ss:$16 sps:$4 sm:$0xff]   ;;  %v5367_v44 = vshrl.u32 %v720_v39, 7  ;;  %v4643_v45 = vld [vmem:[%s5325_s27 + $0x128] ss:$16 sps:$4 sm:$0xff]   ;;  %p4427_p7 = scmp.ne.s32.totalorder %s5256_s15, 4 }
  0x25   : > { %2904 = vmatpush1.bf16.msra.mxu0 %v4606_v15  ;;  %3191 = vmatpush1.bf16.msra.mxu1 %v4607_v16  ;;  %v4644_v46 = vld [vmem:[%s5325_s27 + $0x144] ss:$16 sps:$4 sm:$0xff]   ;;  %v4646_v47 = vld [vmem:[%s5325_s27 + $0x14c] ss:$16 sps:$4 sm:$0xff]   ;;  %v4648_v48 = vld [vmem:[%s5325_s27 + $0x140] ss:$16 sps:$4 sm:$0xff]  }
  0x26   : > { %2905 = vmatprep.subr.bf16.mxu0 %v4608_v17  ;;  %3192 = vmatprep.subr.bf16.mxu1 %v4610_v18  ;;  %v719_v43 = vunpack.c.0.s8 %v718_v38  ;;  %v4649_v49 = vld [vmem:[%s5325_s27 + $0x148] ss:$16 sps:$4 sm:$0xff]   ;;  %v4650_v51 = vld [vmem:[%s5325_s27 + $0x164] ss:$16 sps:$4 sm:$0xff]   ;;  %v4652_v52 = vld [vmem:[%s5325_s27 + $0x16c] ss:$16 sps:$4 sm:$0xff]  }
  0x27   : > { %v5380_v53 = vld [vmem:[%s5320_s23] sm:$0xff]  ;;  %v4655_v56 = vld [vmem:[%s5325_s27 + $0x168] ss:$16 sps:$4 sm:$0xff]   ;;  %v4658_v58 = vld [vmem:[%s5325_s27 + $0x18c] ss:$16 sps:$4 sm:$0xff]  }
  0x28   : > { %v5375_v50 = vsub.s32 %v719_v43, %v5367_v44  ;;  %v4654_v54 = vld [vmem:[%s5325_s27 + $0x160] ss:$16 sps:$4 sm:$0xff]   ;;  %v4656_v57 = vld [vmem:[%s5325_s27 + $0x184] ss:$16 sps:$4 sm:$0xff]   ;;  %v4661_v62 = vld [vmem:[%s5325_s27 + $0x188] ss:$16 sps:$4 sm:$0xff]  }
  0x29   : > { %2906 = vmatpush1.bf16.msra.mxu0 %v4612_v19  ;;  %3193 = vmatpush1.bf16.msra.mxu1 %v4613_v20  ;;  %v4660_v60 = vld [vmem:[%s5325_s27 + $0x180] ss:$16 sps:$4 sm:$0xff]   ;;  %v4662_v63 = vld [vmem:[%s5325_s27 + $0x1a4] ss:$16 sps:$4 sm:$0xff]   ;;  %v4664_v0 = vld [vmem:[%s5325_s27 + $0x1ac] ss:$16 sps:$4 sm:$0xff]  }
  0x2a   : > { %2907 = vmatprep.subr.bf16.mxu0 %v4614_v21  ;;  %3194 = vmatprep.subr.bf16.mxu1 %v4616_v22  ;;  %v723_v55 = vrot.slane %v5380_v53, %v5375_v50  ;;  %v4666_v1 = vld [vmem:[%s5325_s27 + $0x1a0] ss:$16 sps:$4 sm:$0xff]   ;;  %v4667_v2 = vld [vmem:[%s5325_s27 + $0x1a8] ss:$16 sps:$4 sm:$0xff]   ;;  %v4668_v3 = vld [vmem:[%s5325_s27 + $0x1c4] ss:$16 sps:$4 sm:$0xff]  }
  0x2b   : > { %v4670_v4 = vld [vmem:[%s5325_s27 + $0x1cc] ss:$16 sps:$4 sm:$0xff]   ;;  %v4672_v5 = vld [vmem:[%s5325_s27 + $0x1c0] ss:$16 sps:$4 sm:$0xff]   ;;  %v4673_v6 = vld [vmem:[%s5325_s27 + $0x1c8] ss:$16 sps:$4 sm:$0xff]  }
  0x2c   : > { %v731_v59 = vcombine.high %v723_v55, %v723_v55  ;;  %v4674_v7 = vld [vmem:[%s5325_s27 + $0x1e4] ss:$16 sps:$4 sm:$0xff]   ;;  %v4676_v8 = vld [vmem:[%s5325_s27 + $0x1ec] ss:$16 sps:$4 sm:$0xff]   ;;  %v4678_v9 = vld [vmem:[%s5325_s27 + $0x1e0] ss:$16 sps:$4 sm:$0xff]   ;;  %v5407_v14 = vrot.slane %v723_v55, %v5375_v50 }
  0x2d   : > { %2908 = vmatpush1.bf16.msra.mxu0 %v4618_v23  ;;  %3195 = vmatpush1.bf16.msra.mxu1 %v4619_v24  ;;  %v4679_v10 = vld [vmem:[%s5325_s27 + $0x1e8] ss:$16 sps:$4 sm:$0xff]   ;;  %v4682_v11 = vld [vmem:[%s5325_s27 + $0x204] ss:$16 sps:$4 sm:$0xff]   ;;  %v4685_v12 = vld [vmem:[%s5325_s27 + $0x20c] ss:$16 sps:$4 sm:$0xff]  }
  0x2e   : > { %2909 = vmatprep.subr.bf16.mxu0 %v4620_v25  ;;  %3196 = vmatprep.subr.bf16.mxu1 %v4622_v26  ;;  %v753_v61 = vrot.slane %v731_v59, %v5375_v50  ;;  %v4680_v13 = vld [vmem:[%s5325_s27 + $0x200] ss:$16 sps:$4 sm:$0xff]   ;;  %v4683_v15 = vld [vmem:[%s5325_s27 + $0x208] ss:$16 sps:$4 sm:$0xff]   ;;  %v4688_v16 = vld [vmem:[%s5325_s27 + $0x224] ss:$16 sps:$4 sm:$0xff]  }
  0x2f   : > { %v4691_v17 = vld [vmem:[%s5325_s27 + $0x22c] ss:$16 sps:$4 sm:$0xff]   ;;  %v4686_v19 = vld [vmem:[%s5325_s27 + $0x220] ss:$16 sps:$4 sm:$0xff]   ;;  %v4689_v20 = vld [vmem:[%s5325_s27 + $0x228] ss:$16 sps:$4 sm:$0xff]  }
  0x30   : > { %2929 = vmatprep.mubr.bf16.mxu0 %v753_v61  ;;  %3216 = vmatprep.mubr.bf16.mxu1 %v753_v61  ;;  %v763_v18 = vcombine.high %v753_v61, %v753_v61  ;;  %v4694_v21 = vld [vmem:[%s5325_s27 + $0x244] ss:$16 sps:$4 sm:$0xff]   ;;  %v4697_v22 = vld [vmem:[%s5325_s27 + $0x24c] ss:$16 sps:$4 sm:$0xff]   ;;  %v4692_v23 = vld [vmem:[%s5325_s27 + $0x240] ss:$16 sps:$4 sm:$0xff]  }
  0x31   : > { %2910 = vmatpush1.bf16.msra.mxu0 %v4624_v27  ;;  %3197 = vmatpush1.bf16.msra.mxu1 %v4625_v28  ;;  %v4695_v24 = vld [vmem:[%s5325_s27 + $0x248] ss:$16 sps:$4 sm:$0xff]   ;;  %v4700_v25 = vld [vmem:[%s5325_s27 + $0x264] ss:$16 sps:$4 sm:$0xff]   ;;  %v4703_v26 = vld [vmem:[%s5325_s27 + $0x26c] ss:$16 sps:$4 sm:$0xff]  }
  0x32   : > { %2911 = vmatprep.subr.bf16.mxu0 %v4626_v29  ;;  %3198 = vmatprep.subr.bf16.mxu1 %v4628_v30  ;;  %v4698_v27 = vld [vmem:[%s5325_s27 + $0x260] ss:$16 sps:$4 sm:$0xff]   ;;  %v4701_v28 = vld [vmem:[%s5325_s27 + $0x268] ss:$16 sps:$4 sm:$0xff]   ;;  %v4706_v29 = vld [vmem:[%s5325_s27 + $0x284] ss:$16 sps:$4 sm:$0xff]  }
  0x33   : > { %v4709_v30 = vld [vmem:[%s5325_s27 + $0x28c] ss:$16 sps:$4 sm:$0xff]   ;;  %v4718_v37 = vld [vmem:[%s5325_s27 + $0x2c4] ss:$16 sps:$4 sm:$0xff]   ;;  %v4716_v39 = vld [vmem:[%s5325_s27 + $0x2c0] ss:$16 sps:$4 sm:$0xff]  }
  0x34   : > { %v4721_v38 = vld [vmem:[%s5325_s27 + $0x2cc] ss:$16 sps:$4 sm:$0xff]   ;;  %v4722_v43 = vld [vmem:[%s5325_s27 + $0x2e0] ss:$16 sps:$4 sm:$0xff]   ;;  %v4737_v55 = vld [vmem:[%s5325_s27 + $0x328] ss:$16 sps:$4 sm:$0xff]  }
  0x35   : > { %2912 = vmatpush1.bf16.msra.mxu0 %v4630_v31  ;;  %3199 = vmatpush1.bf16.msra.mxu1 %v4631_v32  ;;  %v4704_v31 = vld [vmem:[%s5325_s27 + $0x280] ss:$16 sps:$4 sm:$0xff]   ;;  %v4707_v32 = vld [vmem:[%s5325_s27 + $0x288] ss:$16 sps:$4 sm:$0xff]   ;;  %v4751_v61 = vld [vmem:[%s5325_s27 + $0x36c] ss:$16 sps:$4 sm:$0xff]  }
  0x36   : > { %2913 = vmatprep.subr.bf16.mxu0 %v4632_v33  ;;  %3200 = vmatprep.subr.bf16.mxu1 %v4634_v34  ;;  %v4712_v33 = vld [vmem:[%s5325_s27 + $0x2a4] ss:$16 sps:$4 sm:$0xff]   ;;  %v4715_v34 = vld [vmem:[%s5325_s27 + $0x2ac] ss:$16 sps:$4 sm:$0xff]   ;;  %v4743_v59 = vld [vmem:[%s5325_s27 + $0x348] ss:$16 sps:$4 sm:$0xff]  }
  0x39   : > { %2914 = vmatpush1.bf16.msra.mxu0 %v4636_v35  ;;  %3201 = vmatpush1.bf16.msra.mxu1 %v4637_v36  ;;  %v4710_v35 = vld [vmem:[%s5325_s27 + $0x2a0] ss:$16 sps:$4 sm:$0xff]   ;;  %v4713_v36 = vld [vmem:[%s5325_s27 + $0x2a8] ss:$16 sps:$4 sm:$0xff]  }
  0x3a   : > { %2915 = vmatprep.subr.bf16.mxu0 %v4638_v40  ;;  %3202 = vmatprep.subr.bf16.mxu1 %v4640_v41  ;;  %v4719_v40 = vld [vmem:[%s5325_s27 + $0x2c8] ss:$16 sps:$4 sm:$0xff]   ;;  %v4724_v41 = vld [vmem:[%s5325_s27 + $0x2e4] ss:$16 sps:$4 sm:$0xff]  }
  0x3d   : > { %2916 = vmatpush1.bf16.msra.mxu0 %v4642_v42  ;;  %3203 = vmatpush1.bf16.msra.mxu1 %v4643_v45  ;;  %v4727_v42 = vld [vmem:[%s5325_s27 + $0x2ec] ss:$16 sps:$4 sm:$0xff]   ;;  %v4725_v45 = vld [vmem:[%s5325_s27 + $0x2e8] ss:$16 sps:$4 sm:$0xff]  }
  0x3e   : > { %2917 = vmatprep.subr.bf16.mxu0 %v4644_v46  ;;  %3204 = vmatprep.subr.bf16.mxu1 %v4646_v47  ;;  %v4730_v46 = vld [vmem:[%s5325_s27 + $0x304] ss:$16 sps:$4 sm:$0xff]   ;;  %v4733_v47 = vld [vmem:[%s5325_s27 + $0x30c] ss:$16 sps:$4 sm:$0xff]  }
  0x41   : > { %2918 = vmatpush1.bf16.msra.mxu0 %v4648_v48  ;;  %3205 = vmatpush1.bf16.msra.mxu1 %v4649_v49  ;;  %v4728_v48 = vld [vmem:[%s5325_s27 + $0x300] ss:$16 sps:$4 sm:$0xff]   ;;  %v4731_v49 = vld [vmem:[%s5325_s27 + $0x308] ss:$16 sps:$4 sm:$0xff]  }
  0x42   : > { %2919 = vmatprep.subr.bf16.mxu0 %v4650_v51  ;;  %3206 = vmatprep.subr.bf16.mxu1 %v4652_v52  ;;  %v4736_v51 = vld [vmem:[%s5325_s27 + $0x324] ss:$16 sps:$4 sm:$0xff]   ;;  %v4739_v52 = vld [vmem:[%s5325_s27 + $0x32c] ss:$16 sps:$4 sm:$0xff]  }
  0x45   : > { %2920 = vmatpush1.bf16.msra.mxu0 %v4654_v54  ;;  %3207 = vmatpush1.bf16.msra.mxu1 %v4655_v56  ;;  %v4734_v54 = vld [vmem:[%s5325_s27 + $0x320] ss:$16 sps:$4 sm:$0xff]   ;;  %v4742_v56 = vld [vmem:[%s5325_s27 + $0x344] ss:$16 sps:$4 sm:$0xff]  }
  0x46   : > { %2921 = vmatprep.subr.bf16.mxu0 %v4656_v57  ;;  %3208 = vmatprep.subr.bf16.mxu1 %v4658_v58  ;;  %v4745_v57 = vld [vmem:[%s5325_s27 + $0x34c] ss:$16 sps:$4 sm:$0xff]   ;;  %v4740_v58 = vld [vmem:[%s5325_s27 + $0x340] ss:$16 sps:$4 sm:$0xff]  }
  0x49   : > { %2922 = vmatpush1.bf16.msra.mxu0 %v4660_v60  ;;  %3209 = vmatpush1.bf16.msra.mxu1 %v4661_v62  ;;  %v4748_v60 = vld [vmem:[%s5325_s27 + $0x364] ss:$16 sps:$4 sm:$0xff]   ;;  %v4746_v62 = vld [vmem:[%s5325_s27 + $0x360] ss:$16 sps:$4 sm:$0xff]  }
  0x4a   : > { %2923 = vmatprep.subr.bf16.mxu0 %v4662_v63  ;;  %3210 = vmatprep.subr.bf16.mxu1 %v4664_v0  ;;  %v4749_v63 = vld [vmem:[%s5325_s27 + $0x368] ss:$16 sps:$4 sm:$0xff]   ;;  %v4754_v0 = vld [vmem:[%s5325_s27 + $0x384] ss:$16 sps:$4 sm:$0xff]  }
  0x4d   : > { %2924 = vmatpush1.bf16.msra.mxu0 %v4666_v1  ;;  %3211 = vmatpush1.bf16.msra.mxu1 %v4667_v2  ;;  %v4757_v1 = vld [vmem:[%s5325_s27 + $0x38c] ss:$16 sps:$4 sm:$0xff]   ;;  %v4752_v2 = vld [vmem:[%s5325_s27 + $0x380] ss:$16 sps:$4 sm:$0xff]  }
  0x4e   : > { %2925 = vmatprep.subr.bf16.mxu0 %v4668_v3  ;;  %3212 = vmatprep.subr.bf16.mxu1 %v4670_v4  ;;  %v4755_v3 = vld [vmem:[%s5325_s27 + $0x388] ss:$16 sps:$4 sm:$0xff]   ;;  %v4760_v4 = vld [vmem:[%s5325_s27 + $0x3a4] ss:$16 sps:$4 sm:$0xff]  }
  0x51   : > { %2926 = vmatpush1.bf16.msra.mxu0 %v4672_v5  ;;  %3213 = vmatpush1.bf16.msra.mxu1 %v4673_v6  ;;  %v4763_v5 = vld [vmem:[%s5325_s27 + $0x3ac] ss:$16 sps:$4 sm:$0xff]   ;;  %v4758_v6 = vld [vmem:[%s5325_s27 + $0x3a0] ss:$16 sps:$4 sm:$0xff]  }
  0x52   : > { %2927 = vmatprep.subr.bf16.mxu0 %v4674_v7  ;;  %3214 = vmatprep.subr.bf16.mxu1 %v4676_v8  ;;  %v4761_v7 = vld [vmem:[%s5325_s27 + $0x3a8] ss:$16 sps:$4 sm:$0xff]   ;;  %v4766_v8 = vld [vmem:[%s5325_s27 + $0x3c4] ss:$16 sps:$4 sm:$0xff]  }
  0x55   : > { %2928 = vmatpush1.bf16.msra.mxu0 %v4678_v9  ;;  %3215 = vmatpush1.bf16.msra.mxu1 %v4679_v10  ;;  %v4769_v9 = vld [vmem:[%s5325_s27 + $0x3cc] ss:$16 sps:$4 sm:$0xff]   ;;  %v716_v10 = vcombine.high %v5380_v53, %v5380_v53  ;;  %v4773_v53 = vld [vmem:[%s5325_s27 + $0x3e8] ss:$16 sps:$4 sm:$0xff]  }
  0x56   : > { %2938 = vmatprep.subr.bf16.mxu0 %v4682_v11  ;;  %3225 = vmatprep.subr.bf16.mxu1 %v4685_v12  ;;  %v4764_v11 = vld [vmem:[%s5325_s27 + $0x3c0] ss:$16 sps:$4 sm:$0xff]   ;;  %v4767_v12 = vld [vmem:[%s5325_s27 + $0x3c8] ss:$16 sps:$4 sm:$0xff]  }
  0x58   : > { %2930 = vmatmul.mubr.bf16.vlgmr.msra.gmra.mrb[0].mxu0 %v5407_v14  ;;  %3217 = vmatmul.mubr.bf16.vlgmr.msra.gmra.mrb[0].mxu1 %v5407_v14 }
  0x59   : > { %2939 = vmatpush1.bf16.msra.mxu0 %v4680_v13  ;;  %3226 = vmatpush1.bf16.msra.mxu1 %v4683_v15  ;;  %v4772_v13 = vld [vmem:[%s5325_s27 + $0x3e4] ss:$16 sps:$4 sm:$0xff]   ;;  %v4775_v15 = vld [vmem:[%s5325_s27 + $0x3ec] ss:$16 sps:$4 sm:$0xff]  }
  0x5a   : > { %2940 = vmatprep.subr.bf16.mxu0 %v4688_v16  ;;  %3227 = vmatprep.subr.bf16.mxu1 %v4691_v17  ;;  %v5473_v16 = vrot.slane %v716_v10, %v5375_v50  ;;  %v4770_v17 = vld [vmem:[%s5325_s27 + $0x3e0] ss:$16 sps:$4 sm:$0xff]   ;;  %v4851_v10 = vld [vmem:[%s5325_s27 + $0x588] ss:$16 sps:$4 sm:$0xff]  }
  0x5b   : > { %2970 = vmatprep.mubr.bf16.mxu0 %v763_v18  ;;  %3257 = vmatprep.mubr.bf16.mxu1 %v763_v18  ;;  %v4778_v18 = vld [vmem:[%s5325_s27 + $0x404] ss:$16 sps:$4 sm:$0xff]  }
  0x5d   : > { %2941 = vmatpush1.bf16.msra.mxu0 %v4686_v19  ;;  %3228 = vmatpush1.bf16.msra.mxu1 %v4689_v20  ;;  %v4781_v19 = vld [vmem:[%s5325_s27 + $0x40c] ss:$16 sps:$4 sm:$0xff]   ;;  %v732_v20 = vcombine.high %v5473_v16, %v5473_v16 }
  0x5e   : > { %2942 = vmatprep.subr.bf16.mxu0 %v4694_v21  ;;  %3229 = vmatprep.subr.bf16.mxu1 %v4697_v22  ;;  %v4776_v21 = vld [vmem:[%s5325_s27 + $0x400] ss:$16 sps:$4 sm:$0xff]   ;;  %v761_v22 = vcombine.high %v5407_v14, %v5407_v14  ;;  %v4785_v14 = vld [vmem:[%s5325_s27 + $0x428] ss:$16 sps:$4 sm:$0xff]  }
  0x61   : > { %2943 = vmatpush1.bf16.msra.mxu0 %v4692_v23  ;;  %3230 = vmatpush1.bf16.msra.mxu1 %v4695_v24  ;;  %v4779_v23 = vld [vmem:[%s5325_s27 + $0x408] ss:$16 sps:$4 sm:$0xff]   ;;  %v4784_v24 = vld [vmem:[%s5325_s27 + $0x424] ss:$16 sps:$4 sm:$0xff]  }
  0x62   : > { %2944 = vmatprep.subr.bf16.mxu0 %v4700_v25  ;;  %3231 = vmatprep.subr.bf16.mxu1 %v4703_v26  ;;  %v4787_v25 = vld [vmem:[%s5325_s27 + $0x42c] ss:$16 sps:$4 sm:$0xff]   ;;  %v5488_v26 = vrot.slane %v732_v20, %v5375_v50  ;;  %v4868_v20 = vld [vmem:[%s5325_s27 + $0x5e4] ss:$16 sps:$4 sm:$0xff]  }
  0x65   : > { %2945 = vmatpush1.bf16.msra.mxu0 %v4698_v27  ;;  %3232 = vmatpush1.bf16.msra.mxu1 %v4701_v28  ;;  %v4782_v27 = vld [vmem:[%s5325_s27 + $0x420] ss:$16 sps:$4 sm:$0xff]   ;;  %v4790_v28 = vld [vmem:[%s5325_s27 + $0x444] ss:$16 sps:$4 sm:$0xff]  }
  0x66   : > { %2946 = vmatprep.subr.bf16.mxu0 %v4706_v29  ;;  %3233 = vmatprep.subr.bf16.mxu1 %v4709_v30  ;;  %v4793_v29 = vld [vmem:[%s5325_s27 + $0x44c] ss:$16 sps:$4 sm:$0xff]   ;;  %v4788_v30 = vld [vmem:[%s5325_s27 + $0x440] ss:$16 sps:$4 sm:$0xff]  }
  0x69   : > { %2947 = vmatpush1.bf16.msra.mxu0 %v4704_v31  ;;  %3234 = vmatpush1.bf16.msra.mxu1 %v4707_v32  ;;  %v4791_v31 = vld [vmem:[%s5325_s27 + $0x448] ss:$16 sps:$4 sm:$0xff]   ;;  %v4796_v32 = vld [vmem:[%s5325_s27 + $0x464] ss:$16 sps:$4 sm:$0xff]  }
  0x6a   : > { %2948 = vmatprep.subr.bf16.mxu0 %v4712_v33  ;;  %3235 = vmatprep.subr.bf16.mxu1 %v4715_v34  ;;  %v4799_v33 = vld [vmem:[%s5325_s27 + $0x46c] ss:$16 sps:$4 sm:$0xff]   ;;  %v4794_v34 = vld [vmem:[%s5325_s27 + $0x460] ss:$16 sps:$4 sm:$0xff]  }
  0x6d   : > { %2949 = vmatpush1.bf16.msra.mxu0 %v4710_v35  ;;  %3236 = vmatpush1.bf16.msra.mxu1 %v4713_v36  ;;  %v4797_v35 = vld [vmem:[%s5325_s27 + $0x468] ss:$16 sps:$4 sm:$0xff]   ;;  %v4802_v36 = vld [vmem:[%s5325_s27 + $0x484] ss:$16 sps:$4 sm:$0xff]  }
  0x6e   : > { %2950 = vmatprep.subr.bf16.mxu0 %v4718_v37  ;;  %3237 = vmatprep.subr.bf16.mxu1 %v4721_v38  ;;  %v4805_v37 = vld [vmem:[%s5325_s27 + $0x48c] ss:$16 sps:$4 sm:$0xff]   ;;  %v4800_v38 = vld [vmem:[%s5325_s27 + $0x480] ss:$16 sps:$4 sm:$0xff]  }
  0x71   : > { %2951 = vmatpush1.bf16.msra.mxu0 %v4716_v39  ;;  %3238 = vmatpush1.bf16.msra.mxu1 %v4719_v40  ;;  %v4803_v39 = vld [vmem:[%s5325_s27 + $0x488] ss:$16 sps:$4 sm:$0xff]   ;;  %v4808_v40 = vld [vmem:[%s5325_s27 + $0x4a4] ss:$16 sps:$4 sm:$0xff]  }
  0x72   : > { %2952 = vmatprep.subr.bf16.mxu0 %v4724_v41  ;;  %3239 = vmatprep.subr.bf16.mxu1 %v4727_v42  ;;  %v4811_v41 = vld [vmem:[%s5325_s27 + $0x4ac] ss:$16 sps:$4 sm:$0xff]   ;;  %v4806_v42 = vld [vmem:[%s5325_s27 + $0x4a0] ss:$16 sps:$4 sm:$0xff]  }
  0x75   : > { %2953 = vmatpush1.bf16.msra.mxu0 %v4722_v43  ;;  %3240 = vmatpush1.bf16.msra.mxu1 %v4725_v45  ;;  %v4809_v43 = vld [vmem:[%s5325_s27 + $0x4a8] ss:$16 sps:$4 sm:$0xff]   ;;  %v4814_v45 = vld [vmem:[%s5325_s27 + $0x4c4] ss:$16 sps:$4 sm:$0xff]  }
  0x76   : > { %2954 = vmatprep.subr.bf16.mxu0 %v4730_v46  ;;  %3241 = vmatprep.subr.bf16.mxu1 %v4733_v47  ;;  %v4817_v46 = vld [vmem:[%s5325_s27 + $0x4cc] ss:$16 sps:$4 sm:$0xff]   ;;  %v4812_v47 = vld [vmem:[%s5325_s27 + $0x4c0] ss:$16 sps:$4 sm:$0xff]  }
  0x79   : > { %2955 = vmatpush1.bf16.msra.mxu0 %v4728_v48  ;;  %3242 = vmatpush1.bf16.msra.mxu1 %v4731_v49  ;;  %v4815_v48 = vld [vmem:[%s5325_s27 + $0x4c8] ss:$16 sps:$4 sm:$0xff]   ;;  %v4820_v49 = vld [vmem:[%s5325_s27 + $0x4e4] ss:$16 sps:$4 sm:$0xff]  }
  0x7a   : > { %2956 = vmatprep.subr.bf16.mxu0 %v4736_v51  ;;  %3243 = vmatprep.subr.bf16.mxu1 %v4739_v52  ;;  %v4823_v51 = vld [vmem:[%s5325_s27 + $0x4ec] ss:$16 sps:$4 sm:$0xff]   ;;  %v4818_v52 = vld [vmem:[%s5325_s27 + $0x4e0] ss:$16 sps:$4 sm:$0xff]  }
  0x7d   : > { %2957 = vmatpush1.bf16.msra.mxu0 %v4734_v54  ;;  %3244 = vmatpush1.bf16.msra.mxu1 %v4737_v55  ;;  %v4821_v54 = vld [vmem:[%s5325_s27 + $0x4e8] ss:$16 sps:$4 sm:$0xff]   ;;  %v4826_v55 = vld [vmem:[%s5325_s27 + $0x504] ss:$16 sps:$4 sm:$0xff]  }
  0x7e   : > { %2958 = vmatprep.subr.bf16.mxu0 %v4742_v56  ;;  %3245 = vmatprep.subr.bf16.mxu1 %v4745_v57  ;;  %v4829_v56 = vld [vmem:[%s5325_s27 + $0x50c] ss:$16 sps:$4 sm:$0xff]   ;;  %v4824_v57 = vld [vmem:[%s5325_s27 + $0x500] ss:$16 sps:$4 sm:$0xff]  }
  0x81   : > { %2959 = vmatpush1.bf16.msra.mxu0 %v4740_v58  ;;  %3246 = vmatpush1.bf16.msra.mxu1 %v4743_v59  ;;  %v4827_v58 = vld [vmem:[%s5325_s27 + $0x508] ss:$16 sps:$4 sm:$0xff]   ;;  %v4832_v59 = vld [vmem:[%s5325_s27 + $0x524] ss:$16 sps:$4 sm:$0xff]  }
  0x82   : > { %2960 = vmatprep.subr.bf16.mxu0 %v4748_v60  ;;  %3247 = vmatprep.subr.bf16.mxu1 %v4751_v61  ;;  %v4835_v60 = vld [vmem:[%s5325_s27 + $0x52c] ss:$16 sps:$4 sm:$0xff]   ;;  %v4830_v61 = vld [vmem:[%s5325_s27 + $0x520] ss:$16 sps:$4 sm:$0xff]  }
  0x85   : > { %2961 = vmatpush1.bf16.msra.mxu0 %v4746_v62  ;;  %3248 = vmatpush1.bf16.msra.mxu1 %v4749_v63  ;;  %v4833_v62 = vld [vmem:[%s5325_s27 + $0x528] ss:$16 sps:$4 sm:$0xff]   ;;  %v4838_v63 = vld [vmem:[%s5325_s27 + $0x544] ss:$16 sps:$4 sm:$0xff]  }
  0x86   : > { %2962 = vmatprep.subr.bf16.mxu0 %v4754_v0  ;;  %3249 = vmatprep.subr.bf16.mxu1 %v4757_v1  ;;  %v4841_v0 = vld [vmem:[%s5325_s27 + $0x54c] ss:$16 sps:$4 sm:$0xff]   ;;  %v4836_v1 = vld [vmem:[%s5325_s27 + $0x540] ss:$16 sps:$4 sm:$0xff]  }
  0x89   : > { %2963 = vmatpush1.bf16.msra.mxu0 %v4752_v2  ;;  %3250 = vmatpush1.bf16.msra.mxu1 %v4755_v3  ;;  %v4839_v2 = vld [vmem:[%s5325_s27 + $0x548] ss:$16 sps:$4 sm:$0xff]   ;;  %v4844_v3 = vld [vmem:[%s5325_s27 + $0x564] ss:$16 sps:$4 sm:$0xff]  }
  0x8a   : > { %2964 = vmatprep.subr.bf16.mxu0 %v4760_v4  ;;  %3251 = vmatprep.subr.bf16.mxu1 %v4763_v5  ;;  %v4847_v4 = vld [vmem:[%s5325_s27 + $0x56c] ss:$16 sps:$4 sm:$0xff]   ;;  %v4842_v5 = vld [vmem:[%s5325_s27 + $0x560] ss:$16 sps:$4 sm:$0xff]  }
  0x8d   : > { %2965 = vmatpush1.bf16.msra.mxu0 %v4758_v6  ;;  %3252 = vmatpush1.bf16.msra.mxu1 %v4761_v7  ;;  %v4845_v6 = vld [vmem:[%s5325_s27 + $0x568] ss:$16 sps:$4 sm:$0xff]   ;;  %v4850_v7 = vld [vmem:[%s5325_s27 + $0x584] ss:$16 sps:$4 sm:$0xff]  }
  0x8e   : > { %2966 = vmatprep.subr.bf16.mxu0 %v4766_v8  ;;  %3253 = vmatprep.subr.bf16.mxu1 %v4769_v9  ;;  %v4853_v8 = vld [vmem:[%s5325_s27 + $0x58c] ss:$16 sps:$4 sm:$0xff]   ;;  %v4848_v9 = vld [vmem:[%s5325_s27 + $0x580] ss:$16 sps:$4 sm:$0xff]  }
  0x91   : > { %2967 = vmatpush1.bf16.msra.mxu0 %v4764_v11  ;;  %3254 = vmatpush1.bf16.msra.mxu1 %v4767_v12  ;;  %v4856_v11 = vld [vmem:[%s5325_s27 + $0x5a4] ss:$16 sps:$4 sm:$0xff]   ;;  %v4859_v12 = vld [vmem:[%s5325_s27 + $0x5ac] ss:$16 sps:$4 sm:$0xff]  }
  0x92   : > { %2968 = vmatprep.subr.bf16.mxu0 %v4772_v13  ;;  %3255 = vmatprep.subr.bf16.mxu1 %v4775_v15  ;;  %v4854_v13 = vld [vmem:[%s5325_s27 + $0x5a0] ss:$16 sps:$4 sm:$0xff]   ;;  %v4857_v15 = vld [vmem:[%s5325_s27 + $0x5a8] ss:$16 sps:$4 sm:$0xff]  }
  0x95   : > { %2969 = vmatpush1.bf16.msra.mxu0 %v4770_v17  ;;  %3256 = vmatpush1.bf16.msra.mxu1 %v4773_v53  ;;  %v4862_v17 = vld [vmem:[%s5325_s27 + $0x5c4] ss:$16 sps:$4 sm:$0xff]   ;;  %v4865_v53 = vld [vmem:[%s5325_s27 + $0x5cc] ss:$16 sps:$4 sm:$0xff]  }
  0x96   : > { %2979 = vmatprep.subr.bf16.mxu0 %v4778_v18  ;;  %3266 = vmatprep.subr.bf16.mxu1 %v4781_v19  ;;  %v4860_v18 = vld [vmem:[%s5325_s27 + $0x5c0] ss:$16 sps:$4 sm:$0xff]   ;;  %v4863_v19 = vld [vmem:[%s5325_s27 + $0x5c8] ss:$16 sps:$4 sm:$0xff]  }
  0x98   : > { %2971 = vmatmul.mubr.bf16.vlgmr.msra.gmra.mrb[0].mxu0 %v761_v22  ;;  %3258 = vmatmul.mubr.bf16.vlgmr.msra.gmra.mrb[0].mxu1 %v761_v22  ;;  %v4866_v22 = vld [vmem:[%s5325_s27 + $0x5e0] ss:$16 sps:$4 sm:$0xff]  }
  0x99   : > { %2980 = vmatpush1.bf16.msra.mxu0 %v4776_v21  ;;  %3267 = vmatpush1.bf16.msra.mxu1 %v4779_v23  ;;  %v4871_v21 = vld [vmem:[%s5325_s27 + $0x5ec] ss:$16 sps:$4 sm:$0xff]   ;;  %v4869_v23 = vld [vmem:[%s5325_s27 + $0x5e8] ss:$16 sps:$4 sm:$0xff]  }
  0x9a   : > { %2981 = vmatprep.subr.bf16.mxu0 %v4784_v24  ;;  %3268 = vmatprep.subr.bf16.mxu1 %v4787_v25  ;;  %v4875_v24 = vld [vmem:[%s5325_s27 + $0x604] ss:$16 sps:$4 sm:$0xff]   ;;  %v4878_v25 = vld [vmem:[%s5325_s27 + $0x60c] ss:$16 sps:$4 sm:$0xff]  }
  0x9b   : > { %3011 = vmatprep.mubr.bf16.mxu0 %v5488_v26  ;;  %3298 = vmatprep.mubr.bf16.mxu1 %v5488_v26 }
  0x9d   : > { %2982 = vmatpush1.bf16.msra.mxu0 %v4782_v27  ;;  %3269 = vmatpush1.bf16.msra.mxu1 %v4785_v14  ;;  %v4873_v27 = vld [vmem:[%s5325_s27 + $0x600] ss:$16 sps:$4 sm:$0xff]   ;;  %v5555_v14 = vrot.slane %v5473_v16, %v5375_v50 }
  0x9e   : > { %2983 = vmatprep.subr.bf16.mxu0 %v4790_v28  ;;  %3270 = vmatprep.subr.bf16.mxu1 %v4793_v29  ;;  %v4876_v28 = vld [vmem:[%s5325_s27 + $0x608] ss:$16 sps:$4 sm:$0xff]   ;;  %v4881_v29 = vld [vmem:[%s5325_s27 + $0x624] ss:$16 sps:$4 sm:$0xff]   ;;  %v4879_v16 = vld [vmem:[%s5325_s27 + $0x620] ss:$16 sps:$4 sm:$0xff]  }
  0xa1   : > { %2984 = vmatpush1.bf16.msra.mxu0 %v4788_v30  ;;  %3271 = vmatpush1.bf16.msra.mxu1 %v4791_v31  ;;  %v4884_v30 = vld [vmem:[%s5325_s27 + $0x62c] ss:$16 sps:$4 sm:$0xff]   ;;  %v764_v31 = vcombine.high %v5488_v26, %v5488_v26  ;;  %v4885_v26 = vld [vmem:[%s5325_s27 + $0x640] ss:$16 sps:$4 sm:$0xff]  }
  0xa2   : > { %2985 = vmatprep.subr.bf16.mxu0 %v4796_v32  ;;  %3272 = vmatprep.subr.bf16.mxu1 %v4799_v33  ;;  %v4882_v32 = vld [vmem:[%s5325_s27 + $0x628] ss:$16 sps:$4 sm:$0xff]   ;;  %v4887_v33 = vld [vmem:[%s5325_s27 + $0x644] ss:$16 sps:$4 sm:$0xff]  }
  0xa5   : > { %2986 = vmatpush1.bf16.msra.mxu0 %v4794_v34  ;;  %3273 = vmatpush1.bf16.msra.mxu1 %v4797_v35  ;;  %v4890_v34 = vld [vmem:[%s5325_s27 + $0x64c] ss:$16 sps:$4 sm:$0xff]   ;;  %v4888_v35 = vld [vmem:[%s5325_s27 + $0x648] ss:$16 sps:$4 sm:$0xff]  }
  0xa6   : > { %2987 = vmatprep.subr.bf16.mxu0 %v4802_v36  ;;  %3274 = vmatprep.subr.bf16.mxu1 %v4805_v37  ;;  %v4893_v36 = vld [vmem:[%s5325_s27 + $0x664] ss:$16 sps:$4 sm:$0xff]   ;;  %v4896_v37 = vld [vmem:[%s5325_s27 + $0x66c] ss:$16 sps:$4 sm:$0xff]  }
  0xa9   : > { %2988 = vmatpush1.bf16.msra.mxu0 %v4800_v38  ;;  %3275 = vmatpush1.bf16.msra.mxu1 %v4803_v39  ;;  %v4891_v38 = vld [vmem:[%s5325_s27 + $0x660] ss:$16 sps:$4 sm:$0xff]   ;;  %v4894_v39 = vld [vmem:[%s5325_s27 + $0x668] ss:$16 sps:$4 sm:$0xff]  }
  0xaa   : > { %2989 = vmatprep.subr.bf16.mxu0 %v4808_v40  ;;  %3276 = vmatprep.subr.bf16.mxu1 %v4811_v41  ;;  %v4899_v40 = vld [vmem:[%s5325_s27 + $0x684] ss:$16 sps:$4 sm:$0xff]   ;;  %v4902_v41 = vld [vmem:[%s5325_s27 + $0x68c] ss:$16 sps:$4 sm:$0xff]  }
  0xad   : > { %2990 = vmatpush1.bf16.msra.mxu0 %v4806_v42  ;;  %3277 = vmatpush1.bf16.msra.mxu1 %v4809_v43  ;;  %v4897_v42 = vld [vmem:[%s5325_s27 + $0x680] ss:$16 sps:$4 sm:$0xff]   ;;  %v4900_v43 = vld [vmem:[%s5325_s27 + $0x688] ss:$16 sps:$4 sm:$0xff]  }
  0xae   : > { %2991 = vmatprep.subr.bf16.mxu0 %v4814_v45  ;;  %3278 = vmatprep.subr.bf16.mxu1 %v4817_v46  ;;  %v4905_v45 = vld [vmem:[%s5325_s27 + $0x6a4] ss:$16 sps:$4 sm:$0xff]   ;;  %v4908_v46 = vld [vmem:[%s5325_s27 + $0x6ac] ss:$16 sps:$4 sm:$0xff]  }
  0xb1   : > { %2992 = vmatpush1.bf16.msra.mxu0 %v4812_v47  ;;  %3279 = vmatpush1.bf16.msra.mxu1 %v4815_v48  ;;  %v4903_v47 = vld [vmem:[%s5325_s27 + $0x6a0] ss:$16 sps:$4 sm:$0xff]   ;;  %v4906_v48 = vld [vmem:[%s5325_s27 + $0x6a8] ss:$16 sps:$4 sm:$0xff]  }
  0xb2   : > { %2993 = vmatprep.subr.bf16.mxu0 %v4820_v49  ;;  %3280 = vmatprep.subr.bf16.mxu1 %v4823_v51  ;;  %v4911_v49 = vld [vmem:[%s5325_s27 + $0x6c4] ss:$16 sps:$4 sm:$0xff]   ;;  %v4914_v51 = vld [vmem:[%s5325_s27 + $0x6cc] ss:$16 sps:$4 sm:$0xff]  }
  0xb5   : > { %2994 = vmatpush1.bf16.msra.mxu0 %v4818_v52  ;;  %3281 = vmatpush1.bf16.msra.mxu1 %v4821_v54  ;;  %v4909_v52 = vld [vmem:[%s5325_s27 + $0x6c0] ss:$16 sps:$4 sm:$0xff]   ;;  %v4912_v54 = vld [vmem:[%s5325_s27 + $0x6c8] ss:$16 sps:$4 sm:$0xff]  }
  0xb6   : > { %2995 = vmatprep.subr.bf16.mxu0 %v4826_v55  ;;  %3282 = vmatprep.subr.bf16.mxu1 %v4829_v56  ;;  %v4917_v55 = vld [vmem:[%s5325_s27 + $0x6e4] ss:$16 sps:$4 sm:$0xff]   ;;  %v4920_v56 = vld [vmem:[%s5325_s27 + $0x6ec] ss:$16 sps:$4 sm:$0xff]  }
  0xb9   : > { %2996 = vmatpush1.bf16.msra.mxu0 %v4824_v57  ;;  %3283 = vmatpush1.bf16.msra.mxu1 %v4827_v58  ;;  %v4915_v57 = vld [vmem:[%s5325_s27 + $0x6e0] ss:$16 sps:$4 sm:$0xff]   ;;  %v4918_v58 = vld [vmem:[%s5325_s27 + $0x6e8] ss:$16 sps:$4 sm:$0xff]  }
  0xba   : > { %2997 = vmatprep.subr.bf16.mxu0 %v4832_v59  ;;  %3284 = vmatprep.subr.bf16.mxu1 %v4835_v60  ;;  %v4923_v59 = vld [vmem:[%s5325_s27 + $0x704] ss:$16 sps:$4 sm:$0xff]   ;;  %v4926_v60 = vld [vmem:[%s5325_s27 + $0x70c] ss:$16 sps:$4 sm:$0xff]  }
  0xbd   : > { %2998 = vmatpush1.bf16.msra.mxu0 %v4830_v61  ;;  %3285 = vmatpush1.bf16.msra.mxu1 %v4833_v62  ;;  %v4921_v61 = vld [vmem:[%s5325_s27 + $0x700] ss:$16 sps:$4 sm:$0xff]   ;;  %v4924_v62 = vld [vmem:[%s5325_s27 + $0x708] ss:$16 sps:$4 sm:$0xff]  }
  0xbe   : > { %2999 = vmatprep.subr.bf16.mxu0 %v4838_v63  ;;  %3286 = vmatprep.subr.bf16.mxu1 %v4841_v0  ;;  %v4929_v63 = vld [vmem:[%s5325_s27 + $0x724] ss:$16 sps:$4 sm:$0xff]   ;;  %v4932_v0 = vld [vmem:[%s5325_s27 + $0x72c] ss:$16 sps:$4 sm:$0xff]  }
  0xc1   : > { %3000 = vmatpush1.bf16.msra.mxu0 %v4836_v1  ;;  %3287 = vmatpush1.bf16.msra.mxu1 %v4839_v2  ;;  %v4927_v1 = vld [vmem:[%s5325_s27 + $0x720] ss:$16 sps:$4 sm:$0xff]   ;;  %v4930_v2 = vld [vmem:[%s5325_s27 + $0x728] ss:$16 sps:$4 sm:$0xff]  }
  0xc2   : > { %3001 = vmatprep.subr.bf16.mxu0 %v4844_v3  ;;  %3288 = vmatprep.subr.bf16.mxu1 %v4847_v4  ;;  %v4935_v3 = vld [vmem:[%s5325_s27 + $0x744] ss:$16 sps:$4 sm:$0xff]   ;;  %v4938_v4 = vld [vmem:[%s5325_s27 + $0x74c] ss:$16 sps:$4 sm:$0xff]  }
  0xc5   : > { %3002 = vmatpush1.bf16.msra.mxu0 %v4842_v5  ;;  %3289 = vmatpush1.bf16.msra.mxu1 %v4845_v6  ;;  %v4933_v5 = vld [vmem:[%s5325_s27 + $0x740] ss:$16 sps:$4 sm:$0xff]   ;;  %v4936_v6 = vld [vmem:[%s5325_s27 + $0x748] ss:$16 sps:$4 sm:$0xff]  }
  0xc6   : > { %3003 = vmatprep.subr.bf16.mxu0 %v4850_v7  ;;  %3290 = vmatprep.subr.bf16.mxu1 %v4853_v8  ;;  %v4941_v7 = vld [vmem:[%s5325_s27 + $0x764] ss:$16 sps:$4 sm:$0xff]   ;;  %v4944_v8 = vld [vmem:[%s5325_s27 + $0x76c] ss:$16 sps:$4 sm:$0xff]  }
  0xc9   : > { %3004 = vmatpush1.bf16.msra.mxu0 %v4848_v9  ;;  %3291 = vmatpush1.bf16.msra.mxu1 %v4851_v10  ;;  %v4939_v9 = vld [vmem:[%s5325_s27 + $0x760] ss:$16 sps:$4 sm:$0xff]   ;;  %v4942_v10 = vld [vmem:[%s5325_s27 + $0x768] ss:$16 sps:$4 sm:$0xff]  }
  0xca   : > { %3005 = vmatprep.subr.bf16.mxu0 %v4856_v11  ;;  %3292 = vmatprep.subr.bf16.mxu1 %v4859_v12  ;;  %v4947_v11 = vld [vmem:[%s5325_s27 + $0x784] ss:$16 sps:$4 sm:$0xff]   ;;  %v4950_v12 = vld [vmem:[%s5325_s27 + $0x78c] ss:$16 sps:$4 sm:$0xff]  }
  0xcd   : > { %3006 = vmatpush1.bf16.msra.mxu0 %v4854_v13  ;;  %3293 = vmatpush1.bf16.msra.mxu1 %v4857_v15  ;;  %v4945_v13 = vld [vmem:[%s5325_s27 + $0x780] ss:$16 sps:$4 sm:$0xff]   ;;  %v4948_v15 = vld [vmem:[%s5325_s27 + $0x788] ss:$16 sps:$4 sm:$0xff]  }
  0xce   : > { %3007 = vmatprep.subr.bf16.mxu0 %v4862_v17  ;;  %3294 = vmatprep.subr.bf16.mxu1 %v4865_v53  ;;  %v4953_v17 = vld [vmem:[%s5325_s27 + $0x7a4] ss:$16 sps:$4 sm:$0xff]   ;;  %v4956_v53 = vld [vmem:[%s5325_s27 + $0x7ac] ss:$16 sps:$4 sm:$0xff]  }
  0xd1   : > { %3008 = vmatpush1.bf16.msra.mxu0 %v4860_v18  ;;  %3295 = vmatpush1.bf16.msra.mxu1 %v4863_v19  ;;  %v4951_v18 = vld [vmem:[%s5325_s27 + $0x7a0] ss:$16 sps:$4 sm:$0xff]   ;;  %v4954_v19 = vld [vmem:[%s5325_s27 + $0x7a8] ss:$16 sps:$4 sm:$0xff]  }
  0xd2   : > { %3009 = vmatprep.subr.bf16.mxu0 %v4868_v20  ;;  %3296 = vmatprep.subr.bf16.mxu1 %v4871_v21  ;;  %v4959_v20 = vld [vmem:[%s5325_s27 + $0x7c4] ss:$16 sps:$4 sm:$0xff]   ;;  %v4962_v21 = vld [vmem:[%s5325_s27 + $0x7cc] ss:$16 sps:$4 sm:$0xff]  }
  0xd5   : > { %3010 = vmatpush1.bf16.msra.mxu0 %v4866_v22  ;;  %3297 = vmatpush1.bf16.msra.mxu1 %v4869_v23  ;;  %v5617_v22 = vld [vmem:[%s5320_s23 + $0x8] sm:$0x1f]  ;;  %v4957_v23 = vld [vmem:[%s5325_s27 + $0x7c0] ss:$16 sps:$4 sm:$0xff]  }
  0xd6   : > { %3020 = vmatprep.subr.bf16.mxu0 %v4875_v24  ;;  %3307 = vmatprep.subr.bf16.mxu1 %v4878_v25  ;;  %v4960_v24 = vld [vmem:[%s5325_s27 + $0x7c8] ss:$16 sps:$4 sm:$0xff]   ;;  %v4965_v25 = vld [vmem:[%s5325_s27 + $0x7e4] ss:$16 sps:$4 sm:$0xff]  }
  0xd8   : > { %3012 = vmatmul.mubr.bf16.vlgmr.msra.gmra.mrb[0].mxu0 %v5555_v14  ;;  %3299 = vmatmul.mubr.bf16.vlgmr.msra.gmra.mrb[0].mxu1 %v5555_v14 }
  0xd9   : > { %3021 = vmatpush1.bf16.msra.mxu0 %v4873_v27  ;;  %3308 = vmatpush1.bf16.msra.mxu1 %v4876_v28  ;;  %v4968_v27 = vld [vmem:[%s5325_s27 + $0x7ec] ss:$16 sps:$4 sm:$0xff]   ;;  %v5625_v28 = vrot.slane %v5617_v22, %v5375_v50 }
  0xda   : > { %3022 = vmatprep.subr.bf16.mxu0 %v4881_v29  ;;  %3309 = vmatprep.subr.bf16.mxu1 %v4884_v30  ;;  %v4963_v29 = vld [vmem:[%s5325_s27 + $0x7e0] ss:$16 sps:$4 sm:$0xff]   ;;  %v4966_v30 = vld [vmem:[%s5325_s27 + $0x7e8] ss:$16 sps:$4 sm:$0xff]  }
  0xdb   : > { %3052 = vmatprep.mubr.bf16.mxu0 %v764_v31  ;;  %3339 = vmatprep.mubr.bf16.mxu1 %v764_v31  ;;  %v4971_v31 = vld [vmem:[%s5325_s27 + $0x804] ss:$16 sps:$4 sm:$0xff]  }
  0xdd   : > { %3023 = vmatpush1.bf16.msra.mxu0 %v4879_v16  ;;  %3310 = vmatpush1.bf16.msra.mxu1 %v4882_v32  ;;  %v4974_v16 = vld [vmem:[%s5325_s27 + $0x80c] ss:$16 sps:$4 sm:$0xff]   ;;  %v780_v32 = vcombine.high %v5625_v28, %v5625_v28 }
  0xde   : > { %3024 = vmatprep.subr.bf16.mxu0 %v4887_v33  ;;  %3311 = vmatprep.subr.bf16.mxu1 %v4890_v34  ;;  %v762_v33 = vcombine.high %v5555_v14, %v5555_v14  ;;  %v4969_v34 = vld [vmem:[%s5325_s27 + $0x800] ss:$16 sps:$4 sm:$0xff]  }
  0xdf   : > { %v4975_v14 = vld [vmem:[%s5325_s27 + $0x820] ss:$16 sps:$4 sm:$0xff]  }
  0xe1   : > { %3025 = vmatpush1.bf16.msra.mxu0 %v4885_v26  ;;  %3312 = vmatpush1.bf16.msra.mxu1 %v4888_v35  ;;  %v4972_v26 = vld [vmem:[%s5325_s27 + $0x808] ss:$16 sps:$4 sm:$0xff]   ;;  %v4977_v35 = vld [vmem:[%s5325_s27 + $0x824] ss:$16 sps:$4 sm:$0xff]  }
  0xe2   : > { %3026 = vmatprep.subr.bf16.mxu0 %v4893_v36  ;;  %3313 = vmatprep.subr.bf16.mxu1 %v4896_v37  ;;  %v4980_v36 = vld [vmem:[%s5325_s27 + $0x82c] ss:$16 sps:$4 sm:$0xff]   ;;  %v5640_v37 = vrot.slane %v780_v32, %v5375_v50  ;;  %v5056_v32 = vld [vmem:[%s5325_s27 + $0x9c8] ss:$16 sps:$4 sm:$0xff]  }
  0xe5   : > { %3027 = vmatpush1.bf16.msra.mxu0 %v4891_v38  ;;  %3314 = vmatpush1.bf16.msra.mxu1 %v4894_v39  ;;  %v4978_v38 = vld [vmem:[%s5325_s27 + $0x828] ss:$16 sps:$4 sm:$0xff]   ;;  %v4983_v39 = vld [vmem:[%s5325_s27 + $0x844] ss:$16 sps:$4 sm:$0xff]  }
  0xe6   : > { %3028 = vmatprep.subr.bf16.mxu0 %v4899_v40  ;;  %3315 = vmatprep.subr.bf16.mxu1 %v4902_v41  ;;  %v4986_v40 = vld [vmem:[%s5325_s27 + $0x84c] ss:$16 sps:$4 sm:$0xff]   ;;  %v4981_v41 = vld [vmem:[%s5325_s27 + $0x840] ss:$16 sps:$4 sm:$0xff]  }
  0xe9   : > { %3029 = vmatpush1.bf16.msra.mxu0 %v4897_v42  ;;  %3316 = vmatpush1.bf16.msra.mxu1 %v4900_v43  ;;  %v4984_v42 = vld [vmem:[%s5325_s27 + $0x848] ss:$16 sps:$4 sm:$0xff]   ;;  %v4989_v43 = vld [vmem:[%s5325_s27 + $0x864] ss:$16 sps:$4 sm:$0xff]  }
  0xea   : > { %3030 = vmatprep.subr.bf16.mxu0 %v4905_v45  ;;  %3317 = vmatprep.subr.bf16.mxu1 %v4908_v46  ;;  %v4992_v45 = vld [vmem:[%s5325_s27 + $0x86c] ss:$16 sps:$4 sm:$0xff]   ;;  %v4987_v46 = vld [vmem:[%s5325_s27 + $0x860] ss:$16 sps:$4 sm:$0xff]  }
  0xed   : > { %3031 = vmatpush1.bf16.msra.mxu0 %v4903_v47  ;;  %3318 = vmatpush1.bf16.msra.mxu1 %v4906_v48  ;;  %v4990_v47 = vld [vmem:[%s5325_s27 + $0x868] ss:$16 sps:$4 sm:$0xff]   ;;  %v4995_v48 = vld [vmem:[%s5325_s27 + $0x884] ss:$16 sps:$4 sm:$0xff]  }
  0xee   : > { %3032 = vmatprep.subr.bf16.mxu0 %v4911_v49  ;;  %3319 = vmatprep.subr.bf16.mxu1 %v4914_v51  ;;  %v4998_v49 = vld [vmem:[%s5325_s27 + $0x88c] ss:$16 sps:$4 sm:$0xff]   ;;  %v4993_v51 = vld [vmem:[%s5325_s27 + $0x880] ss:$16 sps:$4 sm:$0xff]  }
  0xf1   : > { %3033 = vmatpush1.bf16.msra.mxu0 %v4909_v52  ;;  %3320 = vmatpush1.bf16.msra.mxu1 %v4912_v54  ;;  %v4996_v52 = vld [vmem:[%s5325_s27 + $0x888] ss:$16 sps:$4 sm:$0xff]   ;;  %v5001_v54 = vld [vmem:[%s5325_s27 + $0x8a4] ss:$16 sps:$4 sm:$0xff]  }
  0xf2   : > { %3034 = vmatprep.subr.bf16.mxu0 %v4917_v55  ;;  %3321 = vmatprep.subr.bf16.mxu1 %v4920_v56  ;;  %v5004_v55 = vld [vmem:[%s5325_s27 + $0x8ac] ss:$16 sps:$4 sm:$0xff]   ;;  %v4999_v56 = vld [vmem:[%s5325_s27 + $0x8a0] ss:$16 sps:$4 sm:$0xff]  }
  0xf5   : > { %3035 = vmatpush1.bf16.msra.mxu0 %v4915_v57  ;;  %3322 = vmatpush1.bf16.msra.mxu1 %v4918_v58  ;;  %v5002_v57 = vld [vmem:[%s5325_s27 + $0x8a8] ss:$16 sps:$4 sm:$0xff]   ;;  %v5007_v58 = vld [vmem:[%s5325_s27 + $0x8c4] ss:$16 sps:$4 sm:$0xff]  }
  0xf6   : > { %3036 = vmatprep.subr.bf16.mxu0 %v4923_v59  ;;  %3323 = vmatprep.subr.bf16.mxu1 %v4926_v60  ;;  %v5010_v59 = vld [vmem:[%s5325_s27 + $0x8cc] ss:$16 sps:$4 sm:$0xff]   ;;  %v5005_v60 = vld [vmem:[%s5325_s27 + $0x8c0] ss:$16 sps:$4 sm:$0xff]  }
  0xf9   : > { %3037 = vmatpush1.bf16.msra.mxu0 %v4921_v61  ;;  %3324 = vmatpush1.bf16.msra.mxu1 %v4924_v62  ;;  %v5008_v61 = vld [vmem:[%s5325_s27 + $0x8c8] ss:$16 sps:$4 sm:$0xff]   ;;  %v5013_v62 = vld [vmem:[%s5325_s27 + $0x8e4] ss:$16 sps:$4 sm:$0xff]  }
  0xfa   : > { %3038 = vmatprep.subr.bf16.mxu0 %v4929_v63  ;;  %3325 = vmatprep.subr.bf16.mxu1 %v4932_v0  ;;  %v5016_v63 = vld [vmem:[%s5325_s27 + $0x8ec] ss:$16 sps:$4 sm:$0xff]   ;;  %v5011_v0 = vld [vmem:[%s5325_s27 + $0x8e0] ss:$16 sps:$4 sm:$0xff]  }
  0xfd   : > { %3039 = vmatpush1.bf16.msra.mxu0 %v4927_v1  ;;  %3326 = vmatpush1.bf16.msra.mxu1 %v4930_v2  ;;  %v5014_v1 = vld [vmem:[%s5325_s27 + $0x8e8] ss:$16 sps:$4 sm:$0xff]   ;;  %v5019_v2 = vld [vmem:[%s5325_s27 + $0x904] ss:$16 sps:$4 sm:$0xff]  }
  0xfe   : > { %3040 = vmatprep.subr.bf16.mxu0 %v4935_v3  ;;  %3327 = vmatprep.subr.bf16.mxu1 %v4938_v4  ;;  %v5022_v3 = vld [vmem:[%s5325_s27 + $0x90c] ss:$16 sps:$4 sm:$0xff]   ;;  %v5017_v4 = vld [vmem:[%s5325_s27 + $0x900] ss:$16 sps:$4 sm:$0xff]  }
 0x101   : > { %3041 = vmatpush1.bf16.msra.mxu0 %v4933_v5  ;;  %3328 = vmatpush1.bf16.msra.mxu1 %v4936_v6  ;;  %v5020_v5 = vld [vmem:[%s5325_s27 + $0x908] ss:$16 sps:$4 sm:$0xff]   ;;  %v5025_v6 = vld [vmem:[%s5325_s27 + $0x924] ss:$16 sps:$4 sm:$0xff]  }
 0x102   : > { %3042 = vmatprep.subr.bf16.mxu0 %v4941_v7  ;;  %3329 = vmatprep.subr.bf16.mxu1 %v4944_v8  ;;  %v5028_v7 = vld [vmem:[%s5325_s27 + $0x92c] ss:$16 sps:$4 sm:$0xff]   ;;  %v5023_v8 = vld [vmem:[%s5325_s27 + $0x920] ss:$16 sps:$4 sm:$0xff]  }
 0x105   : > { %3043 = vmatpush1.bf16.msra.mxu0 %v4939_v9  ;;  %3330 = vmatpush1.bf16.msra.mxu1 %v4942_v10  ;;  %v5026_v9 = vld [vmem:[%s5325_s27 + $0x928] ss:$16 sps:$4 sm:$0xff]   ;;  %v5031_v10 = vld [vmem:[%s5325_s27 + $0x944] ss:$16 sps:$4 sm:$0xff]  }
 0x106   : > { %3044 = vmatprep.subr.bf16.mxu0 %v4947_v11  ;;  %3331 = vmatprep.subr.bf16.mxu1 %v4950_v12  ;;  %v5034_v11 = vld [vmem:[%s5325_s27 + $0x94c] ss:$16 sps:$4 sm:$0xff]   ;;  %v5029_v12 = vld [vmem:[%s5325_s27 + $0x940] ss:$16 sps:$4 sm:$0xff]  }
 0x109   : > { %3045 = vmatpush1.bf16.msra.mxu0 %v4945_v13  ;;  %3332 = vmatpush1.bf16.msra.mxu1 %v4948_v15  ;;  %v5032_v13 = vld [vmem:[%s5325_s27 + $0x948] ss:$16 sps:$4 sm:$0xff]   ;;  %v5037_v15 = vld [vmem:[%s5325_s27 + $0x964] ss:$16 sps:$4 sm:$0xff]  }
 0x10a   : > { %3046 = vmatprep.subr.bf16.mxu0 %v4953_v17  ;;  %3333 = vmatprep.subr.bf16.mxu1 %v4956_v53  ;;  %v5040_v17 = vld [vmem:[%s5325_s27 + $0x96c] ss:$16 sps:$4 sm:$0xff]   ;;  %v5035_v53 = vld [vmem:[%s5325_s27 + $0x960] ss:$16 sps:$4 sm:$0xff]  }
 0x10d   : > { %3047 = vmatpush1.bf16.msra.mxu0 %v4951_v18  ;;  %3334 = vmatpush1.bf16.msra.mxu1 %v4954_v19  ;;  %v5038_v18 = vld [vmem:[%s5325_s27 + $0x968] ss:$16 sps:$4 sm:$0xff]   ;;  %v5043_v19 = vld [vmem:[%s5325_s27 + $0x984] ss:$16 sps:$4 sm:$0xff]  }
 0x10e   : > { %3048 = vmatprep.subr.bf16.mxu0 %v4959_v20  ;;  %3335 = vmatprep.subr.bf16.mxu1 %v4962_v21  ;;  %v5046_v20 = vld [vmem:[%s5325_s27 + $0x98c] ss:$16 sps:$4 sm:$0xff]   ;;  %v5041_v21 = vld [vmem:[%s5325_s27 + $0x980] ss:$16 sps:$4 sm:$0xff]  }
 0x111   : > { %3049 = vmatpush1.bf16.msra.mxu0 %v4957_v23  ;;  %3336 = vmatpush1.bf16.msra.mxu1 %v4960_v24  ;;  %v5044_v23 = vld [vmem:[%s5325_s27 + $0x988] ss:$16 sps:$4 sm:$0xff]   ;;  %v5049_v24 = vld [vmem:[%s5325_s27 + $0x9a4] ss:$16 sps:$4 sm:$0xff]  }
 0x112   : > { %3050 = vmatprep.subr.bf16.mxu0 %v4965_v25  ;;  %3337 = vmatprep.subr.bf16.mxu1 %v4968_v27  ;;  %v5052_v25 = vld [vmem:[%s5325_s27 + $0x9ac] ss:$16 sps:$4 sm:$0xff]   ;;  %v5047_v27 = vld [vmem:[%s5325_s27 + $0x9a0] ss:$16 sps:$4 sm:$0xff]  }
 0x115   : > { %3051 = vmatpush1.bf16.msra.mxu0 %v4963_v29  ;;  %3338 = vmatpush1.bf16.msra.mxu1 %v4966_v30  ;;  %v5050_v29 = vld [vmem:[%s5325_s27 + $0x9a8] ss:$16 sps:$4 sm:$0xff]   ;;  %v5055_v30 = vld [vmem:[%s5325_s27 + $0x9c4] ss:$16 sps:$4 sm:$0xff]  }
 0x116   : > { %3061 = vmatprep.subr.bf16.mxu0 %v4971_v31  ;;  %3348 = vmatprep.subr.bf16.mxu1 %v4974_v16  ;;  %v5058_v31 = vld [vmem:[%s5325_s27 + $0x9cc] ss:$16 sps:$4 sm:$0xff]   ;;  %v5053_v16 = vld [vmem:[%s5325_s27 + $0x9c0] ss:$16 sps:$4 sm:$0xff]  }
 0x118   : > { %3053 = vmatmul.mubr.bf16.vlgmr.msra.gmra.mrb[0].mxu0 %v762_v33  ;;  %3340 = vmatmul.mubr.bf16.vlgmr.msra.gmra.mrb[0].mxu1 %v762_v33  ;;  %v5061_v33 = vld [vmem:[%s5325_s27 + $0x9e4] ss:$16 sps:$4 sm:$0xff]  }
 0x119   : > { %3062 = vmatpush1.bf16.msra.mxu0 %v4969_v34  ;;  %3349 = vmatpush1.bf16.msra.mxu1 %v4972_v26  ;;  %v5064_v34 = vld [vmem:[%s5325_s27 + $0x9ec] ss:$16 sps:$4 sm:$0xff]   ;;  %v5059_v26 = vld [vmem:[%s5325_s27 + $0x9e0] ss:$16 sps:$4 sm:$0xff]  }
 0x11a   : > { %3063 = vmatprep.subr.bf16.mxu0 %v4977_v35  ;;  %3350 = vmatprep.subr.bf16.mxu1 %v4980_v36  ;;  %v5062_v35 = vld [vmem:[%s5325_s27 + $0x9e8] ss:$16 sps:$4 sm:$0xff]   ;;  %v5068_v36 = vld [vmem:[%s5325_s27 + $0xa04] ss:$16 sps:$4 sm:$0xff]  }
 0x11b   : > { %3093 = vmatprep.mubr.bf16.mxu0 %v5640_v37  ;;  %3380 = vmatprep.mubr.bf16.mxu1 %v5640_v37 }
 0x11d   : > { %3064 = vmatpush1.bf16.msra.mxu0 %v4975_v14  ;;  %3351 = vmatpush1.bf16.msra.mxu1 %v4978_v38  ;;  %v5071_v14 = vld [vmem:[%s5325_s27 + $0xa0c] ss:$16 sps:$4 sm:$0xff]   ;;  %v5706_v38 = vrot.slane %v5625_v28, %v5375_v50  ;;  %v5072_v28 = vld [vmem:[%s5325_s27 + $0xa20] ss:$16 sps:$4 sm:$0xff]  }
 0x11e   : > { %3065 = vmatprep.subr.bf16.mxu0 %v4983_v39  ;;  %3352 = vmatprep.subr.bf16.mxu1 %v4986_v40  ;;  %v5066_v39 = vld [vmem:[%s5325_s27 + $0xa00] ss:$16 sps:$4 sm:$0xff]   ;;  %v5069_v40 = vld [vmem:[%s5325_s27 + $0xa08] ss:$16 sps:$4 sm:$0xff]  }
 0x121   : > { %3066 = vmatpush1.bf16.msra.mxu0 %v4981_v41  ;;  %3353 = vmatpush1.bf16.msra.mxu1 %v4984_v42  ;;  %v5074_v41 = vld [vmem:[%s5325_s27 + $0xa24] ss:$16 sps:$4 sm:$0xff]   ;;  %v5077_v42 = vld [vmem:[%s5325_s27 + $0xa2c] ss:$16 sps:$4 sm:$0xff]  }
 0x122   : > { %3067 = vmatprep.subr.bf16.mxu0 %v4989_v43  ;;  %3354 = vmatprep.subr.bf16.mxu1 %v4992_v45  ;;  %v803_v43 = vcombine.high %v5640_v37, %v5640_v37  ;;  %v5075_v45 = vld [vmem:[%s5325_s27 + $0xa28] ss:$16 sps:$4 sm:$0xff]   ;;  %v5078_v37 = vld [vmem:[%s5325_s27 + $0xa40] ss:$16 sps:$4 sm:$0xff]  }
 0x125   : > { %3068 = vmatpush1.bf16.msra.mxu0 %v4987_v46  ;;  %3355 = vmatpush1.bf16.msra.mxu1 %v4990_v47  ;;  %v5080_v46 = vld [vmem:[%s5325_s27 + $0xa44] ss:$16 sps:$4 sm:$0xff]   ;;  %v5083_v47 = vld [vmem:[%s5325_s27 + $0xa4c] ss:$16 sps:$4 sm:$0xff]  }
 0x126   : > { %3069 = vmatprep.subr.bf16.mxu0 %v4995_v48  ;;  %3356 = vmatprep.subr.bf16.mxu1 %v4998_v49  ;;  %v5081_v48 = vld [vmem:[%s5325_s27 + $0xa48] ss:$16 sps:$4 sm:$0xff]   ;;  %v5086_v49 = vld [vmem:[%s5325_s27 + $0xa64] ss:$16 sps:$4 sm:$0xff]  }
 0x129   : > { %3070 = vmatpush1.bf16.msra.mxu0 %v4993_v51  ;;  %3357 = vmatpush1.bf16.msra.mxu1 %v4996_v52  ;;  %v5089_v51 = vld [vmem:[%s5325_s27 + $0xa6c] ss:$16 sps:$4 sm:$0xff]   ;;  %v5084_v52 = vld [vmem:[%s5325_s27 + $0xa60] ss:$16 sps:$4 sm:$0xff]  }
 0x12a   : > { %3071 = vmatprep.subr.bf16.mxu0 %v5001_v54  ;;  %3358 = vmatprep.subr.bf16.mxu1 %v5004_v55  ;;  %v5087_v54 = vld [vmem:[%s5325_s27 + $0xa68] ss:$16 sps:$4 sm:$0xff]   ;;  %v5092_v55 = vld [vmem:[%s5325_s27 + $0xa84] ss:$16 sps:$4 sm:$0xff]  }
 0x12d   : > { %3072 = vmatpush1.bf16.msra.mxu0 %v4999_v56  ;;  %3359 = vmatpush1.bf16.msra.mxu1 %v5002_v57  ;;  %v5095_v56 = vld [vmem:[%s5325_s27 + $0xa8c] ss:$16 sps:$4 sm:$0xff]   ;;  %v5090_v57 = vld [vmem:[%s5325_s27 + $0xa80] ss:$16 sps:$4 sm:$0xff]  }
 0x12e   : > { %3073 = vmatprep.subr.bf16.mxu0 %v5007_v58  ;;  %3360 = vmatprep.subr.bf16.mxu1 %v5010_v59  ;;  %v5093_v58 = vld [vmem:[%s5325_s27 + $0xa88] ss:$16 sps:$4 sm:$0xff]   ;;  %v5098_v59 = vld [vmem:[%s5325_s27 + $0xaa4] ss:$16 sps:$4 sm:$0xff]  }
 0x131   : > { %3074 = vmatpush1.bf16.msra.mxu0 %v5005_v60  ;;  %3361 = vmatpush1.bf16.msra.mxu1 %v5008_v61  ;;  %v5101_v60 = vld [vmem:[%s5325_s27 + $0xaac] ss:$16 sps:$4 sm:$0xff]   ;;  %v5096_v61 = vld [vmem:[%s5325_s27 + $0xaa0] ss:$16 sps:$4 sm:$0xff]  }
 0x132   : > { %3075 = vmatprep.subr.bf16.mxu0 %v5013_v62  ;;  %3362 = vmatprep.subr.bf16.mxu1 %v5016_v63  ;;  %v5099_v62 = vld [vmem:[%s5325_s27 + $0xaa8] ss:$16 sps:$4 sm:$0xff]   ;;  %v5104_v63 = vld [vmem:[%s5325_s27 + $0xac4] ss:$16 sps:$4 sm:$0xff]  }
 0x135   : > { %3076 = vmatpush1.bf16.msra.mxu0 %v5011_v0  ;;  %3363 = vmatpush1.bf16.msra.mxu1 %v5014_v1  ;;  %v5107_v0 = vld [vmem:[%s5325_s27 + $0xacc] ss:$16 sps:$4 sm:$0xff]   ;;  %v5102_v1 = vld [vmem:[%s5325_s27 + $0xac0] ss:$16 sps:$4 sm:$0xff]  }
 0x136   : > { %3077 = vmatprep.subr.bf16.mxu0 %v5019_v2  ;;  %3364 = vmatprep.subr.bf16.mxu1 %v5022_v3  ;;  %v5105_v2 = vld [vmem:[%s5325_s27 + $0xac8] ss:$16 sps:$4 sm:$0xff]   ;;  %v5110_v3 = vld [vmem:[%s5325_s27 + $0xae4] ss:$16 sps:$4 sm:$0xff]  }
 0x139   : > { %3078 = vmatpush1.bf16.msra.mxu0 %v5017_v4  ;;  %3365 = vmatpush1.bf16.msra.mxu1 %v5020_v5  ;;  %v5113_v4 = vld [vmem:[%s5325_s27 + $0xaec] ss:$16 sps:$4 sm:$0xff]   ;;  %v5108_v5 = vld [vmem:[%s5325_s27 + $0xae0] ss:$16 sps:$4 sm:$0xff]  }
 0x13a   : > { %3079 = vmatprep.subr.bf16.mxu0 %v5025_v6  ;;  %3366 = vmatprep.subr.bf16.mxu1 %v5028_v7  ;;  %v5111_v6 = vld [vmem:[%s5325_s27 + $0xae8] ss:$16 sps:$4 sm:$0xff]   ;;  %v5116_v7 = vld [vmem:[%s5325_s27 + $0xb04] ss:$16 sps:$4 sm:$0xff]  }
 0x13d   : > { %3080 = vmatpush1.bf16.msra.mxu0 %v5023_v8  ;;  %3367 = vmatpush1.bf16.msra.mxu1 %v5026_v9  ;;  %v5119_v8 = vld [vmem:[%s5325_s27 + $0xb0c] ss:$16 sps:$4 sm:$0xff]   ;;  %v5114_v9 = vld [vmem:[%s5325_s27 + $0xb00] ss:$16 sps:$4 sm:$0xff]  }
 0x13e   : > { %3081 = vmatprep.subr.bf16.mxu0 %v5031_v10  ;;  %3368 = vmatprep.subr.bf16.mxu1 %v5034_v11  ;;  %v5117_v10 = vld [vmem:[%s5325_s27 + $0xb08] ss:$16 sps:$4 sm:$0xff]   ;;  %v5122_v11 = vld [vmem:[%s5325_s27 + $0xb24] ss:$16 sps:$4 sm:$0xff]  }
 0x141   : > { %3082 = vmatpush1.bf16.msra.mxu0 %v5029_v12  ;;  %3369 = vmatpush1.bf16.msra.mxu1 %v5032_v13  ;;  %v5125_v12 = vld [vmem:[%s5325_s27 + $0xb2c] ss:$16 sps:$4 sm:$0xff]   ;;  %v5120_v13 = vld [vmem:[%s5325_s27 + $0xb20] ss:$16 sps:$4 sm:$0xff]  }
 0x142   : > { %3083 = vmatprep.subr.bf16.mxu0 %v5037_v15  ;;  %3370 = vmatprep.subr.bf16.mxu1 %v5040_v17  ;;  %v5123_v15 = vld [vmem:[%s5325_s27 + $0xb28] ss:$16 sps:$4 sm:$0xff]   ;;  %v5128_v17 = vld [vmem:[%s5325_s27 + $0xb44] ss:$16 sps:$4 sm:$0xff]  }
 0x145   : > { %3084 = vmatpush1.bf16.msra.mxu0 %v5035_v53  ;;  %3371 = vmatpush1.bf16.msra.mxu1 %v5038_v18  ;;  %v5131_v53 = vld [vmem:[%s5325_s27 + $0xb4c] ss:$16 sps:$4 sm:$0xff]   ;;  %v5126_v18 = vld [vmem:[%s5325_s27 + $0xb40] ss:$16 sps:$4 sm:$0xff]  }
 0x146   : > { %3085 = vmatprep.subr.bf16.mxu0 %v5043_v19  ;;  %3372 = vmatprep.subr.bf16.mxu1 %v5046_v20  ;;  %v5129_v19 = vld [vmem:[%s5325_s27 + $0xb48] ss:$16 sps:$4 sm:$0xff]   ;;  %v5134_v20 = vld [vmem:[%s5325_s27 + $0xb64] ss:$16 sps:$4 sm:$0xff]  }
 0x149   : > { %3086 = vmatpush1.bf16.msra.mxu0 %v5041_v21  ;;  %3373 = vmatpush1.bf16.msra.mxu1 %v5044_v23  ;;  %v5137_v21 = vld [vmem:[%s5325_s27 + $0xb6c] ss:$16 sps:$4 sm:$0xff]   ;;  %v5132_v23 = vld [vmem:[%s5325_s27 + $0xb60] ss:$16 sps:$4 sm:$0xff]  }
 0x14a   : > { %3087 = vmatprep.subr.bf16.mxu0 %v5049_v24  ;;  %3374 = vmatprep.subr.bf16.mxu1 %v5052_v25  ;;  %v5135_v24 = vld [vmem:[%s5325_s27 + $0xb68] ss:$16 sps:$4 sm:$0xff]   ;;  %v5140_v25 = vld [vmem:[%s5325_s27 + $0xb84] ss:$16 sps:$4 sm:$0xff]  }
 0x14d   : > { %3088 = vmatpush1.bf16.msra.mxu0 %v5047_v27  ;;  %3375 = vmatpush1.bf16.msra.mxu1 %v5050_v29  ;;  %v5143_v27 = vld [vmem:[%s5325_s27 + $0xb8c] ss:$16 sps:$4 sm:$0xff]   ;;  %v5138_v29 = vld [vmem:[%s5325_s27 + $0xb80] ss:$16 sps:$4 sm:$0xff]  }
 0x14e   : > { %3089 = vmatprep.subr.bf16.mxu0 %v5055_v30  ;;  %3376 = vmatprep.subr.bf16.mxu1 %v5058_v31  ;;  %v5141_v30 = vld [vmem:[%s5325_s27 + $0xb88] ss:$16 sps:$4 sm:$0xff]   ;;  %v5146_v31 = vld [vmem:[%s5325_s27 + $0xba4] ss:$16 sps:$4 sm:$0xff]  }
 0x151   : > { %3090 = vmatpush1.bf16.msra.mxu0 %v5053_v16  ;;  %3377 = vmatpush1.bf16.msra.mxu1 %v5056_v32  ;;  %v5149_v16 = vld [vmem:[%s5325_s27 + $0xbac] ss:$16 sps:$4 sm:$0xff]   ;;  %v5144_v32 = vld [vmem:[%s5325_s27 + $0xba0] ss:$16 sps:$4 sm:$0xff]  }
 0x152   : > { %3091 = vmatprep.subr.bf16.mxu0 %v5061_v33  ;;  %3378 = vmatprep.subr.bf16.mxu1 %v5064_v34  ;;  %v5147_v33 = vld [vmem:[%s5325_s27 + $0xba8] ss:$16 sps:$4 sm:$0xff]   ;;  %v5152_v34 = vld [vmem:[%s5325_s27 + $0xbc4] ss:$16 sps:$4 sm:$0xff]  }
 0x155   : > { %3092 = vmatpush1.bf16.msra.mxu0 %v5059_v26  ;;  %3379 = vmatpush1.bf16.msra.mxu1 %v5062_v35  ;;  %v5155_v26 = vld [vmem:[%s5325_s27 + $0xbcc] ss:$16 sps:$4 sm:$0xff]   ;;  %v5150_v35 = vld [vmem:[%s5325_s27 + $0xbc0] ss:$16 sps:$4 sm:$0xff]  }
 0x156   : > { %3102 = vmatprep.subr.bf16.mxu0 %v5068_v36  ;;  %3389 = vmatprep.subr.bf16.mxu1 %v5071_v14  ;;  %v5153_v36 = vld [vmem:[%s5325_s27 + $0xbc8] ss:$16 sps:$4 sm:$0xff]   ;;  %v5158_v14 = vld [vmem:[%s5325_s27 + $0xbe4] ss:$16 sps:$4 sm:$0xff]  }
 0x158   : > { %3094 = vmatmul.mubr.bf16.vlgmr.msra.gmra.mrb[0].mxu0 %v5706_v38  ;;  %3381 = vmatmul.mubr.bf16.vlgmr.msra.gmra.mrb[0].mxu1 %v5706_v38 }
 0x159   : > { %3103 = vmatpush1.bf16.msra.mxu0 %v5066_v39  ;;  %3390 = vmatpush1.bf16.msra.mxu1 %v5069_v40  ;;  %v5161_v39 = vld [vmem:[%s5325_s27 + $0xbec] ss:$16 sps:$4 sm:$0xff]   ;;  %v5156_v40 = vld [vmem:[%s5325_s27 + $0xbe0] ss:$16 sps:$4 sm:$0xff]  }
 0x15a   : > { %3104 = vmatprep.subr.bf16.mxu0 %v5074_v41  ;;  %3391 = vmatprep.subr.bf16.mxu1 %v5077_v42  ;;  %v5159_v41 = vld [vmem:[%s5325_s27 + $0xbe8] ss:$16 sps:$4 sm:$0xff]   ;;  %v5164_v42 = vld [vmem:[%s5325_s27 + $0xc04] ss:$16 sps:$4 sm:$0xff]  }
 0x15b   : > { %3134 = vmatprep.mubr.bf16.mxu0 %v803_v43  ;;  %3421 = vmatprep.mubr.bf16.mxu1 %v803_v43  ;;  %v5167_v43 = vld [vmem:[%s5325_s27 + $0xc0c] ss:$16 sps:$4 sm:$0xff]  }
 0x15d   : > { %3105 = vmatpush1.bf16.msra.mxu0 %v5072_v28  ;;  %3392 = vmatpush1.bf16.msra.mxu1 %v5075_v45  ;;  %v802_v28 = vcombine.high %v5706_v38, %v5706_v38  ;;  %v5162_v45 = vld [vmem:[%s5325_s27 + $0xc00] ss:$16 sps:$4 sm:$0xff]   ;;  %v5171_v38 = vld [vmem:[%s5325_s27 + $0xc28] ss:$16 sps:$4 sm:$0xff]  }
 0x15e   : > { %3106 = vmatprep.subr.bf16.mxu0 %v5080_v46  ;;  %3393 = vmatprep.subr.bf16.mxu1 %v5083_v47  ;;  %v5165_v46 = vld [vmem:[%s5325_s27 + $0xc08] ss:$16 sps:$4 sm:$0xff]   ;;  %v5170_v47 = vld [vmem:[%s5325_s27 + $0xc24] ss:$16 sps:$4 sm:$0xff]  }
 0x161   : > { %3107 = vmatpush1.bf16.msra.mxu0 %v5078_v37  ;;  %3394 = vmatpush1.bf16.msra.mxu1 %v5081_v48  ;;  %v5173_v37 = vld [vmem:[%s5325_s27 + $0xc2c] ss:$16 sps:$4 sm:$0xff]   ;;  %v5168_v48 = vld [vmem:[%s5325_s27 + $0xc20] ss:$16 sps:$4 sm:$0xff]  }
 0x162   : > { %3108 = vmatprep.subr.bf16.mxu0 %v5086_v49  ;;  %3395 = vmatprep.subr.bf16.mxu1 %v5089_v51  ;;  %v5176_v49 = vld [vmem:[%s5325_s27 + $0xc44] ss:$16 sps:$4 sm:$0xff]   ;;  %v5179_v51 = vld [vmem:[%s5325_s27 + $0xc4c] ss:$16 sps:$4 sm:$0xff]  }
 0x165   : > { %3109 = vmatpush1.bf16.msra.mxu0 %v5084_v52  ;;  %3396 = vmatpush1.bf16.msra.mxu1 %v5087_v54  ;;  %v5268_v52 = vmov 0   ;;  %v5174_v54 = vld [vmem:[%s5325_s27 + $0xc40] ss:$16 sps:$4 sm:$0xff]  }
 0x166   : > { %3110 = vmatprep.subr.bf16.mxu0 %v5092_v55  ;;  %3397 = vmatprep.subr.bf16.mxu1 %v5095_v56  ;;  %v5177_v55 = vld [vmem:[%s5325_s27 + $0xc48] ss:$16 sps:$4 sm:$0xff]   ;;  %v5182_v56 = vld [vmem:[%s5325_s27 + $0xc64] ss:$16 sps:$4 sm:$0xff]  }
 0x169   : > { %3111 = vmatpush1.bf16.msra.mxu0 %v5090_v57  ;;  %3398 = vmatpush1.bf16.msra.mxu1 %v5093_v58  ;;  %v5185_v57 = vld [vmem:[%s5325_s27 + $0xc6c] ss:$16 sps:$4 sm:$0xff]   ;;  %v5180_v58 = vld [vmem:[%s5325_s27 + $0xc60] ss:$16 sps:$4 sm:$0xff]  }
 0x16a   : > { %3112 = vmatprep.subr.bf16.mxu0 %v5098_v59  ;;  %3399 = vmatprep.subr.bf16.mxu1 %v5101_v60  ;;  %v5183_v59 = vld [vmem:[%s5325_s27 + $0xc68] ss:$16 sps:$4 sm:$0xff]   ;;  %v5188_v60 = vld [vmem:[%s5325_s27 + $0xc84] ss:$16 sps:$4 sm:$0xff]  }
 0x16d   : > { %3113 = vmatpush1.bf16.msra.mxu0 %v5096_v61  ;;  %3400 = vmatpush1.bf16.msra.mxu1 %v5099_v62  ;;  %v5191_v61 = vld [vmem:[%s5325_s27 + $0xc8c] ss:$16 sps:$4 sm:$0xff]   ;;  %v5186_v62 = vld [vmem:[%s5325_s27 + $0xc80] ss:$16 sps:$4 sm:$0xff]  }
 0x16e   : > { %3114 = vmatprep.subr.bf16.mxu0 %v5104_v63  ;;  %3401 = vmatprep.subr.bf16.mxu1 %v5107_v0  ;;  %v5189_v63 = vld [vmem:[%s5325_s27 + $0xc88] ss:$16 sps:$4 sm:$0xff]   ;;  %v5194_v0 = vld [vmem:[%s5325_s27 + $0xca4] ss:$16 sps:$4 sm:$0xff]  }
 0x171   : > { %3115 = vmatpush1.bf16.msra.mxu0 %v5102_v1  ;;  %3402 = vmatpush1.bf16.msra.mxu1 %v5105_v2  ;;  %v5197_v1 = vld [vmem:[%s5325_s27 + $0xcac] ss:$16 sps:$4 sm:$0xff]   ;;  %v5192_v2 = vld [vmem:[%s5325_s27 + $0xca0] ss:$16 sps:$4 sm:$0xff]  }
 0x172   : > { %3116 = vmatprep.subr.bf16.mxu0 %v5110_v3  ;;  %3403 = vmatprep.subr.bf16.mxu1 %v5113_v4  ;;  %v5195_v3 = vld [vmem:[%s5325_s27 + $0xca8] ss:$16 sps:$4 sm:$0xff]   ;;  %v5200_v4 = vld [vmem:[%s5325_s27 + $0xcc4] ss:$16 sps:$4 sm:$0xff]  }
 0x175   : > { %3117 = vmatpush1.bf16.msra.mxu0 %v5108_v5  ;;  %3404 = vmatpush1.bf16.msra.mxu1 %v5111_v6  ;;  %v5203_v5 = vld [vmem:[%s5325_s27 + $0xccc] ss:$16 sps:$4 sm:$0xff]   ;;  %v765_v6 = vcombine.high %v5617_v22, %v5617_v22  ;;  %v5269_v22 = vmov 1983009808  }
 0x176   : > { %3118 = vmatprep.subr.bf16.mxu0 %v5116_v7  ;;  %3405 = vmatprep.subr.bf16.mxu1 %v5119_v8  ;;  %v5198_v7 = vld [vmem:[%s5325_s27 + $0xcc0] ss:$16 sps:$4 sm:$0xff]   ;;  %v5201_v8 = vld [vmem:[%s5325_s27 + $0xcc8] ss:$16 sps:$4 sm:$0xff]  }
 0x179   : > { %3119 = vmatpush1.bf16.msra.mxu0 %v5114_v9  ;;  %3406 = vmatpush1.bf16.msra.mxu1 %v5117_v10  ;;  %v5206_v9 = vld [vmem:[%s5325_s27 + $0xce4] ss:$16 sps:$4 sm:$0xff]   ;;  %v5209_v10 = vld [vmem:[%s5325_s27 + $0xcec] ss:$16 sps:$4 sm:$0xff]  }
 0x17a   : > { %3120 = vmatprep.subr.bf16.mxu0 %v5122_v11  ;;  %3407 = vmatprep.subr.bf16.mxu1 %v5125_v12  ;;  %v779_v11 = vrot.slane %v765_v6, %v5375_v50  ;;  %v5204_v12 = vld [vmem:[%s5325_s27 + $0xce0] ss:$16 sps:$4 sm:$0xff]   ;;  %v5241_v6 = vld [vmem:[%s5940_s3 + $0xb8] sm:$0xff] (!%p4427_p7)  }
 0x17d   : > { %3121 = vmatpush1.bf16.msra.mxu0 %v5120_v13  ;;  %3408 = vmatpush1.bf16.msra.mxu1 %v5123_v15  ;;  %v5207_v13 = vld [vmem:[%s5325_s27 + $0xce8] ss:$16 sps:$4 sm:$0xff]   ;;  %v794_v15 = vrot.slane %v779_v11, %v5375_v50 }
 0x17e   : > { %3122 = vmatprep.subr.bf16.mxu0 %v5128_v17  ;;  %3409 = vmatprep.subr.bf16.mxu1 %v5131_v53  ;;  %v3478_v17 = vunpack.c.l.s4 %v5269_v22 }
 0x180   : > { %v3479_v53 = vunpack.c.0.s8 %v3478_v17 }
 0x181   : > { %3123 = vmatpush1.bf16.msra.mxu0 %v5126_v18  ;;  %3410 = vmatpush1.bf16.msra.mxu1 %v5129_v19 }
 0x182   : > { %3124 = vmatprep.subr.bf16.mxu0 %v5134_v20  ;;  %3411 = vmatprep.subr.bf16.mxu1 %v5137_v21  ;;  %v5813_v20 = vsub.s32 %v3479_v53, %v5367_v44 }
 0x185   : > { %3125 = vmatpush1.bf16.msra.mxu0 %v5132_v23  ;;  %3412 = vmatpush1.bf16.msra.mxu1 %v5135_v24 }
 0x186   : > { %3126 = vmatprep.subr.bf16.mxu0 %v5140_v25  ;;  %3413 = vmatprep.subr.bf16.mxu1 %v5143_v27 }
 0x189   : > { %3127 = vmatpush1.bf16.msra.mxu0 %v5138_v29  ;;  %3414 = vmatpush1.bf16.msra.mxu1 %v5141_v30 }
 0x18a   : > { %3128 = vmatprep.subr.bf16.mxu0 %v5146_v31  ;;  %3415 = vmatprep.subr.bf16.mxu1 %v5149_v16 }
 0x18d   : > { %3129 = vmatpush1.bf16.msra.mxu0 %v5144_v32  ;;  %3416 = vmatpush1.bf16.msra.mxu1 %v5147_v33  ;;  %v295_v32 = vld [vmem:[#allocation2] sm:$0xff] }
 0x18e   : > { %3130 = vmatprep.subr.bf16.mxu0 %v5152_v34  ;;  %3417 = vmatprep.subr.bf16.mxu1 %v5155_v26  ;;  %v5210_v26 = vld [vmem:[%s5940_s3 + $0x40] sm:$0xff] (!%p4427_p7)  }
 0x191   : > { %3131 = vmatpush1.bf16.msra.mxu0 %v5150_v35  ;;  %3418 = vmatpush1.bf16.msra.mxu1 %v5153_v36  ;;  %v5211_v35 = vld [vmem:[%s5940_s3 + $0xc0] sm:$0xff] (!%p4427_p7)  }
 0x192   : > { %3132 = vmatprep.subr.bf16.mxu0 %v5158_v14  ;;  %3419 = vmatprep.subr.bf16.mxu1 %v5161_v39  ;;  %v5212_v36 = vld [vmem:[%s5940_s3] sm:$0xff] (!%p4427_p7)   ;;  %v5214_v39 = vld [vmem:[%s5940_s3 + $0x48] sm:$0xff] (!%p4427_p7)  }
 0x193   : > { %v5213_v14 = vld [vmem:[%s5940_s3 + $0x80] sm:$0xff] (!%p4427_p7)  }
 0x195   : > { %3133 = vmatpush1.bf16.msra.mxu0 %v5156_v40  ;;  %3420 = vmatpush1.bf16.msra.mxu1 %v5159_v41  ;;  %v5215_v40 = vld [vmem:[%s5940_s3 + $0xc8] sm:$0xff] (!%p4427_p7)  }
 0x196   : > { %3143 = vmatprep.subr.bf16.mxu0 %v5164_v42  ;;  %3430 = vmatprep.subr.bf16.mxu1 %v5167_v43  ;;  %v5216_v41 = vld [vmem:[%s5940_s3 + $0x8] sm:$0xff] (!%p4427_p7)   ;;  %v5218_v43 = vld [vmem:[%s5940_s3 + $0x50] sm:$0xff] (!%p4427_p7)  }
 0x197   : > { %v5217_v42 = vld [vmem:[%s5940_s3 + $0x88] sm:$0xff] (!%p4427_p7)  }
 0x198   : > { %3135 = vmatmul.mubr.bf16.vlgmr.msra.gmra.mrb[0].mxu0 %v802_v28  ;;  %3422 = vmatmul.mubr.bf16.vlgmr.msra.gmra.mrb[0].mxu1 %v802_v28  ;;  %v5219_v28 = vld [vmem:[%s5940_s3 + $0xd0] sm:$0xff] (!%p4427_p7)  }
 0x199   : > { %3144 = vmatpush1.bf16.msra.mxu0 %v5162_v45  ;;  %3431 = vmatpush1.bf16.msra.mxu1 %v5165_v46  ;;  %v5220_v45 = vld [vmem:[%s5940_s3 + $0x10] sm:$0xff] (!%p4427_p7)  }
 0x19a   : > { %3145 = vmatprep.subr.bf16.mxu0 %v5170_v47  ;;  %3432 = vmatprep.subr.bf16.mxu1 %v5173_v37  ;;  %v5221_v46 = vld [vmem:[%s5940_s3 + $0x90] sm:$0xff] (!%p4427_p7)   ;;  %v5222_v47 = vld [vmem:[%s5940_s3 + $0x58] sm:$0xff] (!%p4427_p7)  }
 0x19b   : > { %3175 = vmatprep.mubr.bf16.mxu0 %v5268_v52  ;;  %3462 = vmatprep.mubr.bf16.mxu1 %v5268_v52  ;;  %v5223_v37 = vld [vmem:[%s5940_s3 + $0xd8] sm:$0xff] (!%p4427_p7)   ;;  %v5228_v52 = vld [vmem:[%s5940_s3 + $0x20] sm:$0xff] (!%p4427_p7)  }
 0x19d   : > { %3146 = vmatpush1.bf16.msra.mxu0 %v5168_v48  ;;  %3433 = vmatpush1.bf16.msra.mxu1 %v5171_v38  ;;  %v5224_v48 = vld [vmem:[%s5940_s3 + $0x18] sm:$0xff] (!%p4427_p7)  }
 0x19e   : > { %3147 = vmatprep.subr.bf16.mxu0 %v5176_v49  ;;  %3434 = vmatprep.subr.bf16.mxu1 %v5179_v51  ;;  %v5225_v38 = vld [vmem:[%s5940_s3 + $0x98] sm:$0xff] (!%p4427_p7)   ;;  %v5226_v49 = vld [vmem:[%s5940_s3 + $0x60] sm:$0xff] (!%p4427_p7)  }
 0x19f   : > { %v5227_v51 = vld [vmem:[%s5940_s3 + $0xe0] sm:$0xff] (!%p4427_p7)  }
 0x1a1   : > { %3148 = vmatpush1.bf16.msra.mxu0 %v5174_v54  ;;  %3435 = vmatpush1.bf16.msra.mxu1 %v5177_v55  ;;  %v5229_v54 = vld [vmem:[%s5940_s3 + $0xa0] sm:$0xff] (!%p4427_p7)   ;;  %v5230_v55 = vld [vmem:[%s5940_s3 + $0x68] sm:$0xff] (!%p4427_p7)  }
 0x1a2   : > { %3149 = vmatprep.subr.bf16.mxu0 %v5182_v56  ;;  %3436 = vmatprep.subr.bf16.mxu1 %v5185_v57  ;;  %v5231_v56 = vld [vmem:[%s5940_s3 + $0xe8] sm:$0xff] (!%p4427_p7)  }
 0x1a3   : > { %v5232_v57 = vld [vmem:[%s5940_s3 + $0x28] sm:$0xff] (!%p4427_p7)  }
 0x1a5   : > { %3150 = vmatpush1.bf16.msra.mxu0 %v5180_v58  ;;  %3437 = vmatpush1.bf16.msra.mxu1 %v5183_v59  ;;  %v5233_v58 = vld [vmem:[%s5940_s3 + $0xa8] sm:$0xff] (!%p4427_p7)   ;;  %v5234_v59 = vld [vmem:[%s5940_s3 + $0x70] sm:$0xff] (!%p4427_p7)  }
 0x1a6   : > { %3151 = vmatprep.subr.bf16.mxu0 %v5188_v60  ;;  %3438 = vmatprep.subr.bf16.mxu1 %v5191_v61  ;;  %v5235_v60 = vld [vmem:[%s5940_s3 + $0xf0] sm:$0xff] (!%p4427_p7)  }
 0x1a7   : > { %v5236_v61 = vld [vmem:[%s5940_s3 + $0x30] sm:$0xff] (!%p4427_p7)  }
 0x1a9   : > { %3152 = vmatpush1.bf16.msra.mxu0 %v5186_v62  ;;  %3439 = vmatpush1.bf16.msra.mxu1 %v5189_v63  ;;  %v3504_v62 = vsub.s32 (!%p4427_p7), 0, %v5367_v44  ;;  %v5237_v63 = vld [vmem:[%s5940_s3 + $0xb0] sm:$0xff] (!%p4427_p7)  }
 0x1aa   : > { %3153 = vmatprep.subr.bf16.mxu0 %v5194_v0  ;;  %3440 = vmatprep.subr.bf16.mxu1 %v5197_v1  ;;  %v3508_v0 = vsub.s32 (!%p4427_p7), 1, %v5367_v44  ;;  %v5238_v1 = vld [vmem:[%s5940_s3 + $0x78] sm:$0xff] (!%p4427_p7)  }
 0x1ad   : > { %3154 = vmatpush1.bf16.msra.mxu0 %v5192_v2  ;;  %3441 = vmatpush1.bf16.msra.mxu1 %v5195_v3  ;;  %v3512_v2 = vsub.s32 (!%p4427_p7), 2, %v5367_v44  ;;  %v5239_v3 = vld [vmem:[%s5940_s3 + $0xf8] sm:$0xff] (!%p4427_p7)  }
 0x1ae   : > { %3155 = vmatprep.subr.bf16.mxu0 %v5200_v4  ;;  %3442 = vmatprep.subr.bf16.mxu1 %v5203_v5  ;;  %v3516_v4 = vsub.s32 (!%p4427_p7), 3, %v5367_v44  ;;  %v5240_v5 = vld [vmem:[%s5940_s3 + $0x38] sm:$0xff] (!%p4427_p7)  }
 0x1b1   : > { %3156 = vmatpush1.bf16.msra.mxu0 %v5198_v7  ;;  %3443 = vmatpush1.bf16.msra.mxu1 %v5201_v8  ;;  %v3500_v7 = vld [vmem:[%s5939_s2] sm:$0xf] (!%p4427_p7) }
 0x1b2   : > { %3157 = vmatprep.subr.bf16.mxu0 %v5206_v9  ;;  %3444 = vmatprep.subr.bf16.mxu1 %v5209_v10  ;;  %v3505_v8 = vrot.slane (!%p4427_p7), %v3500_v7, %v3504_v62  ;;  %v3509_v9 = vrot.slane (!%p4427_p7), %v3500_v7, %v3508_v0  ;;  %v3513_v10 = vrot.slane (!%p4427_p7), %v3500_v7, %v3512_v2 }
 0x1b3   : > { %v3517_v44 = vrot.slane (!%p4427_p7), %v3500_v7, %v3516_v4 }
 0x1b4   : > { %v3518_v11 = vcombine.low (!%p4427_p7), %v3505_v8, %v3509_v9 }
 0x1b5   : > { %3158 = vmatpush1.bf16.msra.mxu0 %v5204_v12  ;;  %3445 = vmatpush1.bf16.msra.mxu1 %v5207_v13  ;;  %v3519_v12 = vcombine.low (!%p4427_p7), %v3513_v10, %v3517_v44 }
 0x1b6   : > { %4464 = vmatprep.subr.bf16.mxu0 (!%p4427_p7), %v5210_v26  ;;  %4486 = vmatprep.subr.bf16.mxu1 (!%p4427_p7), %v5211_v35  ;;  %v3526_v13 = vrot.slane (!%p4427_p7), %v3518_v11, %v5813_v20 }
 0x1b8   : > { %3176 = vmatmul.mubr.bf16.vlgmr.msra.gmra.mrb[0].mxu0 %v794_v15  ;;  %3463 = vmatmul.mubr.bf16.vlgmr.msra.gmra.mrb[0].mxu1 %v794_v15  ;;  %v3533_v15 = vrot.slane (!%p4427_p7), %v3519_v12, %v5813_v20 }
 0x1b9   : > { %4465 = vmatpush3.bf16.msra.mxu0 (!%p4427_p7), %v5212_v36  ;;  %4487 = vmatpush3.bf16.msra.mxu1 (!%p4427_p7), %v5213_v14 }
 0x1ba   : > { %4466 = vmatprep.subr.bf16.mxu0 (!%p4427_p7), %v5214_v39  ;;  %4488 = vmatprep.subr.bf16.mxu1 (!%p4427_p7), %v5215_v40  ;;  %v3534_v17 = vcombine.low (!%p4427_p7), %v3526_v13, %v3533_v15 }
 0x1bd   : > { %4467 = vmatpush3.bf16.msra.mxu0 (!%p4427_p7), %v5216_v41  ;;  %4489 = vmatpush3.bf16.msra.mxu1 (!%p4427_p7), %v5217_v42 }
 0x1be   : > { %4468 = vmatprep.subr.bf16.mxu0 (!%p4427_p7), %v5218_v43  ;;  %4490 = vmatprep.subr.bf16.mxu1 (!%p4427_p7), %v5219_v28 }
 0x1c1   : > { %4469 = vmatpush3.bf16.msra.mxu0 (!%p4427_p7), %v5220_v45  ;;  %4491 = vmatpush3.bf16.msra.mxu1 (!%p4427_p7), %v5221_v46 }
 0x1c2   : > { %4470 = vmatprep.subr.bf16.mxu0 (!%p4427_p7), %v5222_v47  ;;  %4492 = vmatprep.subr.bf16.mxu1 (!%p4427_p7), %v5223_v37 }
 0x1c5   : > { %4471 = vmatpush3.bf16.msra.mxu0 (!%p4427_p7), %v5224_v48  ;;  %4493 = vmatpush3.bf16.msra.mxu1 (!%p4427_p7), %v5225_v38 }
 0x1c6   : > { %4472 = vmatprep.subr.bf16.mxu0 (!%p4427_p7), %v5226_v49  ;;  %4494 = vmatprep.subr.bf16.mxu1 (!%p4427_p7), %v5227_v51 }
 0x1c9   : > { %4473 = vmatpush3.bf16.msra.mxu0 (!%p4427_p7), %v5228_v52  ;;  %4495 = vmatpush3.bf16.msra.mxu1 (!%p4427_p7), %v5229_v54 }
 0x1ca   : > { %4474 = vmatprep.subr.bf16.mxu0 (!%p4427_p7), %v5230_v55  ;;  %4496 = vmatprep.subr.bf16.mxu1 (!%p4427_p7), %v5231_v56 }
 0x1cd   : > { %4475 = vmatpush3.bf16.msra.mxu0 (!%p4427_p7), %v5232_v57  ;;  %4497 = vmatpush3.bf16.msra.mxu1 (!%p4427_p7), %v5233_v58 }
 0x1ce   : > { %4476 = vmatprep.subr.bf16.mxu0 (!%p4427_p7), %v5234_v59  ;;  %4498 = vmatprep.subr.bf16.mxu1 (!%p4427_p7), %v5235_v60 }
 0x1d1   : > { %4477 = vmatpush3.bf16.msra.mxu0 (!%p4427_p7), %v5236_v61  ;;  %4499 = vmatpush3.bf16.msra.mxu1 (!%p4427_p7), %v5237_v63 }
 0x1d2   : > { %4478 = vmatprep.subr.bf16.mxu0 (!%p4427_p7), %v5238_v1  ;;  %4500 = vmatprep.subr.bf16.mxu1 (!%p4427_p7), %v5239_v3 }
 0x1d5   : > { %4479 = vmatpush3.bf16.msra.mxu0 (!%p4427_p7), %v5240_v5  ;;  %4501 = vmatpush3.bf16.msra.mxu1 (!%p4427_p7), %v5241_v6 }
 0x28b   : > { %v3177_v18 = vpop.f32.mrb[0].mxu0  ;;  %v3464_v19 = vpop.f32.mrb[0].mxu1 }
 0x28c   : > { %v3179_v21 = vpop.f32.mrb[1].mxu0  ;;  %v3466_v23 = vpop.f32.mrb[1].mxu1 }
 0x28d   : > { %v3475_v24 = vcombine.low %v3177_v18, %v3179_v21  ;;  %v3476_v25 = vcombine.low %v3464_v19, %v3466_v23  ;;  %v3181_v27 = vpop.f32.mrb[2].mxu0  ;;  %v3468_v29 = vpop.f32.mrb[2].mxu1 }
 0x28e   : > { %v3182_v30 = vpop.f32.mrb[3].mxu0  ;;  %v3469_v50 = vpop.f32.mrb[3].mxu1 }
 0x28f   : > { %v3483_v31 = vrot.slane %v3475_v24, %v5813_v20  ;;  %v3490_v16 = vrot.slane %v3476_v25, %v5813_v20  ;;  %3498 = sbr.rel (%p4427_p7) target bundleno = 900 (0x384), region = 44 }
 0x291   : > { %v3491_v33 = vcombine.low %v3483_v31, %v3490_v16 }
 0x293   : > { %v3493_v34 = vadd.f32 %v3491_v33, %v295_v32 }
 0x295   : > { %3494 = vst [vmem:[#allocation2] sm:$0xff] %v3493_v34 }
 0x29c   : > { %v3499_v22 = vld [vmem:[#allocation2] sm:$0xff] }
 0x29d   : > { %v3536_v53 = vadd.f32 %v3534_v17, %v3499_v22 }
 0x29f   : > { %v3537_v18 = vmax.f32 %v3536_v53, 0.0 }
 0x2a1   : > { %v3546_v19 = vrot.slane %v3537_v18, %v5813_v20  ;;  %v3539_v21 = vcombine.high %v3537_v18, %v3537_v18 }
 0x2a3   : > { %v3554_v23 = vcombine.high %v3546_v19, %v3546_v19  ;;  %v3553_v24 = vrot.slane %v3539_v21, %v5813_v20  ;;  %v3560_v25 = vpack.c.bf16 %v3546_v19, %v3546_v19 }
 0x2a5   : > { %v3561_v27 = vpack.c.bf16 %v3554_v23, %v3554_v23  ;;  %v3555_v29 = vcombine.high %v3553_v24, %v3553_v24  ;;  %v3562_v30 = vpack.c.bf16 %v3553_v24, %v3553_v24 }
 0x2a7   : > { %3852 = vmatprep.mubr.bf16.mxu0 %v3561_v27  ;;  %v3563_v50 = vpack.c.bf16 %v3555_v29, %v3555_v29 }
 0x2a8   : > { %3853 = vmatmul.mubr.bf16.vlgmr.msra.gmra.mrb[0].mxu0 %v3560_v25 }
 0x2a9   : > { %3892 = vmatprep.mubr.bf16.mxu1 %v3563_v50 }
 0x2aa   : > { %3893 = vmatmul.mubr.bf16.vlgmr.msra.gmra.mrb[0].mxu1 %v3562_v30 }
 0x37b   : > { %v4480_v31 = vpop.f32.mrb[0].mxu0 }
 0x37c   : > { %v4481_v16 = vpop.f32.mrb[1].mxu0 }
 0x37d   : > { %v4502_v32 = vpop.f32.mrb[0].mxu1  ;;  %v4482_v33 = vadd.f32 %v4481_v16, %v4480_v31  ;;  %v4483_v34 = vpop.f32.mrb[2].mxu0 }
 0x37e   : > { %v4503_v26 = vpop.f32.mrb[1].mxu1  ;;  %v4484_v35 = vpop.f32.mrb[3].mxu0 }
 0x37f   : > { %v4504_v36 = vadd.f32 %v4503_v26, %v4502_v32  ;;  %v4505_v14 = vpop.f32.mrb[2].mxu1 }
 0x380   : > { %v4506_v39 = vpop.f32.mrb[3].mxu1 }
 0x381   : > { %v3895_v20 = vadd.f32 %v4504_v36, %v4482_v33 }
 0x383   : > { %3900 = vst [vmem:[%s5941_s4] sm:$0x3] %v3895_v20 }
 0x384 PF: > { %s14_s17 = sadd.s32 1, %s5264_s17   ;;  %s5942_s15 = smov %s5260_s16 }
 0x385   : > { %p11_p8 = scmp.ge.s32.totalorder %s14_s17, 7   ;;  %s5943_s16 = smov %s5945_s18 }
 0x387   :  { %13 = sbr.rel (!%p11_p8) target bundleno = 2 (0x2), region = 83 }

</bundles_post_ra>
